<compile_context>
chip_gen: v7x
topology: tpu7x:2x2x1
jax: 0.10.0
libtpu: 0.0.40
codegen_flags: <defaults>
</compile_context>

<pallas_src>
import functools

import jax
import jax.numpy as jnp
from jax import lax
from jax.experimental import pallas as pl
from jax.experimental.pallas import tpu as pltpu


# ----------------------------------------------------------------------------
# Kernel 1: the entire recurrence (GRUCell + KV-memory write/read + MN_u /
#           MN_u2 / mlp1 projections) in one invocation, time loop unrolled.
# ----------------------------------------------------------------------------
def _recurrent_kernel(
    sxk_ref,                               # (T, B, emb+kb) gathered inputs
    w_ih_ref, b_gi_ref,                    # GRU input  (emb, 3H), (1, 3H)  [b_hh r/z folded in]
    w_hh_ref, b_hn_ref,                    # GRU hidden (H, 3H),  (1, H)    [n-gate hidden bias]
    w_ea_ref, b_ea_ref,                    # MN_ea lane-tiled (kb, nf*dims), (1, nf*dims)
    w_u_ref, b_u_ref,                      # MN_u  (H, dims), (1, dims)
    w_u2a_ref, w_u2b_ref, b_u2_ref,        # MN_u2 split: (H, H), (nf*dims, H) tiled, (1, H)
    w_m1_ref, b_m1_ref,                    # mlp1 (H, out_dim), (1, out_dim)
    r_ref, rflat_ref, seg_ref,             # r_matrix (nf, dims), (1, nf*dims), seg (nf*dims, nf)
    out_ref,                               # (B, out_dim)  -> y_sum / T
    *, emb, H, nf, dims,
):
    T, B = sxk_ref.shape[0], sxk_ref.shape[1]
    out_dim = out_ref.shape[1]
    f32 = jnp.float32

    # hoist every weight load out of the unrolled time loop
    w_ih, b_gi = w_ih_ref[...], b_gi_ref[...]
    w_hh, b_hn = w_hh_ref[...], b_hn_ref[...]
    w_ea, b_ea = w_ea_ref[...], b_ea_ref[...]
    w_u, b_u = w_u_ref[...], b_u_ref[...]
    w_u2a, w_u2b, b_u2 = w_u2a_ref[...], w_u2b_ref[...], b_u2_ref[...]
    w_m1, b_m1 = w_m1_ref[...], b_m1_ref[...]
    r_mat, r_flat, seg = r_ref[...], rflat_ref[...], seg_ref[...]

    dn = (((1,), (1,)), ((), ()))          # contract last dim of lhs with last dim of rhs

    def step(t, carry):
        h, MN, ysum = carry
        stp = sxk_ref[t]                   # (B, emb+kb)
        x, kbv = stp[:, :emb], stp[:, emb:]

        # ---- GRUCell (PyTorch gate order r, z, n); r/z hidden bias pre-summed ----
        gi = jnp.dot(x, w_ih, preferred_element_type=f32) + b_gi
        gh = jnp.dot(h, w_hh, preferred_element_type=f32)
        r = jax.nn.sigmoid(gi[:, :H] + gh[:, :H])
        z = jax.nn.sigmoid(gi[:, H:2 * H] + gh[:, H:2 * H])
        n = jnp.tanh(gi[:, 2 * H:] + r * (gh[:, 2 * H:] + b_hn))
        h = (1.0 - z) * n + z * h
        y = h                              # dropout_p_hidden: identity (eval mode)

        # ---- key-value memory write, lane-dense MN (B, nf*dims) ----
        ea3 = jnp.tanh(jnp.dot(kbv, w_ea, preferred_element_type=f32) + b_ea) + r_flat
        gate = jax.nn.sigmoid(
            jnp.dot(MN * ea3, seg, preferred_element_type=f32))            # (B, nf)
        gate_e = lax.dot_general(gate, seg, dn, preferred_element_type=f32)  # (B, nf*dims)
        MN = MN * (1.0 - gate_e) + ea3 * gate_e

        # ---- key-value memory read (softmax attention over factors) ----
        u = jnp.tanh(jnp.dot(y, w_u, preferred_element_type=f32) + b_u)    # (B, dims)
        logits = lax.dot_general(u, r_mat, dn, preferred_element_type=f32)  # (B, nf)
        logits = logits - jnp.max(logits, axis=1, keepdims=True)
        e = jnp.exp(logits)
        aw = e * pl.reciprocal(jnp.sum(e, axis=1, keepdims=True), approx=True)
        aw_e = lax.dot_general(aw, seg, dn, preferred_element_type=f32)    # (B, nf*dims)

        # ---- output projections: cat([y, AC]) @ w_u2 == y@w_u2a + AC@w_u2b,
        #      and AC@w_u2b == (MN * aw_e) @ tiled(w_u2b); AC never materialized ----
        ut = jnp.tanh(jnp.dot(y, w_u2a, preferred_element_type=f32)
                      + jnp.dot(MN * aw_e, w_u2b, preferred_element_type=f32)
                      + b_u2)
        yout = jnp.tanh(jnp.dot(ut, w_m1, preferred_element_type=f32) + b_m1)
        return h, MN, ysum + yout

    carry0 = (jnp.zeros((B, H), f32),
              jnp.zeros((B, nf * dims), f32),
              jnp.zeros((B, out_dim), f32))
    unroll = True if T <= 32 else 4
    _, _, ysum = lax.fori_loop(0, T, step, carry0, unroll=unroll)
    out_ref[...] = ysum * (1.0 / T)


# ----------------------------------------------------------------------------
# Kernel 2: Sy = tanh(mlp2(MergeE)), tiled over items (param-only, cacheable).
# ----------------------------------------------------------------------------
def _sy_kernel(me_ref, w2_ref, b2_ref, sy_ref):
    sy_ref[...] = jnp.tanh(
        jnp.dot(me_ref[...], w2_ref[...], preferred_element_type=jnp.float32)
        + b2_ref[...])


# ----------------------------------------------------------------------------
# Kernel 3: online logsumexp of scores over item tiles (sequential reduction).
# ----------------------------------------------------------------------------
def _lse_kernel(y_ref, sy_ref, lse_ref, m_scr, l_scr):
    j = pl.program_id(0)

    @pl.when(j == 0)
    def _():
        m_scr[...] = jnp.full(m_scr.shape, -jnp.inf, m_scr.dtype)
        l_scr[...] = jnp.zeros(l_scr.shape, l_scr.dtype)

    s = lax.dot_general(y_ref[...], sy_ref[...], (((1,), (1,)), ((), ())),
                        preferred_element_type=jnp.float32)     # (B, tile_n)
    m_prev = m_scr[...]
    m_new = jnp.maximum(m_prev, jnp.max(s, axis=1, keepdims=True))
    l_scr[...] = (l_scr[...] * jnp.exp(m_prev - m_new)
                  + jnp.sum(jnp.exp(s - m_new), axis=1, keepdims=True))
    m_scr[...] = m_new

    @pl.when(j == pl.num_programs(0) - 1)
    def _():
        lse_ref[...] = m_scr[...] + jnp.log(l_scr[...])


# ----------------------------------------------------------------------------
# Kernel 4: log-probs, item tiles in parallel (lane-dense output blocks).
# ----------------------------------------------------------------------------
def _logp_kernel(y_ref, sy_ref, lse_ref, out_ref):
    s = lax.dot_general(y_ref[...], sy_ref[...], (((1,), (1,)), ((), ())),
                        preferred_element_type=jnp.float32)
    out_ref[...] = s - lse_ref[...]


# ----------------------------------------------------------------------------
# Wrapper
# ----------------------------------------------------------------------------
def kvmn_forward_pallas(X, p, *, nf, item_tile=128):
    B, T = X.shape
    emb = p["E"].shape[1]
    kb = p["KBE"].shape[1]
    H = p["w_hh"].shape[0]
    dims = p["r_matrix"].shape[1]
    out_dim = p["w_m1"].shape[1]
    n_items = p["E"].shape[0]
    f32 = jnp.float32

    # --- glue (XLA): mask item 0, fuse both tables, single gather, time-major ---
    MergeE = jnp.concatenate([p["E"], p["KBE"]], axis=1).at[0].set(0.0)  # (n_items, emb+kb)
    Sxk = jnp.transpose(MergeE[X], (1, 0, 2)).astype(f32)                # (T, B, emb+kb)

    # --- weight prep: pure re-layout / algebra, no semantic change ---
    b_gi = p["b_ih"].at[:, :2 * H].add(p["b_hh"][:, :2 * H])   # fold r/z hidden bias
    b_hn = p["b_hh"][:, 2 * H:]                                # n-gate hidden bias
    w_ea_t = jnp.tile(p["w_ea"], (1, nf))                      # (kb, nf*dims)
    b_ea_t = jnp.tile(p["b_ea"], (1, nf))                      # (1, nf*dims)
    w_u2a = p["w_u2"][:H]                                      # (H, H)    acts on y
    w_u2b_t = jnp.tile(p["w_u2"][H:], (nf, 1))                 # (nf*dims, H) acts on MN*aw
    r_flat = p["r_matrix"].reshape(1, nf * dims)               # (1, nf*dims)
    seg = jnp.kron(jnp.eye(nf, dtype=f32), jnp.ones((dims, 1), f32))  # (nf*dims, nf)

    weights = [p["w_ih"], b_gi, p["w_hh"], b_hn,
               w_ea_t, b_ea_t, p["w_u"], p["b_u"],
               w_u2a, w_u2b_t, p["b_u2"],
               p["w_m1"], p["b_m1"],
               p["r_matrix"], r_flat, seg]

    # --- recurrent hot path: ONE kernel invocation, loop unrolled inside ---
    y_avg = pl.pallas_call(
        functools.partial(_recurrent_kernel, emb=emb, H=H, nf=nf, dims=dims),
        out_shape=jax.ShapeDtypeStruct((B, out_dim), f32),
        compiler_params=pltpu.CompilerParams(vmem_limit_bytes=32 * 1024 * 1024),
    )(Sxk, *weights)

    # --- item-score head, tiled over n_items (v7x VMEM-safe, TC-parallel) ---
    tile_n = min(item_tile, n_items)
    assert n_items % tile_n == 0, "n_items must be a multiple of item_tile"
    n_tiles = n_items // tile_n
    score_params = pltpu.CompilerParams(
        dimension_semantics=("parallel",),
        vmem_limit_bytes=64 * 1024 * 1024)

    # Sy depends only on parameters -> compute once per call (hoist/cache this
    # pallas_call across forward calls when params are static).
    Sy = pl.pallas_call(
        _sy_kernel,
        out_shape=jax.ShapeDtypeStruct((n_items, out_dim), f32),
        grid=(n_tiles,),
        in_specs=[pl.BlockSpec((tile_n, emb + kb), lambda j: (j, 0)),
                  pl.BlockSpec((emb + kb, out_dim), lambda j: (0, 0)),
                  pl.BlockSpec((1, out_dim), lambda j: (0, 0))],
        out_specs=pl.BlockSpec((tile_n, out_dim), lambda j: (j, 0)),
        compiler_params=score_params,
    )(MergeE, p["w_mlp2"], p["b_mlp2"])

    # pass 1: online logsumexp across item tiles (sequential accumulator)
    lse = pl.pallas_call(
        _lse_kernel,
        out_shape=jax.ShapeDtypeStruct((B, 1), f32),
        grid=(n_tiles,),
        in_specs=[pl.BlockSpec((B, out_dim), lambda j: (0, 0)),
                  pl.BlockSpec((tile_n, out_dim), lambda j: (j, 0))],
        out_specs=pl.BlockSpec((B, 1), lambda j: (0, 0)),
        scratch_shapes=[pltpu.VMEM((B, 1), f32), pltpu.VMEM((B, 1), f32)],
        compiler_params=pltpu.CompilerParams(
            dimension_semantics=("arbitrary",),
            vmem_limit_bytes=64 * 1024 * 1024),
    )(y_avg, Sy)

    # pass 2: recompute scores per tile and normalize (no raw-score HBM round
    # trip); item tiles are independent -> "parallel".
    logp = pl.pallas_call(
        _logp_kernel,
        out_shape=jax.ShapeDtypeStruct((B, n_items), f32),
        grid=(n_tiles,),
        in_specs=[pl.BlockSpec((B, out_dim), lambda j: (0, 0)),
                  pl.BlockSpec((tile_n, out_dim), lambda j: (j, 0)),
                  pl.BlockSpec((B, 1), lambda j: (0, 0))],
        out_specs=pl.BlockSpec((B, tile_n), lambda j: (0, j)),
        compiler_params=score_params,
        cost_estimate=pl.CostEstimate(
            flops=2 * B * n_items * out_dim,
            transcendentals=0,
            bytes_accessed=4 * (n_items * out_dim + B * n_items + B * out_dim + B)),
    )(y_avg, Sy, lse)
    return logp


# ----------------------------------------------------------------------------
# Pure-JAX reference (mirrors the PyTorch forward exactly)
# ----------------------------------------------------------------------------
def kvmn_forward_ref(X, p, *, nf):
    B, T = X.shape
    H = p["w_hh"].shape[0]
    dims = p["r_matrix"].shape[1]
    out_dim = p["w_m1"].shape[1]

    E_m = p["E"].at[0].set(0.0)
    KBE_m = p["KBE"].at[0].set(0.0)
    Sx = E_m[X]
    KBx = KBE_m[X]

    h = jnp.zeros((B, H), jnp.float32)
    MN = jnp.zeros((B, nf, dims), jnp.float32)
    ysum = jnp.zeros((B, out_dim), jnp.float32)
    for t in range(T):
        x = Sx[:, t]
        kbv = KBx[:, t]
        gi = x @ p["w_ih"] + p["b_ih"]
        gh = h @ p["w_hh"] + p["b_hh"]
        i_r, i_z, i_n = jnp.split(gi, 3, axis=1)
        h_r, h_z, h_n = jnp.split(gh, 3, axis=1)
        r = jax.nn.sigmoid(i_r + h_r)
        z = jax.nn.sigmoid(i_z + h_z)
        n = jnp.tanh(i_n + r * h_n)
        h = (1.0 - z) * n + z * h
        y = h
        EA = jnp.tanh(kbv @ p["w_ea"] + p["b_ea"])
        EA3 = EA[:, None, :] + p["r_matrix"][None]
        gate = jax.nn.sigmoid(jnp.sum(MN * EA3, -1, keepdims=True))
        MN = MN * (1.0 - gate) + EA3 * gate
        U = jnp.tanh(y @ p["w_u"] + p["b_u"])
        AW = jax.nn.softmax(U @ p["r_matrix"].T, axis=1)
        AC = jnp.sum(MN * AW[:, :, None], axis=1)
        Ut = jnp.tanh(jnp.concatenate([y, AC], -1) @ p["w_u2"] + p["b_u2"])
        ysum = ysum + jnp.tanh(Ut @ p["w_m1"] + p["b_m1"])
    y_avg = ysum / T
    MergeE = jnp.concatenate([E_m, KBE_m], axis=1)
    Sy = jnp.tanh(MergeE @ p["w_mlp2"] + p["b_mlp2"])
    return jax.nn.log_softmax(y_avg @ Sy.T, axis=1)


# ----------------------------------------------------------------------------
# Deterministic parameter initialization (synthetic, no checkpoint load)
# ----------------------------------------------------------------------------
def init_params(key, *, n_items, emb, kb, H, nf, out_dim):
    ks = jax.random.split(key, 16)
    s = 0.2
    nrm = lambda k, shape: (s * jax.random.normal(k, shape)).astype(jnp.float32)
    p = {
        "E": nrm(ks[0], (n_items, emb)),
        "KBE": nrm(ks[1], (n_items, kb)),
        "r_matrix": nrm(ks[2], (nf, kb)),           # MN_dims == KBembedding
        # GRUCell (weights stored already transposed: (in, 3H))
        "w_ih": nrm(ks[3], (emb, 3 * H)),
        "b_ih": nrm(ks[4], (1, 3 * H)),
        "w_hh": nrm(ks[5], (H, 3 * H)),
        "b_hh": nrm(ks[6], (1, 3 * H)),
        # MN_ea: Linear(kb -> kb)
        "w_ea": nrm(ks[7], (kb, kb)),
        "b_ea": nrm(ks[8], (1, kb)),
        # MN_u: Linear(H -> kb)
        "w_u": nrm(ks[9], (H, kb)),
        "b_u": nrm(ks[10], (1, kb)),
        # MN_u2: Linear(H + kb -> H)   (concat order [y, MN_AC])
        "w_u2": nrm(ks[11], (H + kb, H)),
        "b_u2": nrm(ks[12], (1, H)),
        # mlp1: Linear(H -> out_dim)
        "w_m1": nrm(ks[13], (H, out_dim)),
        "b_m1": nrm(ks[14], (1, out_dim)),
        # mlp2: Linear(emb + kb -> out_dim)
        "w_mlp2": nrm(jax.random.fold_in(key, 101), (emb + kb, out_dim)),
        "b_mlp2": nrm(jax.random.fold_in(key, 102), (1, out_dim)),
    }
    return p


if __name__ == "__main__":
    # Small shapes consistent with the module:
    #   layers=[32], embedding=16, KBembedding=16 (MN_dims = KBembedding),
    #   MN_nfactors=8 (nf*dims = 128 -> lane-dense MN), out_dim=32,
    #   n_items=256 (2 item tiles of 128), batch=8, sequence length T=8.
    B, T = 8, 8
    n_items, emb, kb, H, nf, out_dim = 256, 16, 16, 32, 8, 32

    key = jax.random.PRNGKey(0)
    k_params, k_x = jax.random.split(key)
    params = init_params(k_params, n_items=n_items, emb=emb, kb=kb,
                         H=H, nf=nf, out_dim=out_dim)
    X = jax.random.randint(k_x, (B, T), 1, n_items, dtype=jnp.int32)

    fwd = jax.jit(functools.partial(kvmn_forward_pallas, nf=nf, item_tile=128))
    out = jax.block_until_ready(fwd(X, params))

    ref = kvmn_forward_ref(X, params, nf=nf)
    assert out.shape == (B, n_items) and out.dtype == jnp.float32
    err = jnp.max(jnp.abs(out - ref))
    assert jnp.allclose(out, ref, atol=2e-3, rtol=2e-3), f"max abs err {err}"
    print("KERNEL_OK")
</pallas_src>

<mosaic_0001>
module attributes {stable_mosaic.version = 11 : i64} {
  func.func @_sy_kernel(%arg0: i32, %arg1: memref<128x32xf32, #tpu.memory_space<vmem>>, %arg2: memref<32x32xf32, #tpu.memory_space<vmem>>, %arg3: memref<1x32xf32, #tpu.memory_space<vmem>>, %arg4: memref<128x32xf32, #tpu.memory_space<vmem>>) attributes {dimension_semantics = [#tpu.dimension_semantics<parallel>], iteration_bounds = array<i64: 2>, scalar_prefetch = 0 : i64, scratch_operands = 0 : i64, tpu.core_type = #tpu.core_type<tc>, window_params = [{transform_indices = @transform_0, window_bounds = array<i64: 128, 32>}, {pipeline_mode = #tpu.pipeline_mode<synchronous>, transform_indices = @transform_1, window_bounds = array<i64: 32, 32>}, {pipeline_mode = #tpu.pipeline_mode<synchronous>, transform_indices = @transform_2, window_bounds = array<i64: 1, 32>}, {transform_indices = @transform_3, window_bounds = array<i64: 128, 32>}]} {
    %c0 = arith.constant 0 : index
    %c0_0 = arith.constant 0 : index
    %0 = vector.load %arg1[%c0, %c0_0] : memref<128x32xf32, #tpu.memory_space<vmem>>, vector<128x32xf32>
    %c0_1 = arith.constant 0 : index
    %c0_2 = arith.constant 0 : index
    %1 = vector.load %arg2[%c0_1, %c0_2] : memref<32x32xf32, #tpu.memory_space<vmem>>, vector<32x32xf32>
    %cst = arith.constant dense<0.000000e+00> : vector<128x32xf32>
    %2 = tpu.matmul %0, %1, %cst {dimension_numbers = #tpu.dot_dimension_numbers<[1], [0], [0], [1], [0, 0, 1, 1], [], []>} : vector<128x32xf32>, vector<32x32xf32>, vector<128x32xf32> -> vector<128x32xf32>
    %c0_3 = arith.constant 0 : index
    %c0_4 = arith.constant 0 : index
    %3 = vector.load %arg3[%c0_3, %c0_4] : memref<1x32xf32, #tpu.memory_space<vmem>>, vector<1x32xf32>
    %4 = vector.broadcast %3 : vector<1x32xf32> to vector<128x32xf32>
    %5 = arith.addf %2, %4 : vector<128x32xf32>
    %6 = math.tanh %5 : vector<128x32xf32>
    %c0_5 = arith.constant 0 : index
    %c0_6 = arith.constant 0 : index
    %7 = vector.load %arg4[%c0_5, %c0_6] : memref<128x32xf32, #tpu.memory_space<vmem>>, vector<128x32xf32>
    tpu.vector_store %arg4[%c0_5, %c0_6], %6 {strides = array<i32>} : memref<128x32xf32, #tpu.memory_space<vmem>>, vector<128x32xf32>,
    return
  }
  func.func @transform_0(%arg0: i32) -> (i32, i32) {
    %c0_i32 = arith.constant 0 : i32
    %c0_i32_0 = arith.constant 0 : i32
    return %arg0, %c0_i32 : i32, i32
  }
  func.func @transform_1(%arg0: i32) -> (i32, i32) {
    %c0_i32 = arith.constant 0 : i32
    %c0_i32_0 = arith.constant 0 : i32
    %c0_i32_1 = arith.constant 0 : i32
    return %c0_i32, %c0_i32_0 : i32, i32
  }
  func.func @transform_2(%arg0: i32) -> (i32, i32) {
    %c0_i32 = arith.constant 0 : i32
    %c0_i32_0 = arith.constant 0 : i32
    %c0_i32_1 = arith.constant 0 : i32
    return %c0_i32, %c0_i32_0 : i32, i32
  }
  func.func @transform_3(%arg0: i32) -> (i32, i32) {
    %c0_i32 = arith.constant 0 : i32
    %c0_i32_0 = arith.constant 0 : i32
    return %arg0, %c0_i32 : i32, i32
  }
}

module attributes {stable_mosaic.version = 11 : i64} {
  func.func @_lse_kernel(%arg0: i32, %arg1: memref<8x32xf32, #tpu.memory_space<vmem>>, %arg2: memref<128x32xf32, #tpu.memory_space<vmem>>, %arg3: memref<8x1xf32, #tpu.memory_space<vmem>>, %arg4: memref<8x1xf32, #tpu.memory_space<vmem>>, %arg5: memref<8x1xf32, #tpu.memory_space<vmem>>) attributes {dimension_semantics = [#tpu.dimension_semantics<arbitrary>], iteration_bounds = array<i64: 2>, scalar_prefetch = 0 : i64, scratch_operands = 2 : i64, tpu.core_type = #tpu.core_type<tc>, window_params = [{pipeline_mode = #tpu.pipeline_mode<synchronous>, transform_indices = @transform_0, window_bounds = array<i64: 8, 32>}, {transform_indices = @transform_1, window_bounds = array<i64: 128, 32>}, {pipeline_mode = #tpu.pipeline_mode<synchronous>, transform_indices = @transform_2, window_bounds = array<i64: 8, 1>}]} {
    %c0_i32 = arith.constant 0 : i32
    %0 = arith.cmpi eq, %arg0, %c0_i32 : i32
    %1 = arith.extui %0 : i1 to i32
    %c0_i32_0 = arith.constant 0 : i32
    %2 = arith.cmpi ne, %1, %c0_i32_0 : i32
    scf.if %2 {
      %cst_15 = arith.constant 0xFF800000 : f32
      %25 = vector.broadcast %cst_15 : f32 to vector<8x1xf32>
      %c0_16 = arith.constant 0 : index
      %c0_17 = arith.constant 0 : index
      %26 = vector.load %arg4[%c0_16, %c0_17] : memref<8x1xf32, #tpu.memory_space<vmem>>, vector<8x1xf32>
      tpu.vector_store %arg4[%c0_16, %c0_17], %25 {strides = array<i32>} : memref<8x1xf32, #tpu.memory_space<vmem>>, vector<8x1xf32>,
      %cst_18 = arith.constant 0.000000e+00 : f32
      %27 = vector.broadcast %cst_18 : f32 to vector<8x1xf32>
      %c0_19 = arith.constant 0 : index
      %c0_20 = arith.constant 0 : index
      %28 = vector.load %arg5[%c0_19, %c0_20] : memref<8x1xf32, #tpu.memory_space<vmem>>, vector<8x1xf32>
      tpu.vector_store %arg5[%c0_19, %c0_20], %27 {strides = array<i32>} : memref<8x1xf32, #tpu.memory_space<vmem>>, vector<8x1xf32>,
    } else {
    }
    %c0 = arith.constant 0 : index
    %c0_1 = arith.constant 0 : index
    %3 = vector.load %arg1[%c0, %c0_1] : memref<8x32xf32, #tpu.memory_space<vmem>>, vector<8x32xf32>
    %c0_2 = arith.constant 0 : index
    %c0_3 = arith.constant 0 : index
    %4 = vector.load %arg2[%c0_2, %c0_3] : memref<128x32xf32, #tpu.memory_space<vmem>>, vector<128x32xf32>
    %cst = arith.constant dense<0.000000e+00> : vector<8x128xf32>
    %5 = tpu.matmul %3, %4, %cst {dimension_numbers = #tpu.dot_dimension_numbers<[1], [1], [0], [0], [0, 0, 1, 0], [], []>} : vector<8x32xf32>, vector<128x32xf32>, vector<8x128xf32> -> vector<8x128xf32>
    %c0_4 = arith.constant 0 : index
    %c0_5 = arith.constant 0 : index
    %6 = vector.load %arg4[%c0_4, %c0_5] : memref<8x1xf32, #tpu.memory_space<vmem>>, vector<8x1xf32>
    %cst_6 = arith.constant dense<0xFF800000> : vector<8xf32>
    %7 = vector.multi_reduction <maximumf>, %5, %cst_6 [1] : vector<8x128xf32> to vector<8xf32>
    %8 = vector.shape_cast %7 : vector<8xf32> to vector<8x1xf32>
    %9 = arith.maximumf %6, %8 : vector<8x1xf32>
    %c0_7 = arith.constant 0 : index
    %c0_8 = arith.constant 0 : index
    %10 = vector.load %arg5[%c0_7, %c0_8] : memref<8x1xf32, #tpu.memory_space<vmem>>, vector<8x1xf32>
    %11 = arith.subf %6, %9 : vector<8x1xf32>
    %12 = math.exp %11 : vector<8x1xf32>
    %13 = arith.mulf %10, %12 : vector<8x1xf32>
    %14 = vector.broadcast %9 : vector<8x1xf32> to vector<8x128xf32>
    %15 = arith.subf %5, %14 : vector<8x128xf32>
    %16 = math.exp %15 : vector<8x128xf32>
    %cst_9 = arith.constant dense<0.000000e+00> : vector<8xf32>
    %17 = vector.multi_reduction <add>, %16, %cst_9 [1] : vector<8x128xf32> to vector<8xf32>
    %18 = vector.shape_cast %17 : vector<8xf32> to vector<8x1xf32>
    %19 = arith.addf %13, %18 : vector<8x1xf32>
    %c0_10 = arith.constant 0 : index
    %c0_11 = arith.constant 0 : index
    %20 = vector.load %arg5[%c0_10, %c0_11] : memref<8x1xf32, #tpu.memory_space<vmem>>, vector<8x1xf32>
    tpu.vector_store %arg5[%c0_10, %c0_11], %19 {strides = array<i32>} : memref<8x1xf32, #tpu.memory_space<vmem>>, vector<8x1xf32>,
    %c0_12 = arith.constant 0 : index
    %c0_13 = arith.constant 0 : index
    %21 = vector.load %arg4[%c0_12, %c0_13] : memref<8x1xf32, #tpu.memory_space<vmem>>, vector<8x1xf32>
    tpu.vector_store %arg4[%c0_12, %c0_13], %9 {strides = array<i32>} : memref<8x1xf32, #tpu.memory_space<vmem>>, vector<8x1xf32>,
    %c1_i32 = arith.constant 1 : i32
    %22 = arith.cmpi eq, %arg0, %c1_i32 : i32
    %23 = arith.extui %22 : i1 to i32
    %c0_i32_14 = arith.constant 0 : i32
    %24 = arith.cmpi ne, %23, %c0_i32_14 : i32
    scf.if %24 {
      %c0_15 = arith.constant 0 : index
      %c0_16 = arith.constant 0 : index
      %25 = vector.load %arg4[%c0_15, %c0_16] : memref<8x1xf32, #tpu.memory_space<vmem>>, vector<8x1xf32>
      %c0_17 = arith.constant 0 : index
      %c0_18 = arith.constant 0 : index
      %26 = vector.load %arg5[%c0_17, %c0_18] : memref<8x1xf32, #tpu.memory_space<vmem>>, vector<8x1xf32>
      %27 = math.log %26 : vector<8x1xf32>
      %28 = arith.addf %25, %27 : vector<8x1xf32>
      %c0_19 = arith.constant 0 : index
      %c0_20 = arith.constant 0 : index
      %29 = vector.load %arg3[%c0_19, %c0_20] : memref<8x1xf32, #tpu.memory_space<vmem>>, vector<8x1xf32>
      tpu.vector_store %arg3[%c0_19, %c0_20], %28 {strides = array<i32>} : memref<8x1xf32, #tpu.memory_space<vmem>>, vector<8x1xf32>,
    } else {
    }
    return
  }
  func.func @transform_0(%arg0: i32) -> (i32, i32) {
    %c0_i32 = arith.constant 0 : i32
    %c0_i32_0 = arith.constant 0 : i32
    %c0_i32_1 = arith.constant 0 : i32
    return %c0_i32, %c0_i32_0 : i32, i32
  }
  func.func @transform_1(%arg0: i32) -> (i32, i32) {
    %c0_i32 = arith.constant 0 : i32
    %c0_i32_0 = arith.constant 0 : i32
    return %arg0, %c0_i32 : i32, i32
  }
  func.func @transform_2(%arg0: i32) -> (i32, i32) {
    %c0_i32 = arith.constant 0 : i32
    %c0_i32_0 = arith.constant 0 : i32
    %c0_i32_1 = arith.constant 0 : i32
    return %c0_i32, %c0_i32_0 : i32, i32
  }
}

module attributes {stable_mosaic.version = 11 : i64} {
  func.func @_recurrent_kernel(%arg0: memref<8x8x32xf32, #tpu.memory_space<vmem>>, %arg1: memref<16x96xf32, #tpu.memory_space<vmem>>, %arg2: memref<1x96xf32, #tpu.memory_space<vmem>>, %arg3: memref<32x96xf32, #tpu.memory_space<vmem>>, %arg4: memref<1x32xf32, #tpu.memory_space<vmem>>, %arg5: memref<16x128xf32, #tpu.memory_space<vmem>>, %arg6: memref<1x128xf32, #tpu.memory_space<vmem>>, %arg7: memref<32x16xf32, #tpu.memory_space<vmem>>, %arg8: memref<1x16xf32, #tpu.memory_space<vmem>>, %arg9: memref<32x32xf32, #tpu.memory_space<vmem>>, %arg10: memref<128x32xf32, #tpu.memory_space<vmem>>, %arg11: memref<1x32xf32, #tpu.memory_space<vmem>>, %arg12: memref<32x32xf32, #tpu.memory_space<vmem>>, %arg13: memref<1x32xf32, #tpu.memory_space<vmem>>, %arg14: memref<8x16xf32, #tpu.memory_space<vmem>>, %arg15: memref<1x128xf32, #tpu.memory_space<vmem>>, %arg16: memref<128x8xf32, #tpu.memory_space<vmem>>, %arg17: memref<8x32xf32, #tpu.memory_space<vmem>>) attributes {dimension_semantics = [], scalar_prefetch = 0 : i64, scratch_operands = 0 : i64, tpu.core_type = #tpu.core_type<tc>} {
    %c0 = arith.constant 0 : index
    %c0_0 = arith.constant 0 : index
    %0 = vector.load %arg1[%c0, %c0_0] : memref<16x96xf32, #tpu.memory_space<vmem>>, vector<16x96xf32>
    %c0_1 = arith.constant 0 : index
    %c0_2 = arith.constant 0 : index
    %1 = vector.load %arg2[%c0_1, %c0_2] : memref<1x96xf32, #tpu.memory_space<vmem>>, vector<1x96xf32>
    %c0_3 = arith.constant 0 : index
    %c0_4 = arith.constant 0 : index
    %2 = vector.load %arg3[%c0_3, %c0_4] : memref<32x96xf32, #tpu.memory_space<vmem>>, vector<32x96xf32>
    %c0_5 = arith.constant 0 : index
    %c0_6 = arith.constant 0 : index
    %3 = vector.load %arg4[%c0_5, %c0_6] : memref<1x32xf32, #tpu.memory_space<vmem>>, vector<1x32xf32>
    %c0_7 = arith.constant 0 : index
    %c0_8 = arith.constant 0 : index
    %4 = vector.load %arg5[%c0_7, %c0_8] : memref<16x128xf32, #tpu.memory_space<vmem>>, vector<16x128xf32>
    %c0_9 = arith.constant 0 : index
    %c0_10 = arith.constant 0 : index
    %5 = vector.load %arg6[%c0_9, %c0_10] : memref<1x128xf32, #tpu.memory_space<vmem>>, vector<1x128xf32>
    %c0_11 = arith.constant 0 : index
    %c0_12 = arith.constant 0 : index
    %6 = vector.load %arg7[%c0_11, %c0_12] : memref<32x16xf32, #tpu.memory_space<vmem>>, vector<32x16xf32>
    %c0_13 = arith.constant 0 : index
    %c0_14 = arith.constant 0 : index
    %7 = vector.load %arg8[%c0_13, %c0_14] : memref<1x16xf32, #tpu.memory_space<vmem>>, vector<1x16xf32>
    %c0_15 = arith.constant 0 : index
    %c0_16 = arith.constant 0 : index
    %8 = vector.load %arg9[%c0_15, %c0_16] : memref<32x32xf32, #tpu.memory_space<vmem>>, vector<32x32xf32>
    %c0_17 = arith.constant 0 : index
    %c0_18 = arith.constant 0 : index
    %9 = vector.load %arg10[%c0_17, %c0_18] : memref<128x32xf32, #tpu.memory_space<vmem>>, vector<128x32xf32>
    %c0_19 = arith.constant 0 : index
    %c0_20 = arith.constant 0 : index
    %10 = vector.load %arg11[%c0_19, %c0_20] : memref<1x32xf32, #tpu.memory_space<vmem>>, vector<1x32xf32>
    %c0_21 = arith.constant 0 : index
    %c0_22 = arith.constant 0 : index
    %11 = vector.load %arg12[%c0_21, %c0_22] : memref<32x32xf32, #tpu.memory_space<vmem>>, vector<32x32xf32>
    %c0_23 = arith.constant 0 : index
    %c0_24 = arith.constant 0 : index
    %12 = vector.load %arg13[%c0_23, %c0_24] : memref<1x32xf32, #tpu.memory_space<vmem>>, vector<1x32xf32>
    %c0_25 = arith.constant 0 : index
    %c0_26 = arith.constant 0 : index
    %13 = vector.load %arg14[%c0_25, %c0_26] : memref<8x16xf32, #tpu.memory_space<vmem>>, vector<8x16xf32>
    %c0_27 = arith.constant 0 : index
    %c0_28 = arith.constant 0 : index
    %14 = vector.load %arg15[%c0_27, %c0_28] : memref<1x128xf32, #tpu.memory_space<vmem>>, vector<1x128xf32>
    %c0_29 = arith.constant 0 : index
    %c0_30 = arith.constant 0 : index
    %15 = vector.load %arg16[%c0_29, %c0_30] : memref<128x8xf32, #tpu.memory_space<vmem>>, vector<128x8xf32>
    %cst = arith.constant 0.000000e+00 : f32
    %16 = vector.broadcast %cst : f32 to vector<8x32xf32>
    %cst_31 = arith.constant 0.000000e+00 : f32
    %17 = vector.broadcast %cst_31 : f32 to vector<8x128xf32>
    %cst_32 = arith.constant 0.000000e+00 : f32
    %18 = vector.broadcast %cst_32 : f32 to vector<8x32xf32>
    %c0_i32 = arith.constant 0 : i32
    %19 = arith.index_cast %c0_i32 : i32 to index
    %c0_33 = arith.constant 0 : index
    %c0_34 = arith.constant 0 : index
    %20 = vector.load %arg0[%19, %c0_33, %c0_34] : memref<8x8x32xf32, #tpu.memory_space<vmem>>, vector<1x8x32xf32>
    %21 = vector.shape_cast %20 : vector<1x8x32xf32> to vector<8x32xf32>
    %22 = vector.extract_strided_slice %21 {offsets = [0, 0], sizes = [8, 16], strides = [1, 1]} : vector<8x32xf32> to vector<8x16xf32>
    %23 = vector.extract_strided_slice %21 {offsets = [0, 16], sizes = [8, 16], strides = [1, 1]} : vector<8x32xf32> to vector<8x16xf32>
    %cst_35 = arith.constant dense<0.000000e+00> : vector<8x96xf32>
    %24 = tpu.matmul %22, %0, %cst_35 {dimension_numbers = #tpu.dot_dimension_numbers<[1], [0], [0], [1], [0, 0, 1, 1], [], []>} : vector<8x16xf32>, vector<16x96xf32>, vector<8x96xf32> -> vector<8x96xf32>
    %25 = vector.broadcast %1 : vector<1x96xf32> to vector<8x96xf32>
    %26 = arith.addf %24, %25 : vector<8x96xf32>
    %cst_36 = arith.constant dense<0.000000e+00> : vector<8x96xf32>
    %27 = tpu.matmul %16, %2, %cst_36 {dimension_numbers = #tpu.dot_dimension_numbers<[1], [0], [0], [1], [0, 0, 1, 1], [], []>} : vector<8x32xf32>, vector<32x96xf32>, vector<8x96xf32> -> vector<8x96xf32>
    %28 = vector.extract_strided_slice %26 {offsets = [0, 0], sizes = [8, 32], strides = [1, 1]} : vector<8x96xf32> to vector<8x32xf32>
    %29 = vector.extract_strided_slice %27 {offsets = [0, 0], sizes = [8, 32], strides = [1, 1]} : vector<8x96xf32> to vector<8x32xf32>
    %30 = arith.addf %28, %29 : vector<8x32xf32>
    %31 = arith.negf %30 : vector<8x32xf32>
    %32 = math.exp %31 : vector<8x32xf32>
    %cst_37 = arith.constant 1.000000e+00 : f32
    %33 = vector.broadcast %cst_37 : f32 to vector<8x32xf32>
    %34 = arith.addf %33, %32 : vector<8x32xf32>
    %35 = arith.divf %33, %34 : vector<8x32xf32>
    %36 = vector.extract_strided_slice %26 {offsets = [0, 32], sizes = [8, 32], strides = [1, 1]} : vector<8x96xf32> to vector<8x32xf32>
    %37 = vector.extract_strided_slice %27 {offsets = [0, 32], sizes = [8, 32], strides = [1, 1]} : vector<8x96xf32> to vector<8x32xf32>
    %38 = arith.addf %36, %37 : vector<8x32xf32>
    %39 = arith.negf %38 : vector<8x32xf32>
    %40 = math.exp %39 : vector<8x32xf32>
    %cst_38 = arith.constant 1.000000e+00 : f32
    %41 = vector.broadcast %cst_38 : f32 to vector<8x32xf32>
    %42 = arith.addf %41, %40 : vector<8x32xf32>
    %43 = arith.divf %41, %42 : vector<8x32xf32>
    %44 = vector.extract_strided_slice %26 {offsets = [0, 64], sizes = [8, 32], strides = [1, 1]} : vector<8x96xf32> to vector<8x32xf32>
    %45 = vector.extract_strided_slice %27 {offsets = [0, 64], sizes = [8, 32], strides = [1, 1]} : vector<8x96xf32> to vector<8x32xf32>
    %46 = vector.broadcast %3 : vector<1x32xf32> to vector<8x32xf32>
    %47 = arith.addf %45, %46 : vector<8x32xf32>
    %48 = arith.mulf %35, %47 : vector<8x32xf32>
    %49 = arith.addf %44, %48 : vector<8x32xf32>
    %50 = math.tanh %49 : vector<8x32xf32>
    %cst_39 = arith.constant 1.000000e+00 : f32
    %51 = vector.broadcast %cst_39 : f32 to vector<8x32xf32>
    %52 = arith.subf %51, %43 : vector<8x32xf32>
    %53 = arith.mulf %52, %50 : vector<8x32xf32>
    %54 = arith.mulf %43, %16 : vector<8x32xf32>
    %55 = arith.addf %53, %54 : vector<8x32xf32>
    %cst_40 = arith.constant dense<0.000000e+00> : vector<8x128xf32>
    %56 = tpu.matmul %23, %4, %cst_40 {dimension_numbers = #tpu.dot_dimension_numbers<[1], [0], [0], [1], [0, 0, 1, 1], [], []>} : vector<8x16xf32>, vector<16x128xf32>, vector<8x128xf32> -> vector<8x128xf32>
    %57 = vector.broadcast %5 : vector<1x128xf32> to vector<8x128xf32>
    %58 = arith.addf %56, %57 : vector<8x128xf32>
    %59 = math.tanh %58 : vector<8x128xf32>
    %60 = vector.broadcast %14 : vector<1x128xf32> to vector<8x128xf32>
    %61 = arith.addf %59, %60 : vector<8x128xf32>
    %62 = arith.mulf %17, %61 : vector<8x128xf32>
    %cst_41 = arith.constant dense<0.000000e+00> : vector<8x8xf32>
    %63 = tpu.matmul %62, %15, %cst_41 {dimension_numbers = #tpu.dot_dimension_numbers<[1], [0], [0], [1], [0, 0, 1, 1], [], []>} : vector<8x128xf32>, vector<128x8xf32>, vector<8x8xf32> -> vector<8x8xf32>
    %64 = arith.negf %63 : vector<8x8xf32>
    %65 = math.exp %64 : vector<8x8xf32>
    %cst_42 = arith.constant 1.000000e+00 : f32
    %66 = vector.broadcast %cst_42 : f32 to vector<8x8xf32>
    %67 = arith.addf %66, %65 : vector<8x8xf32>
    %68 = arith.divf %66, %67 : vector<8x8xf32>
    %cst_43 = arith.constant dense<0.000000e+00> : vector<8x128xf32>
    %69 = tpu.matmul %68, %15, %cst_43 {dimension_numbers = #tpu.dot_dimension_numbers<[1], [1], [0], [0], [0, 0, 1, 0], [], []>} : vector<8x8xf32>, vector<128x8xf32>, vector<8x128xf32> -> vector<8x128xf32>
    %cst_44 = arith.constant 1.000000e+00 : f32
    %70 = vector.broadcast %cst_44 : f32 to vector<8x128xf32>
    %71 = arith.subf %70, %69 : vector<8x128xf32>
    %72 = arith.mulf %17, %71 : vector<8x128xf32>
    %73 = arith.mulf %61, %69 : vector<8x128xf32>
    %74 = arith.addf %72, %73 : vector<8x128xf32>
    %cst_45 = arith.constant dense<0.000000e+00> : vector<8x16xf32>
    %75 = tpu.matmul %55, %6, %cst_45 {dimension_numbers = #tpu.dot_dimension_numbers<[1], [0], [0], [1], [0, 0, 1, 1], [], []>} : vector<8x32xf32>, vector<32x16xf32>, vector<8x16xf32> -> vector<8x16xf32>
    %76 = vector.broadcast %7 : vector<1x16xf32> to vector<8x16xf32>
    %77 = arith.addf %75, %76 : vector<8x16xf32>
    %78 = math.tanh %77 : vector<8x16xf32>
    %cst_46 = arith.constant dense<0.000000e+00> : vector<8x8xf32>
    %79 = tpu.matmul %78, %13, %cst_46 {dimension_numbers = #tpu.dot_dimension_numbers<[1], [1], [0], [0], [0, 0, 1, 0], [], []>} : vector<8x16xf32>, vector<8x16xf32>, vector<8x8xf32> -> vector<8x8xf32>
    %cst_47 = arith.constant dense<0xFF800000> : vector<8xf32>
    %80 = vector.multi_reduction <maximumf>, %79, %cst_47 [1] : vector<8x8xf32> to vector<8xf32>
    %81 = vector.shape_cast %80 : vector<8xf32> to vector<8x1xf32>
    %82 = vector.broadcast %81 : vector<8x1xf32> to vector<8x8xf32>
    %83 = arith.subf %79, %82 : vector<8x8xf32>
    %84 = math.exp %83 : vector<8x8xf32>
    %cst_48 = arith.constant dense<0.000000e+00> : vector<8xf32>
    %85 = vector.multi_reduction <add>, %84, %cst_48 [1] : vector<8x8xf32> to vector<8xf32>
    %86 = vector.shape_cast %85 : vector<8xf32> to vector<8x1xf32>
    %87 = tpu.reciprocal %86 {approx = true} : vector<8x1xf32> -> vector<8x1xf32>
    %88 = vector.broadcast %87 : vector<8x1xf32> to vector<8x8xf32>
    %89 = arith.mulf %84, %88 : vector<8x8xf32>
    %cst_49 = arith.constant dense<0.000000e+00> : vector<8x128xf32>
    %90 = tpu.matmul %89, %15, %cst_49 {dimension_numbers = #tpu.dot_dimension_numbers<[1], [1], [0], [0], [0, 0, 1, 0], [], []>} : vector<8x8xf32>, vector<128x8xf32>, vector<8x128xf32> -> vector<8x128xf32>
    %cst_50 = arith.constant dense<0.000000e+00> : vector<8x32xf32>
    %91 = tpu.matmul %55, %8, %cst_50 {dimension_numbers = #tpu.dot_dimension_numbers<[1], [0], [0], [1], [0, 0, 1, 1], [], []>} : vector<8x32xf32>, vector<32x32xf32>, vector<8x32xf32> -> vector<8x32xf32>
    %92 = arith.mulf %74, %90 : vector<8x128xf32>
    %cst_51 = arith.constant dense<0.000000e+00> : vector<8x32xf32>
    %93 = tpu.matmul %92, %9, %cst_51 {dimension_numbers = #tpu.dot_dimension_numbers<[1], [0], [0], [1], [0, 0, 1, 1], [], []>} : vector<8x128xf32>, vector<128x32xf32>, vector<8x32xf32> -> vector<8x32xf32>
    %94 = arith.addf %91, %93 : vector<8x32xf32>
    %95 = vector.broadcast %10 : vector<1x32xf32> to vector<8x32xf32>
    %96 = arith.addf %94, %95 : vector<8x32xf32>
    %97 = math.tanh %96 : vector<8x32xf32>
    %cst_52 = arith.constant dense<0.000000e+00> : vector<8x32xf32>
    %98 = tpu.matmul %97, %11, %cst_52 {dimension_numbers = #tpu.dot_dimension_numbers<[1], [0], [0], [1], [0, 0, 1, 1], [], []>} : vector<8x32xf32>, vector<32x32xf32>, vector<8x32xf32> -> vector<8x32xf32>
    %99 = vector.broadcast %12 : vector<1x32xf32> to vector<8x32xf32>
    %100 = arith.addf %98, %99 : vector<8x32xf32>
    %101 = math.tanh %100 : vector<8x32xf32>
    %102 = arith.addf %18, %101 : vector<8x32xf32>
    %c1_i32 = arith.constant 1 : i32
    %103 = arith.index_cast %c1_i32 : i32 to index
    %c0_53 = arith.constant 0 : index
    %c0_54 = arith.constant 0 : index
    %104 = vector.load %arg0[%103, %c0_53, %c0_54] : memref<8x8x32xf32, #tpu.memory_space<vmem>>, vector<1x8x32xf32>
    %105 = vector.shape_cast %104 : vector<1x8x32xf32> to vector<8x32xf32>
    %106 = vector.extract_strided_slice %105 {offsets = [0, 0], sizes = [8, 16], strides = [1, 1]} : vector<8x32xf32> to vector<8x16xf32>
    %107 = vector.extract_strided_slice %105 {offsets = [0, 16], sizes = [8, 16], strides = [1, 1]} : vector<8x32xf32> to vector<8x16xf32>
    %cst_55 = arith.constant dense<0.000000e+00> : vector<8x96xf32>
    %108 = tpu.matmul %106, %0, %cst_55 {dimension_numbers = #tpu.dot_dimension_numbers<[1], [0], [0], [1], [0, 0, 1, 1], [], []>} : vector<8x16xf32>, vector<16x96xf32>, vector<8x96xf32> -> vector<8x96xf32>
    %109 = vector.broadcast %1 : vector<1x96xf32> to vector<8x96xf32>
    %110 = arith.addf %108, %109 : vector<8x96xf32>
    %cst_56 = arith.constant dense<0.000000e+00> : vector<8x96xf32>
    %111 = tpu.matmul %55, %2, %cst_56 {dimension_numbers = #tpu.dot_dimension_numbers<[1], [0], [0], [1], [0, 0, 1, 1], [], []>} : vector<8x32xf32>, vector<32x96xf32>, vector<8x96xf32> -> vector<8x96xf32>
    %112 = vector.extract_strided_slice %110 {offsets = [0, 0], sizes = [8, 32], strides = [1, 1]} : vector<8x96xf32> to vector<8x32xf32>
    %113 = vector.extract_strided_slice %111 {offsets = [0, 0], sizes = [8, 32], strides = [1, 1]} : vector<8x96xf32> to vector<8x32xf32>
    %114 = arith.addf %112, %113 : vector<8x32xf32>
    %115 = arith.negf %114 : vector<8x32xf32>
    %116 = math.exp %115 : vector<8x32xf32>
    %cst_57 = arith.constant 1.000000e+00 : f32
    %117 = vector.broadcast %cst_57 : f32 to vector<8x32xf32>
    %118 = arith.addf %117, %116 : vector<8x32xf32>
    %119 = arith.divf %117, %118 : vector<8x32xf32>
    %120 = vector.extract_strided_slice %110 {offsets = [0, 32], sizes = [8, 32], strides = [1, 1]} : vector<8x96xf32> to vector<8x32xf32>
    %121 = vector.extract_strided_slice %111 {offsets = [0, 32], sizes = [8, 32], strides = [1, 1]} : vector<8x96xf32> to vector<8x32xf32>
    %122 = arith.addf %120, %121 : vector<8x32xf32>
    %123 = arith.negf %122 : vector<8x32xf32>
    %124 = math.exp %123 : vector<8x32xf32>
    %cst_58 = arith.constant 1.000000e+00 : f32
    %125 = vector.broadcast %cst_58 : f32 to vector<8x32xf32>
    %126 = arith.addf %125, %124 : vector<8x32xf32>
    %127 = arith.divf %125, %126 : vector<8x32xf32>
    %128 = vector.extract_strided_slice %110 {offsets = [0, 64], sizes = [8, 32], strides = [1, 1]} : vector<8x96xf32> to vector<8x32xf32>
    %129 = vector.extract_strided_slice %111 {offsets = [0, 64], sizes = [8, 32], strides = [1, 1]} : vector<8x96xf32> to vector<8x32xf32>
    %130 = vector.broadcast %3 : vector<1x32xf32> to vector<8x32xf32>
    %131 = arith.addf %129, %130 : vector<8x32xf32>
    %132 = arith.mulf %119, %131 : vector<8x32xf32>
    %133 = arith.addf %128, %132 : vector<8x32xf32>
    %134 = math.tanh %133 : vector<8x32xf32>
    %cst_59 = arith.constant 1.000000e+00 : f32
    %135 = vector.broadcast %cst_59 : f32 to vector<8x32xf32>
    %136 = arith.subf %135, %127 : vector<8x32xf32>
    %137 = arith.mulf %136, %134 : vector<8x32xf32>
    %138 = arith.mulf %127, %55 : vector<8x32xf32>
    %139 = arith.addf %137, %138 : vector<8x32xf32>
    %cst_60 = arith.constant dense<0.000000e+00> : vector<8x128xf32>
    %140 = tpu.matmul %107, %4, %cst_60 {dimension_numbers = #tpu.dot_dimension_numbers<[1], [0], [0], [1], [0, 0, 1, 1], [], []>} : vector<8x16xf32>, vector<16x128xf32>, vector<8x128xf32> -> vector<8x128xf32>
    %141 = vector.broadcast %5 : vector<1x128xf32> to vector<8x128xf32>
    %142 = arith.addf %140, %141 : vector<8x128xf32>
    %143 = math.tanh %142 : vector<8x128xf32>
    %144 = vector.broadcast %14 : vector<1x128xf32> to vector<8x128xf32>
    %145 = arith.addf %143, %144 : vector<8x128xf32>
    %146 = arith.mulf %74, %145 : vector<8x128xf32>
    %cst_61 = arith.constant dense<0.000000e+00> : vector<8x8xf32>
    %147 = tpu.matmul %146, %15, %cst_61 {dimension_numbers = #tpu.dot_dimension_numbers<[1], [0], [0], [1], [0, 0, 1, 1], [], []>} : vector<8x128xf32>, vector<128x8xf32>, vector<8x8xf32> -> vector<8x8xf32>
    %148 = arith.negf %147 : vector<8x8xf32>
    %149 = math.exp %148 : vector<8x8xf32>
    %cst_62 = arith.constant 1.000000e+00 : f32
    %150 = vector.broadcast %cst_62 : f32 to vector<8x8xf32>
    %151 = arith.addf %150, %149 : vector<8x8xf32>
    %152 = arith.divf %150, %151 : vector<8x8xf32>
    %cst_63 = arith.constant dense<0.000000e+00> : vector<8x128xf32>
    %153 = tpu.matmul %152, %15, %cst_63 {dimension_numbers = #tpu.dot_dimension_numbers<[1], [1], [0], [0], [0, 0, 1, 0], [], []>} : vector<8x8xf32>, vector<128x8xf32>, vector<8x128xf32> -> vector<8x128xf32>
    %cst_64 = arith.constant 1.000000e+00 : f32
    %154 = vector.broadcast %cst_64 : f32 to vector<8x128xf32>
    %155 = arith.subf %154, %153 : vector<8x128xf32>
    %156 = arith.mulf %74, %155 : vector<8x128xf32>
    %157 = arith.mulf %145, %153 : vector<8x128xf32>
    %158 = arith.addf %156, %157 : vector<8x128xf32>
    %cst_65 = arith.constant dense<0.000000e+00> : vector<8x16xf32>
    %159 = tpu.matmul %139, %6, %cst_65 {dimension_numbers = #tpu.dot_dimension_numbers<[1], [0], [0], [1], [0, 0, 1, 1], [], []>} : vector<8x32xf32>, vector<32x16xf32>, vector<8x16xf32> -> vector<8x16xf32>
    %160 = vector.broadcast %7 : vector<1x16xf32> to vector<8x16xf32>
    %161 = arith.addf %159, %160 : vector<8x16xf32>
    %162 = math.tanh %161 : vector<8x16xf32>
    %cst_66 = arith.constant dense<0.000000e+00> : vector<8x8xf32>
    %163 = tpu.matmul %162, %13, %cst_66 {dimension_numbers = #tpu.dot_dimension_numbers<[1], [1], [0], [0], [0, 0, 1, 0], [], []>} : vector<8x16xf32>, vector<8x16xf32>, vector<8x8xf32> -> vector<8x8xf32>
    %cst_67 = arith.constant dense<0xFF800000> : vector<8xf32>
    %164 = vector.multi_reduction <maximumf>, %163, %cst_67 [1] : vector<8x8xf32> to vector<8xf32>
    %165 = vector.shape_cast %164 : vector<8xf32> to vector<8x1xf32>
    %166 = vector.broadcast %165 : vector<8x1xf32> to vector<8x8xf32>
    %167 = arith.subf %163, %166 : vector<8x8xf32>
    %168 = math.exp %167 : vector<8x8xf32>
    %cst_68 = arith.constant dense<0.000000e+00> : vector<8xf32>
    %169 = vector.multi_reduction <add>, %168, %cst_68 [1] : vector<8x8xf32> to vector<8xf32>
    %170 = vector.shape_cast %169 : vector<8xf32> to vector<8x1xf32>
    %171 = tpu.reciprocal %170 {approx = true} : vector<8x1xf32> -> vector<8x1xf32>
    %172 = vector.broadcast %171 : vector<8x1xf32> to vector<8x8xf32>
    %173 = arith.mulf %168, %172 : vector<8x8xf32>
    %cst_69 = arith.constant dense<0.000000e+00> : vector<8x128xf32>
    %174 = tpu.matmul %173, %15, %cst_69 {dimension_numbers = #tpu.dot_dimension_numbers<[1], [1], [0], [0], [0, 0, 1, 0], [], []>} : vector<8x8xf32>, vector<128x8xf32>, vector<8x128xf32> -> vector<8x128xf32>
    %cst_70 = arith.constant dense<0.000000e+00> : vector<8x32xf32>
    %175 = tpu.matmul %139, %8, %cst_70 {dimension_numbers = #tpu.dot_dimension_numbers<[1], [0], [0], [1], [0, 0, 1, 1], [], []>} : vector<8x32xf32>, vector<32x32xf32>, vector<8x32xf32> -> vector<8x32xf32>
    %176 = arith.mulf %158, %174 : vector<8x128xf32>
    %cst_71 = arith.constant dense<0.000000e+00> : vector<8x32xf32>
    %177 = tpu.matmul %176, %9, %cst_71 {dimension_numbers = #tpu.dot_dimension_numbers<[1], [0], [0], [1], [0, 0, 1, 1], [], []>} : vector<8x128xf32>, vector<128x32xf32>, vector<8x32xf32> -> vector<8x32xf32>
    %178 = arith.addf %175, %177 : vector<8x32xf32>
    %179 = vector.broadcast %10 : vector<1x32xf32> to vector<8x32xf32>
    %180 = arith.addf %178, %179 : vector<8x32xf32>
    %181 = math.tanh %180 : vector<8x32xf32>
    %cst_72 = arith.constant dense<0.000000e+00> : vector<8x32xf32>
    %182 = tpu.matmul %181, %11, %cst_72 {dimension_numbers = #tpu.dot_dimension_numbers<[1], [0], [0], [1], [0, 0, 1, 1], [], []>} : vector<8x32xf32>, vector<32x32xf32>, vector<8x32xf32> -> vector<8x32xf32>
    %183 = vector.broadcast %12 : vector<1x32xf32> to vector<8x32xf32>
    %184 = arith.addf %182, %183 : vector<8x32xf32>
    %185 = math.tanh %184 : vector<8x32xf32>
    %186 = arith.addf %102, %185 : vector<8x32xf32>
    %c2_i32 = arith.constant 2 : i32
    %187 = arith.index_cast %c2_i32 : i32 to index
    %c0_73 = arith.constant 0 : index
    %c0_74 = arith.constant 0 : index
    %188 = vector.load %arg0[%187, %c0_73, %c0_74] : memref<8x8x32xf32, #tpu.memory_space<vmem>>, vector<1x8x32xf32>
    %189 = vector.shape_cast %188 : vector<1x8x32xf32> to vector<8x32xf32>
    %190 = vector.extract_strided_slice %189 {offsets = [0, 0], sizes = [8, 16], strides = [1, 1]} : vector<8x32xf32> to vector<8x16xf32>
    %191 = vector.extract_strided_slice %189 {offsets = [0, 16], sizes = [8, 16], strides = [1, 1]} : vector<8x32xf32> to vector<8x16xf32>
    %cst_75 = arith.constant dense<0.000000e+00> : vector<8x96xf32>
    %192 = tpu.matmul %190, %0, %cst_75 {dimension_numbers = #tpu.dot_dimension_numbers<[1], [0], [0], [1], [0, 0, 1, 1], [], []>} : vector<8x16xf32>, vector<16x96xf32>, vector<8x96xf32> -> vector<8x96xf32>
    %193 = vector.broadcast %1 : vector<1x96xf32> to vector<8x96xf32>
    %194 = arith.addf %192, %193 : vector<8x96xf32>
    %cst_76 = arith.constant dense<0.000000e+00> : vector<8x96xf32>
    %195 = tpu.matmul %139, %2, %cst_76 {dimension_numbers = #tpu.dot_dimension_numbers<[1], [0], [0], [1], [0, 0, 1, 1], [], []>} : vector<8x32xf32>, vector<32x96xf32>, vector<8x96xf32> -> vector<8x96xf32>
    %196 = vector.extract_strided_slice %194 {offsets = [0, 0], sizes = [8, 32], strides = [1, 1]} : vector<8x96xf32> to vector<8x32xf32>
    %197 = vector.extract_strided_slice %195 {offsets = [0, 0], sizes = [8, 32], strides = [1, 1]} : vector<8x96xf32> to vector<8x32xf32>
    %198 = arith.addf %196, %197 : vector<8x32xf32>
    %199 = arith.negf %198 : vector<8x32xf32>
    %200 = math.exp %199 : vector<8x32xf32>
    %cst_77 = arith.constant 1.000000e+00 : f32
    %201 = vector.broadcast %cst_77 : f32 to vector<8x32xf32>
    %202 = arith.addf %201, %200 : vector<8x32xf32>
    %203 = arith.divf %201, %202 : vector<8x32xf32>
    %204 = vector.extract_strided_slice %194 {offsets = [0, 32], sizes = [8, 32], strides = [1, 1]} : vector<8x96xf32> to vector<8x32xf32>
    %205 = vector.extract_strided_slice %195 {offsets = [0, 32], sizes = [8, 32], strides = [1, 1]} : vector<8x96xf32> to vector<8x32xf32>
    %206 = arith.addf %204, %205 : vector<8x32xf32>
    %207 = arith.negf %206 : vector<8x32xf32>
    %208 = math.exp %207 : vector<8x32xf32>
    %cst_78 = arith.constant 1.000000e+00 : f32
    %209 = vector.broadcast %cst_78 : f32 to vector<8x32xf32>
    %210 = arith.addf %209, %208 : vector<8x32xf32>
    %211 = arith.divf %209, %210 : vector<8x32xf32>
    %212 = vector.extract_strided_slice %194 {offsets = [0, 64], sizes = [8, 32], strides = [1, 1]} : vector<8x96xf32> to vector<8x32xf32>
    %213 = vector.extract_strided_slice %195 {offsets = [0, 64], sizes = [8, 32], strides = [1, 1]} : vector<8x96xf32> to vector<8x32xf32>
    %214 = vector.broadcast %3 : vector<1x32xf32> to vector<8x32xf32>
    %215 = arith.addf %213, %214 : vector<8x32xf32>
    %216 = arith.mulf %203, %215 : vector<8x32xf32>
    %217 = arith.addf %212, %216 : vector<8x32xf32>
    %218 = math.tanh %217 : vector<8x32xf32>
    %cst_79 = arith.constant 1.000000e+00 : f32
    %219 = vector.broadcast %cst_79 : f32 to vector<8x32xf32>
    %220 = arith.subf %219, %211 : vector<8x32xf32>
    %221 = arith.mulf %220, %218 : vector<8x32xf32>
    %222 = arith.mulf %211, %139 : vector<8x32xf32>
    %223 = arith.addf %221, %222 : vector<8x32xf32>
    %cst_80 = arith.constant dense<0.000000e+00> : vector<8x128xf32>
    %224 = tpu.matmul %191, %4, %cst_80 {dimension_numbers = #tpu.dot_dimension_numbers<[1], [0], [0], [1], [0, 0, 1, 1], [], []>} : vector<8x16xf32>, vector<16x128xf32>, vector<8x128xf32> -> vector<8x128xf32>
    %225 = vector.broadcast %5 : vector<1x128xf32> to vector<8x128xf32>
    %226 = arith.addf %224, %225 : vector<8x128xf32>
    %227 = math.tanh %226 : vector<8x128xf32>
    %228 = vector.broadcast %14 : vector<1x128xf32> to vector<8x128xf32>
    %229 = arith.addf %227, %228 : vector<8x128xf32>
    %230 = arith.mulf %158, %229 : vector<8x128xf32>
    %cst_81 = arith.constant dense<0.000000e+00> : vector<8x8xf32>
    %231 = tpu.matmul %230, %15, %cst_81 {dimension_numbers = #tpu.dot_dimension_numbers<[1], [0], [0], [1], [0, 0, 1, 1], [], []>} : vector<8x128xf32>, vector<128x8xf32>, vector<8x8xf32> -> vector<8x8xf32>
    %232 = arith.negf %231 : vector<8x8xf32>
    %233 = math.exp %232 : vector<8x8xf32>
    %cst_82 = arith.constant 1.000000e+00 : f32
    %234 = vector.broadcast %cst_82 : f32 to vector<8x8xf32>
    %235 = arith.addf %234, %233 : vector<8x8xf32>
    %236 = arith.divf %234, %235 : vector<8x8xf32>
    %cst_83 = arith.constant dense<0.000000e+00> : vector<8x128xf32>
    %237 = tpu.matmul %236, %15, %cst_83 {dimension_numbers = #tpu.dot_dimension_numbers<[1], [1], [0], [0], [0, 0, 1, 0], [], []>} : vector<8x8xf32>, vector<128x8xf32>, vector<8x128xf32> -> vector<8x128xf32>
    %cst_84 = arith.constant 1.000000e+00 : f32
    %238 = vector.broadcast %cst_84 : f32 to vector<8x128xf32>
    %239 = arith.subf %238, %237 : vector<8x128xf32>
    %240 = arith.mulf %158, %239 : vector<8x128xf32>
    %241 = arith.mulf %229, %237 : vector<8x128xf32>
    %242 = arith.addf %240, %241 : vector<8x128xf32>
    %cst_85 = arith.constant dense<0.000000e+00> : vector<8x16xf32>
    %243 = tpu.matmul %223, %6, %cst_85 {dimension_numbers = #tpu.dot_dimension_numbers<[1], [0], [0], [1], [0, 0, 1, 1], [], []>} : vector<8x32xf32>, vector<32x16xf32>, vector<8x16xf32> -> vector<8x16xf32>
    %244 = vector.broadcast %7 : vector<1x16xf32> to vector<8x16xf32>
    %245 = arith.addf %243, %244 : vector<8x16xf32>
    %246 = math.tanh %245 : vector<8x16xf32>
    %cst_86 = arith.constant dense<0.000000e+00> : vector<8x8xf32>
    %247 = tpu.matmul %246, %13, %cst_86 {dimension_numbers = #tpu.dot_dimension_numbers<[1], [1], [0], [0], [0, 0, 1, 0], [], []>} : vector<8x16xf32>, vector<8x16xf32>, vector<8x8xf32> -> vector<8x8xf32>
    %cst_87 = arith.constant dense<0xFF800000> : vector<8xf32>
    %248 = vector.multi_reduction <maximumf>, %247, %cst_87 [1] : vector<8x8xf32> to vector<8xf32>
    %249 = vector.shape_cast %248 : vector<8xf32> to vector<8x1xf32>
    %250 = vector.broadcast %249 : vector<8x1xf32> to vector<8x8xf32>
    %251 = arith.subf %247, %250 : vector<8x8xf32>
    %252 = math.exp %251 : vector<8x8xf32>
    %cst_88 = arith.constant dense<0.000000e+00> : vector<8xf32>
    %253 = vector.multi_reduction <add>, %252, %cst_88 [1] : vector<8x8xf32> to vector<8xf32>
    %254 = vector.shape_cast %253 : vector<8xf32> to vector<8x1xf32>
    %255 = tpu.reciprocal %254 {approx = true} : vector<8x1xf32> -> vector<8x1xf32>
    %256 = vector.broadcast %255 : vector<8x1xf32> to vector<8x8xf32>
    %257 = arith.mulf %252, %256 : vector<8x8xf32>
    %cst_89 = arith.constant dense<0.000000e+00> : vector<8x128xf32>
    %258 = tpu.matmul %257, %15, %cst_89 {dimension_numbers = #tpu.dot_dimension_numbers<[1], [1], [0], [0], [0, 0, 1, 0], [], []>} : vector<8x8xf32>, vector<128x8xf32>, vector<8x128xf32> -> vector<8x128xf32>
    %cst_90 = arith.constant dense<0.000000e+00> : vector<8x32xf32>
    %259 = tpu.matmul %223, %8, %cst_90 {dimension_numbers = #tpu.dot_dimension_numbers<[1], [0], [0], [1], [0, 0, 1, 1], [], []>} : vector<8x32xf32>, vector<32x32xf32>, vector<8x32xf32> -> vector<8x32xf32>
    %260 = arith.mulf %242, %258 : vector<8x128xf32>
    %cst_91 = arith.constant dense<0.000000e+00> : vector<8x32xf32>
    %261 = tpu.matmul %260, %9, %cst_91 {dimension_numbers = #tpu.dot_dimension_numbers<[1], [0], [0], [1], [0, 0, 1, 1], [], []>} : vector<8x128xf32>, vector<128x32xf32>, vector<8x32xf32> -> vector<8x32xf32>
    %262 = arith.addf %259, %261 : vector<8x32xf32>
    %263 = vector.broadcast %10 : vector<1x32xf32> to vector<8x32xf32>
    %264 = arith.addf %262, %263 : vector<8x32xf32>
    %265 = math.tanh %264 : vector<8x32xf32>
    %cst_92 = arith.constant dense<0.000000e+00> : vector<8x32xf32>
    %266 = tpu.matmul %265, %11, %cst_92 {dimension_numbers = #tpu.dot_dimension_numbers<[1], [0], [0], [1], [0, 0, 1, 1], [], []>} : vector<8x32xf32>, vector<32x32xf32>, vector<8x32xf32> -> vector<8x32xf32>
    %267 = vector.broadcast %12 : vector<1x32xf32> to vector<8x32xf32>
    %268 = arith.addf %266, %267 : vector<8x32xf32>
    %269 = math.tanh %268 : vector<8x32xf32>
    %270 = arith.addf %186, %269 : vector<8x32xf32>
    %c3_i32 = arith.constant 3 : i32
    %271 = arith.index_cast %c3_i32 : i32 to index
    %c0_93 = arith.constant 0 : index
    %c0_94 = arith.constant 0 : index
    %272 = vector.load %arg0[%271, %c0_93, %c0_94] : memref<8x8x32xf32, #tpu.memory_space<vmem>>, vector<1x8x32xf32>
    %273 = vector.shape_cast %272 : vector<1x8x32xf32> to vector<8x32xf32>
    %274 = vector.extract_strided_slice %273 {offsets = [0, 0], sizes = [8, 16], strides = [1, 1]} : vector<8x32xf32> to vector<8x16xf32>
    %275 = vector.extract_strided_slice %273 {offsets = [0, 16], sizes = [8, 16], strides = [1, 1]} : vector<8x32xf32> to vector<8x16xf32>
    %cst_95 = arith.constant dense<0.000000e+00> : vector<8x96xf32>
    %276 = tpu.matmul %274, %0, %cst_95 {dimension_numbers = #tpu.dot_dimension_numbers<[1], [0], [0], [1], [0, 0, 1, 1], [], []>} : vector<8x16xf32>, vector<16x96xf32>, vector<8x96xf32> -> vector<8x96xf32>
    %277 = vector.broadcast %1 : vector<1x96xf32> to vector<8x96xf32>
    %278 = arith.addf %276, %277 : vector<8x96xf32>
    %cst_96 = arith.constant dense<0.000000e+00> : vector<8x96xf32>
    %279 = tpu.matmul %223, %2, %cst_96 {dimension_numbers = #tpu.dot_dimension_numbers<[1], [0], [0], [1], [0, 0, 1, 1], [], []>} : vector<8x32xf32>, vector<32x96xf32>, vector<8x96xf32> -> vector<8x96xf32>
    %280 = vector.extract_strided_slice %278 {offsets = [0, 0], sizes = [8, 32], strides = [1, 1]} : vector<8x96xf32> to vector<8x32xf32>
    %281 = vector.extract_strided_slice %279 {offsets = [0, 0], sizes = [8, 32], strides = [1, 1]} : vector<8x96xf32> to vector<8x32xf32>
    %282 = arith.addf %280, %281 : vector<8x32xf32>
    %283 = arith.negf %282 : vector<8x32xf32>
    %284 = math.exp %283 : vector<8x32xf32>
    %cst_97 = arith.constant 1.000000e+00 : f32
    %285 = vector.broadcast %cst_97 : f32 to vector<8x32xf32>
    %286 = arith.addf %285, %284 : vector<8x32xf32>
    %287 = arith.divf %285, %286 : vector<8x32xf32>
    %288 = vector.extract_strided_slice %278 {offsets = [0, 32], sizes = [8, 32], strides = [1, 1]} : vector<8x96xf32> to vector<8x32xf32>
    %289 = vector.extract_strided_slice %279 {offsets = [0, 32], sizes = [8, 32], strides = [1, 1]} : vector<8x96xf32> to vector<8x32xf32>
    %290 = arith.addf %288, %289 : vector<8x32xf32>
    %291 = arith.negf %290 : vector<8x32xf32>
    %292 = math.exp %291 : vector<8x32xf32>
    %cst_98 = arith.constant 1.000000e+00 : f32
    %293 = vector.broadcast %cst_98 : f32 to vector<8x32xf32>
    %294 = arith.addf %293, %292 : vector<8x32xf32>
    %295 = arith.divf %293, %294 : vector<8x32xf32>
    %296 = vector.extract_strided_slice %278 {offsets = [0, 64], sizes = [8, 32], strides = [1, 1]} : vector<8x96xf32> to vector<8x32xf32>
    %297 = vector.extract_strided_slice %279 {offsets = [0, 64], sizes = [8, 32], strides = [1, 1]} : vector<8x96xf32> to vector<8x32xf32>
    %298 = vector.broadcast %3 : vector<1x32xf32> to vector<8x32xf32>
    %299 = arith.addf %297, %298 : vector<8x32xf32>
    %300 = arith.mulf %287, %299 : vector<8x32xf32>
    %301 = arith.addf %296, %300 : vector<8x32xf32>
    %302 = math.tanh %301 : vector<8x32xf32>
    %cst_99 = arith.constant 1.000000e+00 : f32
    %303 = vector.broadcast %cst_99 : f32 to vector<8x32xf32>
    %304 = arith.subf %303, %295 : vector<8x32xf32>
    %305 = arith.mulf %304, %302 : vector<8x32xf32>
    %306 = arith.mulf %295, %223 : vector<8x32xf32>
    %307 = arith.addf %305, %306 : vector<8x32xf32>
    %cst_100 = arith.constant dense<0.000000e+00> : vector<8x128xf32>
    %308 = tpu.matmul %275, %4, %cst_100 {dimension_numbers = #tpu.dot_dimension_numbers<[1], [0], [0], [1], [0, 0, 1, 1], [], []>} : vector<8x16xf32>, vector<16x128xf32>, vector<8x128xf32> -> vector<8x128xf32>
    %309 = vector.broadcast %5 : vector<1x128xf32> to vector<8x128xf32>
    %310 = arith.addf %308, %309 : vector<8x128xf32>
    %311 = math.tanh %310 : vector<8x128xf32>
    %312 = vector.broadcast %14 : vector<1x128xf32> to vector<8x128xf32>
    %313 = arith.addf %311, %312 : vector<8x128xf32>
    %314 = arith.mulf %242, %313 : vector<8x128xf32>
    %cst_101 = arith.constant dense<0.000000e+00> : vector<8x8xf32>
    %315 = tpu.matmul %314, %15, %cst_101 {dimension_numbers = #tpu.dot_dimension_numbers<[1], [0], [0], [1], [0, 0, 1, 1], [], []>} : vector<8x128xf32>, vector<128x8xf32>, vector<8x8xf32> -> vector<8x8xf32>
    %316 = arith.negf %315 : vector<8x8xf32>
    %317 = math.exp %316 : vector<8x8xf32>
    %cst_102 = arith.constant 1.000000e+00 : f32
    %318 = vector.broadcast %cst_102 : f32 to vector<8x8xf32>
    %319 = arith.addf %318, %317 : vector<8x8xf32>
    %320 = arith.divf %318, %319 : vector<8x8xf32>
    %cst_103 = arith.constant dense<0.000000e+00> : vector<8x128xf32>
    %321 = tpu.matmul %320, %15, %cst_103 {dimension_numbers = #tpu.dot_dimension_numbers<[1], [1], [0], [0], [0, 0, 1, 0], [], []>} : vector<8x8xf32>, vector<128x8xf32>, vector<8x128xf32> -> vector<8x128xf32>
    %cst_104 = arith.constant 1.000000e+00 : f32
    %322 = vector.broadcast %cst_104 : f32 to vector<8x128xf32>
    %323 = arith.subf %322, %321 : vector<8x128xf32>
    %324 = arith.mulf %242, %323 : vector<8x128xf32>
    %325 = arith.mulf %313, %321 : vector<8x128xf32>
    %326 = arith.addf %324, %325 : vector<8x128xf32>
    %cst_105 = arith.constant dense<0.000000e+00> : vector<8x16xf32>
    %327 = tpu.matmul %307, %6, %cst_105 {dimension_numbers = #tpu.dot_dimension_numbers<[1], [0], [0], [1], [0, 0, 1, 1], [], []>} : vector<8x32xf32>, vector<32x16xf32>, vector<8x16xf32> -> vector<8x16xf32>
    %328 = vector.broadcast %7 : vector<1x16xf32> to vector<8x16xf32>
    %329 = arith.addf %327, %328 : vector<8x16xf32>
    %330 = math.tanh %329 : vector<8x16xf32>
    %cst_106 = arith.constant dense<0.000000e+00> : vector<8x8xf32>
    %331 = tpu.matmul %330, %13, %cst_106 {dimension_numbers = #tpu.dot_dimension_numbers<[1], [1], [0], [0], [0, 0, 1, 0], [], []>} : vector<8x16xf32>, vector<8x16xf32>, vector<8x8xf32> -> vector<8x8xf32>
    %cst_107 = arith.constant dense<0xFF800000> : vector<8xf32>
    %332 = vector.multi_reduction <maximumf>, %331, %cst_107 [1] : vector<8x8xf32> to vector<8xf32>
    %333 = vector.shape_cast %332 : vector<8xf32> to vector<8x1xf32>
    %334 = vector.broadcast %333 : vector<8x1xf32> to vector<8x8xf32>
    %335 = arith.subf %331, %334 : vector<8x8xf32>
    %336 = math.exp %335 : vector<8x8xf32>
    %cst_108 = arith.constant dense<0.000000e+00> : vector<8xf32>
    %337 = vector.multi_reduction <add>, %336, %cst_108 [1] : vector<8x8xf32> to vector<8xf32>
    %338 = vector.shape_cast %337 : vector<8xf32> to vector<8x1xf32>
    %339 = tpu.reciprocal %338 {approx = true} : vector<8x1xf32> -> vector<8x1xf32>
    %340 = vector.broadcast %339 : vector<8x1xf32> to vector<8x8xf32>
    %341 = arith.mulf %336, %340 : vector<8x8xf32>
    %cst_109 = arith.constant dense<0.000000e+00> : vector<8x128xf32>
    %342 = tpu.matmul %341, %15, %cst_109 {dimension_numbers = #tpu.dot_dimension_numbers<[1], [1], [0], [0], [0, 0, 1, 0], [], []>} : vector<8x8xf32>, vector<128x8xf32>, vector<8x128xf32> -> vector<8x128xf32>
    %cst_110 = arith.constant dense<0.000000e+00> : vector<8x32xf32>
    %343 = tpu.matmul %307, %8, %cst_110 {dimension_numbers = #tpu.dot_dimension_numbers<[1], [0], [0], [1], [0, 0, 1, 1], [], []>} : vector<8x32xf32>, vector<32x32xf32>, vector<8x32xf32> -> vector<8x32xf32>
    %344 = arith.mulf %326, %342 : vector<8x128xf32>
    %cst_111 = arith.constant dense<0.000000e+00> : vector<8x32xf32>
    %345 = tpu.matmul %344, %9, %cst_111 {dimension_numbers = #tpu.dot_dimension_numbers<[1], [0], [0], [1], [0, 0, 1, 1], [], []>} : vector<8x128xf32>, vector<128x32xf32>, vector<8x32xf32> -> vector<8x32xf32>
    %346 = arith.addf %343, %345 : vector<8x32xf32>
    %347 = vector.broadcast %10 : vector<1x32xf32> to vector<8x32xf32>
    %348 = arith.addf %346, %347 : vector<8x32xf32>
    %349 = math.tanh %348 : vector<8x32xf32>
    %cst_112 = arith.constant dense<0.000000e+00> : vector<8x32xf32>
    %350 = tpu.matmul %349, %11, %cst_112 {dimension_numbers = #tpu.dot_dimension_numbers<[1], [0], [0], [1], [0, 0, 1, 1], [], []>} : vector<8x32xf32>, vector<32x32xf32>, vector<8x32xf32> -> vector<8x32xf32>
    %351 = vector.broadcast %12 : vector<1x32xf32> to vector<8x32xf32>
    %352 = arith.addf %350, %351 : vector<8x32xf32>
    %353 = math.tanh %352 : vector<8x32xf32>
    %354 = arith.addf %270, %353 : vector<8x32xf32>
    %c4_i32 = arith.constant 4 : i32
    %355 = arith.index_cast %c4_i32 : i32 to index
    %c0_113 = arith.constant 0 : index
    %c0_114 = arith.constant 0 : index
    %356 = vector.load %arg0[%355, %c0_113, %c0_114] : memref<8x8x32xf32, #tpu.memory_space<vmem>>, vector<1x8x32xf32>
    %357 = vector.shape_cast %356 : vector<1x8x32xf32> to vector<8x32xf32>
    %358 = vector.extract_strided_slice %357 {offsets = [0, 0], sizes = [8, 16], strides = [1, 1]} : vector<8x32xf32> to vector<8x16xf32>
    %359 = vector.extract_strided_slice %357 {offsets = [0, 16], sizes = [8, 16], strides = [1, 1]} : vector<8x32xf32> to vector<8x16xf32>
    %cst_115 = arith.constant dense<0.000000e+00> : vector<8x96xf32>
    %360 = tpu.matmul %358, %0, %cst_115 {dimension_numbers = #tpu.dot_dimension_numbers<[1], [0], [0], [1], [0, 0, 1, 1], [], []>} : vector<8x16xf32>, vector<16x96xf32>, vector<8x96xf32> -> vector<8x96xf32>
    %361 = vector.broadcast %1 : vector<1x96xf32> to vector<8x96xf32>
    %362 = arith.addf %360, %361 : vector<8x96xf32>
    %cst_116 = arith.constant dense<0.000000e+00> : vector<8x96xf32>
    %363 = tpu.matmul %307, %2, %cst_116 {dimension_numbers = #tpu.dot_dimension_numbers<[1], [0], [0], [1], [0, 0, 1, 1], [], []>} : vector<8x32xf32>, vector<32x96xf32>, vector<8x96xf32> -> vector<8x96xf32>
    %364 = vector.extract_strided_slice %362 {offsets = [0, 0], sizes = [8, 32], strides = [1, 1]} : vector<8x96xf32> to vector<8x32xf32>
    %365 = vector.extract_strided_slice %363 {offsets = [0, 0], sizes = [8, 32], strides = [1, 1]} : vector<8x96xf32> to vector<8x32xf32>
    %366 = arith.addf %364, %365 : vector<8x32xf32>
    %367 = arith.negf %366 : vector<8x32xf32>
    %368 = math.exp %367 : vector<8x32xf32>
    %cst_117 = arith.constant 1.000000e+00 : f32
    %369 = vector.broadcast %cst_117 : f32 to vector<8x32xf32>
    %370 = arith.addf %369, %368 : vector<8x32xf32>
    %371 = arith.divf %369, %370 : vector<8x32xf32>
    %372 = vector.extract_strided_slice %362 {offsets = [0, 32], sizes = [8, 32], strides = [1, 1]} : vector<8x96xf32> to vector<8x32xf32>
    %373 = vector.extract_strided_slice %363 {offsets = [0, 32], sizes = [8, 32], strides = [1, 1]} : vector<8x96xf32> to vector<8x32xf32>
    %374 = arith.addf %372, %373 : vector<8x32xf32>
    %375 = arith.negf %374 : vector<8x32xf32>
    %376 = math.exp %375 : vector<8x32xf32>
    %cst_118 = arith.constant 1.000000e+00 : f32
    %377 = vector.broadcast %cst_118 : f32 to vector<8x32xf32>
    %378 = arith.addf %377, %376 : vector<8x32xf32>
    %379 = arith.divf %377, %378 : vector<8x32xf32>
    %380 = vector.extract_strided_slice %362 {offsets = [0, 64], sizes = [8, 32], strides = [1, 1]} : vector<8x96xf32> to vector<8x32xf32>
    %381 = vector.extract_strided_slice %363 {offsets = [0, 64], sizes = [8, 32], strides = [1, 1]} : vector<8x96xf32> to vector<8x32xf32>
    %382 = vector.broadcast %3 : vector<1x32xf32> to vector<8x32xf32>
    %383 = arith.addf %381, %382 : vector<8x32xf32>
    %384 = arith.mulf %371, %383 : vector<8x32xf32>
    %385 = arith.addf %380, %384 : vector<8x32xf32>
    %386 = math.tanh %385 : vector<8x32xf32>
    %cst_119 = arith.constant 1.000000e+00 : f32
    %387 = vector.broadcast %cst_119 : f32 to vector<8x32xf32>
    %388 = arith.subf %387, %379 : vector<8x32xf32>
    %389 = arith.mulf %388, %386 : vector<8x32xf32>
    %390 = arith.mulf %379, %307 : vector<8x32xf32>
    %391 = arith.addf %389, %390 : vector<8x32xf32>
    %cst_120 = arith.constant dense<0.000000e+00> : vector<8x128xf32>
    %392 = tpu.matmul %359, %4, %cst_120 {dimension_numbers = #tpu.dot_dimension_numbers<[1], [0], [0], [1], [0, 0, 1, 1], [], []>} : vector<8x16xf32>, vector<16x128xf32>, vector<8x128xf32> -> vector<8x128xf32>
    %393 = vector.broadcast %5 : vector<1x128xf32> to vector<8x128xf32>
    %394 = arith.addf %392, %393 : vector<8x128xf32>
    %395 = math.tanh %394 : vector<8x128xf32>
    %396 = vector.broadcast %14 : vector<1x128xf32> to vector<8x128xf32>
    %397 = arith.addf %395, %396 : vector<8x128xf32>
    %398 = arith.mulf %326, %397 : vector<8x128xf32>
    %cst_121 = arith.constant dense<0.000000e+00> : vector<8x8xf32>
    %399 = tpu.matmul %398, %15, %cst_121 {dimension_numbers = #tpu.dot_dimension_numbers<[1], [0], [0], [1], [0, 0, 1, 1], [], []>} : vector<8x128xf32>, vector<128x8xf32>, vector<8x8xf32> -> vector<8x8xf32>
    %400 = arith.negf %399 : vector<8x8xf32>
    %401 = math.exp %400 : vector<8x8xf32>
    %cst_122 = arith.constant 1.000000e+00 : f32
    %402 = vector.broadcast %cst_122 : f32 to vector<8x8xf32>
    %403 = arith.addf %402, %401 : vector<8x8xf32>
    %404 = arith.divf %402, %403 : vector<8x8xf32>
    %cst_123 = arith.constant dense<0.000000e+00> : vector<8x128xf32>
    %405 = tpu.matmul %404, %15, %cst_123 {dimension_numbers = #tpu.dot_dimension_numbers<[1], [1], [0], [0], [0, 0, 1, 0], [], []>} : vector<8x8xf32>, vector<128x8xf32>, vector<8x128xf32> -> vector<8x128xf32>
    %cst_124 = arith.constant 1.000000e+00 : f32
    %406 = vector.broadcast %cst_124 : f32 to vector<8x128xf32>
    %407 = arith.subf %406, %405 : vector<8x128xf32>
    %408 = arith.mulf %326, %407 : vector<8x128xf32>
    %409 = arith.mulf %397, %405 : vector<8x128xf32>
    %410 = arith.addf %408, %409 : vector<8x128xf32>
    %cst_125 = arith.constant dense<0.000000e+00> : vector<8x16xf32>
    %411 = tpu.matmul %391, %6, %cst_125 {dimension_numbers = #tpu.dot_dimension_numbers<[1], [0], [0], [1], [0, 0, 1, 1], [], []>} : vector<8x32xf32>, vector<32x16xf32>, vector<8x16xf32> -> vector<8x16xf32>
    %412 = vector.broadcast %7 : vector<1x16xf32> to vector<8x16xf32>
    %413 = arith.addf %411, %412 : vector<8x16xf32>
    %414 = math.tanh %413 : vector<8x16xf32>
    %cst_126 = arith.constant dense<0.000000e+00> : vector<8x8xf32>
    %415 = tpu.matmul %414, %13, %cst_126 {dimension_numbers = #tpu.dot_dimension_numbers<[1], [1], [0], [0], [0, 0, 1, 0], [], []>} : vector<8x16xf32>, vector<8x16xf32>, vector<8x8xf32> -> vector<8x8xf32>
    %cst_127 = arith.constant dense<0xFF800000> : vector<8xf32>
    %416 = vector.multi_reduction <maximumf>, %415, %cst_127 [1] : vector<8x8xf32> to vector<8xf32>
    %417 = vector.shape_cast %416 : vector<8xf32> to vector<8x1xf32>
    %418 = vector.broadcast %417 : vector<8x1xf32> to vector<8x8xf32>
    %419 = arith.subf %415, %418 : vector<8x8xf32>
    %420 = math.exp %419 : vector<8x8xf32>
    %cst_128 = arith.constant dense<0.000000e+00> : vector<8xf32>
    %421 = vector.multi_reduction <add>, %420, %cst_128 [1] : vector<8x8xf32> to vector<8xf32>
    %422 = vector.shape_cast %421 : vector<8xf32> to vector<8x1xf32>
    %423 = tpu.reciprocal %422 {approx = true} : vector<8x1xf32> -> vector<8x1xf32>
    %424 = vector.broadcast %423 : vector<8x1xf32> to vector<8x8xf32>
    %425 = arith.mulf %420, %424 : vector<8x8xf32>
    %cst_129 = arith.constant dense<0.000000e+00> : vector<8x128xf32>
    %426 = tpu.matmul %425, %15, %cst_129 {dimension_numbers = #tpu.dot_dimension_numbers<[1], [1], [0], [0], [0, 0, 1, 0], [], []>} : vector<8x8xf32>, vector<128x8xf32>, vector<8x128xf32> -> vector<8x128xf32>
    %cst_130 = arith.constant dense<0.000000e+00> : vector<8x32xf32>
    %427 = tpu.matmul %391, %8, %cst_130 {dimension_numbers = #tpu.dot_dimension_numbers<[1], [0], [0], [1], [0, 0, 1, 1], [], []>} : vector<8x32xf32>, vector<32x32xf32>, vector<8x32xf32> -> vector<8x32xf32>
    %428 = arith.mulf %410, %426 : vector<8x128xf32>
    %cst_131 = arith.constant dense<0.000000e+00> : vector<8x32xf32>
    %429 = tpu.matmul %428, %9, %cst_131 {dimension_numbers = #tpu.dot_dimension_numbers<[1], [0], [0], [1], [0, 0, 1, 1], [], []>} : vector<8x128xf32>, vector<128x32xf32>, vector<8x32xf32> -> vector<8x32xf32>
    %430 = arith.addf %427, %429 : vector<8x32xf32>
    %431 = vector.broadcast %10 : vector<1x32xf32> to vector<8x32xf32>
    %432 = arith.addf %430, %431 : vector<8x32xf32>
    %433 = math.tanh %432 : vector<8x32xf32>
    %cst_132 = arith.constant dense<0.000000e+00> : vector<8x32xf32>
    %434 = tpu.matmul %433, %11, %cst_132 {dimension_numbers = #tpu.dot_dimension_numbers<[1], [0], [0], [1], [0, 0, 1, 1], [], []>} : vector<8x32xf32>, vector<32x32xf32>, vector<8x32xf32> -> vector<8x32xf32>
    %435 = vector.broadcast %12 : vector<1x32xf32> to vector<8x32xf32>
    %436 = arith.addf %434, %435 : vector<8x32xf32>
    %437 = math.tanh %436 : vector<8x32xf32>
    %438 = arith.addf %354, %437 : vector<8x32xf32>
    %c5_i32 = arith.constant 5 : i32
    %439 = arith.index_cast %c5_i32 : i32 to index
    %c0_133 = arith.constant 0 : index
    %c0_134 = arith.constant 0 : index
    %440 = vector.load %arg0[%439, %c0_133, %c0_134] : memref<8x8x32xf32, #tpu.memory_space<vmem>>, vector<1x8x32xf32>
    %441 = vector.shape_cast %440 : vector<1x8x32xf32> to vector<8x32xf32>
    %442 = vector.extract_strided_slice %441 {offsets = [0, 0], sizes = [8, 16], strides = [1, 1]} : vector<8x32xf32> to vector<8x16xf32>
    %443 = vector.extract_strided_slice %441 {offsets = [0, 16], sizes = [8, 16], strides = [1, 1]} : vector<8x32xf32> to vector<8x16xf32>
    %cst_135 = arith.constant dense<0.000000e+00> : vector<8x96xf32>
    %444 = tpu.matmul %442, %0, %cst_135 {dimension_numbers = #tpu.dot_dimension_numbers<[1], [0], [0], [1], [0, 0, 1, 1], [], []>} : vector<8x16xf32>, vector<16x96xf32>, vector<8x96xf32> -> vector<8x96xf32>
    %445 = vector.broadcast %1 : vector<1x96xf32> to vector<8x96xf32>
    %446 = arith.addf %444, %445 : vector<8x96xf32>
    %cst_136 = arith.constant dense<0.000000e+00> : vector<8x96xf32>
    %447 = tpu.matmul %391, %2, %cst_136 {dimension_numbers = #tpu.dot_dimension_numbers<[1], [0], [0], [1], [0, 0, 1, 1], [], []>} : vector<8x32xf32>, vector<32x96xf32>, vector<8x96xf32> -> vector<8x96xf32>
    %448 = vector.extract_strided_slice %446 {offsets = [0, 0], sizes = [8, 32], strides = [1, 1]} : vector<8x96xf32> to vector<8x32xf32>
    %449 = vector.extract_strided_slice %447 {offsets = [0, 0], sizes = [8, 32], strides = [1, 1]} : vector<8x96xf32> to vector<8x32xf32>
    %450 = arith.addf %448, %449 : vector<8x32xf32>
    %451 = arith.negf %450 : vector<8x32xf32>
    %452 = math.exp %451 : vector<8x32xf32>
    %cst_137 = arith.constant 1.000000e+00 : f32
    %453 = vector.broadcast %cst_137 : f32 to vector<8x32xf32>
    %454 = arith.addf %453, %452 : vector<8x32xf32>
    %455 = arith.divf %453, %454 : vector<8x32xf32>
    %456 = vector.extract_strided_slice %446 {offsets = [0, 32], sizes = [8, 32], strides = [1, 1]} : vector<8x96xf32> to vector<8x32xf32>
    %457 = vector.extract_strided_slice %447 {offsets = [0, 32], sizes = [8, 32], strides = [1, 1]} : vector<8x96xf32> to vector<8x32xf32>
    %458 = arith.addf %456, %457 : vector<8x32xf32>
    %459 = arith.negf %458 : vector<8x32xf32>
    %460 = math.exp %459 : vector<8x32xf32>
    %cst_138 = arith.constant 1.000000e+00 : f32
    %461 = vector.broadcast %cst_138 : f32 to vector<8x32xf32>
    %462 = arith.addf %461, %460 : vector<8x32xf32>
    %463 = arith.divf %461, %462 : vector<8x32xf32>
    %464 = vector.extract_strided_slice %446 {offsets = [0, 64], sizes = [8, 32], strides = [1, 1]} : vector<8x96xf32> to vector<8x32xf32>
    %465 = vector.extract_strided_slice %447 {offsets = [0, 64], sizes = [8, 32], strides = [1, 1]} : vector<8x96xf32> to vector<8x32xf32>
    %466 = vector.broadcast %3 : vector<1x32xf32> to vector<8x32xf32>
    %467 = arith.addf %465, %466 : vector<8x32xf32>
    %468 = arith.mulf %455, %467 : vector<8x32xf32>
    %469 = arith.addf %464, %468 : vector<8x32xf32>
    %470 = math.tanh %469 : vector<8x32xf32>
    %cst_139 = arith.constant 1.000000e+00 : f32
    %471 = vector.broadcast %cst_139 : f32 to vector<8x32xf32>
    %472 = arith.subf %471, %463 : vector<8x32xf32>
    %473 = arith.mulf %472, %470 : vector<8x32xf32>
    %474 = arith.mulf %463, %391 : vector<8x32xf32>
    %475 = arith.addf %473, %474 : vector<8x32xf32>
    %cst_140 = arith.constant dense<0.000000e+00> : vector<8x128xf32>
    %476 = tpu.matmul %443, %4, %cst_140 {dimension_numbers = #tpu.dot_dimension_numbers<[1], [0], [0], [1], [0, 0, 1, 1], [], []>} : vector<8x16xf32>, vector<16x128xf32>, vector<8x128xf32> -> vector<8x128xf32>
    %477 = vector.broadcast %5 : vector<1x128xf32> to vector<8x128xf32>
    %478 = arith.addf %476, %477 : vector<8x128xf32>
    %479 = math.tanh %478 : vector<8x128xf32>
    %480 = vector.broadcast %14 : vector<1x128xf32> to vector<8x128xf32>
    %481 = arith.addf %479, %480 : vector<8x128xf32>
    %482 = arith.mulf %410, %481 : vector<8x128xf32>
    %cst_141 = arith.constant dense<0.000000e+00> : vector<8x8xf32>
    %483 = tpu.matmul %482, %15, %cst_141 {dimension_numbers = #tpu.dot_dimension_numbers<[1], [0], [0], [1], [0, 0, 1, 1], [], []>} : vector<8x128xf32>, vector<128x8xf32>, vector<8x8xf32> -> vector<8x8xf32>
    %484 = arith.negf %483 : vector<8x8xf32>
    %485 = math.exp %484 : vector<8x8xf32>
    %cst_142 = arith.constant 1.000000e+00 : f32
    %486 = vector.broadcast %cst_142 : f32 to vector<8x8xf32>
    %487 = arith.addf %486, %485 : vector<8x8xf32>
    %488 = arith.divf %486, %487 : vector<8x8xf32>
    %cst_143 = arith.constant dense<0.000000e+00> : vector<8x128xf32>
    %489 = tpu.matmul %488, %15, %cst_143 {dimension_numbers = #tpu.dot_dimension_numbers<[1], [1], [0], [0], [0, 0, 1, 0], [], []>} : vector<8x8xf32>, vector<128x8xf32>, vector<8x128xf32> -> vector<8x128xf32>
    %cst_144 = arith.constant 1.000000e+00 : f32
    %490 = vector.broadcast %cst_144 : f32 to vector<8x128xf32>
    %491 = arith.subf %490, %489 : vector<8x128xf32>
    %492 = arith.mulf %410, %491 : vector<8x128xf32>
    %493 = arith.mulf %481, %489 : vector<8x128xf32>
    %494 = arith.addf %492, %493 : vector<8x128xf32>
    %cst_145 = arith.constant dense<0.000000e+00> : vector<8x16xf32>
    %495 = tpu.matmul %475, %6, %cst_145 {dimension_numbers = #tpu.dot_dimension_numbers<[1], [0], [0], [1], [0, 0, 1, 1], [], []>} : vector<8x32xf32>, vector<32x16xf32>, vector<8x16xf32> -> vector<8x16xf32>
    %496 = vector.broadcast %7 : vector<1x16xf32> to vector<8x16xf32>
    %497 = arith.addf %495, %496 : vector<8x16xf32>
    %498 = math.tanh %497 : vector<8x16xf32>
    %cst_146 = arith.constant dense<0.000000e+00> : vector<8x8xf32>
    %499 = tpu.matmul %498, %13, %cst_146 {dimension_numbers = #tpu.dot_dimension_numbers<[1], [1], [0], [0], [0, 0, 1, 0], [], []>} : vector<8x16xf32>, vector<8x16xf32>, vector<8x8xf32> -> vector<8x8xf32>
    %cst_147 = arith.constant dense<0xFF800000> : vector<8xf32>
    %500 = vector.multi_reduction <maximumf>, %499, %cst_147 [1] : vector<8x8xf32> to vector<8xf32>
    %501 = vector.shape_cast %500 : vector<8xf32> to vector<8x1xf32>
    %502 = vector.broadcast %501 : vector<8x1xf32> to vector<8x8xf32>
    %503 = arith.subf %499, %502 : vector<8x8xf32>
    %504 = math.exp %503 : vector<8x8xf32>
    %cst_148 = arith.constant dense<0.000000e+00> : vector<8xf32>
    %505 = vector.multi_reduction <add>, %504, %cst_148 [1] : vector<8x8xf32> to vector<8xf32>
    %506 = vector.shape_cast %505 : vector<8xf32> to vector<8x1xf32>
    %507 = tpu.reciprocal %506 {approx = true} : vector<8x1xf32> -> vector<8x1xf32>
    %508 = vector.broadcast %507 : vector<8x1xf32> to vector<8x8xf32>
    %509 = arith.mulf %504, %508 : vector<8x8xf32>
    %cst_149 = arith.constant dense<0.000000e+00> : vector<8x128xf32>
    %510 = tpu.matmul %509, %15, %cst_149 {dimension_numbers = #tpu.dot_dimension_numbers<[1], [1], [0], [0], [0, 0, 1, 0], [], []>} : vector<8x8xf32>, vector<128x8xf32>, vector<8x128xf32> -> vector<8x128xf32>
    %cst_150 = arith.constant dense<0.000000e+00> : vector<8x32xf32>
    %511 = tpu.matmul %475, %8, %cst_150 {dimension_numbers = #tpu.dot_dimension_numbers<[1], [0], [0], [1], [0, 0, 1, 1], [], []>} : vector<8x32xf32>, vector<32x32xf32>, vector<8x32xf32> -> vector<8x32xf32>
    %512 = arith.mulf %494, %510 : vector<8x128xf32>
    %cst_151 = arith.constant dense<0.000000e+00> : vector<8x32xf32>
    %513 = tpu.matmul %512, %9, %cst_151 {dimension_numbers = #tpu.dot_dimension_numbers<[1], [0], [0], [1], [0, 0, 1, 1], [], []>} : vector<8x128xf32>, vector<128x32xf32>, vector<8x32xf32> -> vector<8x32xf32>
    %514 = arith.addf %511, %513 : vector<8x32xf32>
    %515 = vector.broadcast %10 : vector<1x32xf32> to vector<8x32xf32>
    %516 = arith.addf %514, %515 : vector<8x32xf32>
    %517 = math.tanh %516 : vector<8x32xf32>
    %cst_152 = arith.constant dense<0.000000e+00> : vector<8x32xf32>
    %518 = tpu.matmul %517, %11, %cst_152 {dimension_numbers = #tpu.dot_dimension_numbers<[1], [0], [0], [1], [0, 0, 1, 1], [], []>} : vector<8x32xf32>, vector<32x32xf32>, vector<8x32xf32> -> vector<8x32xf32>
    %519 = vector.broadcast %12 : vector<1x32xf32> to vector<8x32xf32>
    %520 = arith.addf %518, %519 : vector<8x32xf32>
    %521 = math.tanh %520 : vector<8x32xf32>
    %522 = arith.addf %438, %521 : vector<8x32xf32>
    %c6_i32 = arith.constant 6 : i32
    %523 = arith.index_cast %c6_i32 : i32 to index
    %c0_153 = arith.constant 0 : index
    %c0_154 = arith.constant 0 : index
    %524 = vector.load %arg0[%523, %c0_153, %c0_154] : memref<8x8x32xf32, #tpu.memory_space<vmem>>, vector<1x8x32xf32>
    %525 = vector.shape_cast %524 : vector<1x8x32xf32> to vector<8x32xf32>
    %526 = vector.extract_strided_slice %525 {offsets = [0, 0], sizes = [8, 16], strides = [1, 1]} : vector<8x32xf32> to vector<8x16xf32>
    %527 = vector.extract_strided_slice %525 {offsets = [0, 16], sizes = [8, 16], strides = [1, 1]} : vector<8x32xf32> to vector<8x16xf32>
    %cst_155 = arith.constant dense<0.000000e+00> : vector<8x96xf32>
    %528 = tpu.matmul %526, %0, %cst_155 {dimension_numbers = #tpu.dot_dimension_numbers<[1], [0], [0], [1], [0, 0, 1, 1], [], []>} : vector<8x16xf32>, vector<16x96xf32>, vector<8x96xf32> -> vector<8x96xf32>
    %529 = vector.broadcast %1 : vector<1x96xf32> to vector<8x96xf32>
    %530 = arith.addf %528, %529 : vector<8x96xf32>
    %cst_156 = arith.constant dense<0.000000e+00> : vector<8x96xf32>
    %531 = tpu.matmul %475, %2, %cst_156 {dimension_numbers = #tpu.dot_dimension_numbers<[1], [0], [0], [1], [0, 0, 1, 1], [], []>} : vector<8x32xf32>, vector<32x96xf32>, vector<8x96xf32> -> vector<8x96xf32>
    %532 = vector.extract_strided_slice %530 {offsets = [0, 0], sizes = [8, 32], strides = [1, 1]} : vector<8x96xf32> to vector<8x32xf32>
    %533 = vector.extract_strided_slice %531 {offsets = [0, 0], sizes = [8, 32], strides = [1, 1]} : vector<8x96xf32> to vector<8x32xf32>
    %534 = arith.addf %532, %533 : vector<8x32xf32>
    %535 = arith.negf %534 : vector<8x32xf32>
    %536 = math.exp %535 : vector<8x32xf32>
    %cst_157 = arith.constant 1.000000e+00 : f32
    %537 = vector.broadcast %cst_157 : f32 to vector<8x32xf32>
    %538 = arith.addf %537, %536 : vector<8x32xf32>
    %539 = arith.divf %537, %538 : vector<8x32xf32>
    %540 = vector.extract_strided_slice %530 {offsets = [0, 32], sizes = [8, 32], strides = [1, 1]} : vector<8x96xf32> to vector<8x32xf32>
    %541 = vector.extract_strided_slice %531 {offsets = [0, 32], sizes = [8, 32], strides = [1, 1]} : vector<8x96xf32> to vector<8x32xf32>
    %542 = arith.addf %540, %541 : vector<8x32xf32>
    %543 = arith.negf %542 : vector<8x32xf32>
    %544 = math.exp %543 : vector<8x32xf32>
    %cst_158 = arith.constant 1.000000e+00 : f32
    %545 = vector.broadcast %cst_158 : f32 to vector<8x32xf32>
    %546 = arith.addf %545, %544 : vector<8x32xf32>
    %547 = arith.divf %545, %546 : vector<8x32xf32>
    %548 = vector.extract_strided_slice %530 {offsets = [0, 64], sizes = [8, 32], strides = [1, 1]} : vector<8x96xf32> to vector<8x32xf32>
    %549 = vector.extract_strided_slice %531 {offsets = [0, 64], sizes = [8, 32], strides = [1, 1]} : vector<8x96xf32> to vector<8x32xf32>
    %550 = vector.broadcast %3 : vector<1x32xf32> to vector<8x32xf32>
    %551 = arith.addf %549, %550 : vector<8x32xf32>
    %552 = arith.mulf %539, %551 : vector<8x32xf32>
    %553 = arith.addf %548, %552 : vector<8x32xf32>
    %554 = math.tanh %553 : vector<8x32xf32>
    %cst_159 = arith.constant 1.000000e+00 : f32
    %555 = vector.broadcast %cst_159 : f32 to vector<8x32xf32>
    %556 = arith.subf %555, %547 : vector<8x32xf32>
    %557 = arith.mulf %556, %554 : vector<8x32xf32>
    %558 = arith.mulf %547, %475 : vector<8x32xf32>
    %559 = arith.addf %557, %558 : vector<8x32xf32>
    %cst_160 = arith.constant dense<0.000000e+00> : vector<8x128xf32>
    %560 = tpu.matmul %527, %4, %cst_160 {dimension_numbers = #tpu.dot_dimension_numbers<[1], [0], [0], [1], [0, 0, 1, 1], [], []>} : vector<8x16xf32>, vector<16x128xf32>, vector<8x128xf32> -> vector<8x128xf32>
    %561 = vector.broadcast %5 : vector<1x128xf32> to vector<8x128xf32>
    %562 = arith.addf %560, %561 : vector<8x128xf32>
    %563 = math.tanh %562 : vector<8x128xf32>
    %564 = vector.broadcast %14 : vector<1x128xf32> to vector<8x128xf32>
    %565 = arith.addf %563, %564 : vector<8x128xf32>
    %566 = arith.mulf %494, %565 : vector<8x128xf32>
    %cst_161 = arith.constant dense<0.000000e+00> : vector<8x8xf32>
    %567 = tpu.matmul %566, %15, %cst_161 {dimension_numbers = #tpu.dot_dimension_numbers<[1], [0], [0], [1], [0, 0, 1, 1], [], []>} : vector<8x128xf32>, vector<128x8xf32>, vector<8x8xf32> -> vector<8x8xf32>
    %568 = arith.negf %567 : vector<8x8xf32>
    %569 = math.exp %568 : vector<8x8xf32>
    %cst_162 = arith.constant 1.000000e+00 : f32
    %570 = vector.broadcast %cst_162 : f32 to vector<8x8xf32>
    %571 = arith.addf %570, %569 : vector<8x8xf32>
    %572 = arith.divf %570, %571 : vector<8x8xf32>
    %cst_163 = arith.constant dense<0.000000e+00> : vector<8x128xf32>
    %573 = tpu.matmul %572, %15, %cst_163 {dimension_numbers = #tpu.dot_dimension_numbers<[1], [1], [0], [0], [0, 0, 1, 0], [], []>} : vector<8x8xf32>, vector<128x8xf32>, vector<8x128xf32> -> vector<8x128xf32>
    %cst_164 = arith.constant 1.000000e+00 : f32
    %574 = vector.broadcast %cst_164 : f32 to vector<8x128xf32>
    %575 = arith.subf %574, %573 : vector<8x128xf32>
    %576 = arith.mulf %494, %575 : vector<8x128xf32>
    %577 = arith.mulf %565, %573 : vector<8x128xf32>
    %578 = arith.addf %576, %577 : vector<8x128xf32>
    %cst_165 = arith.constant dense<0.000000e+00> : vector<8x16xf32>
    %579 = tpu.matmul %559, %6, %cst_165 {dimension_numbers = #tpu.dot_dimension_numbers<[1], [0], [0], [1], [0, 0, 1, 1], [], []>} : vector<8x32xf32>, vector<32x16xf32>, vector<8x16xf32> -> vector<8x16xf32>
    %580 = vector.broadcast %7 : vector<1x16xf32> to vector<8x16xf32>
    %581 = arith.addf %579, %580 : vector<8x16xf32>
    %582 = math.tanh %581 : vector<8x16xf32>
    %cst_166 = arith.constant dense<0.000000e+00> : vector<8x8xf32>
    %583 = tpu.matmul %582, %13, %cst_166 {dimension_numbers = #tpu.dot_dimension_numbers<[1], [1], [0], [0], [0, 0, 1, 0], [], []>} : vector<8x16xf32>, vector<8x16xf32>, vector<8x8xf32> -> vector<8x8xf32>
    %cst_167 = arith.constant dense<0xFF800000> : vector<8xf32>
    %584 = vector.multi_reduction <maximumf>, %583, %cst_167 [1] : vector<8x8xf32> to vector<8xf32>
    %585 = vector.shape_cast %584 : vector<8xf32> to vector<8x1xf32>
    %586 = vector.broadcast %585 : vector<8x1xf32> to vector<8x8xf32>
    %587 = arith.subf %583, %586 : vector<8x8xf32>
    %588 = math.exp %587 : vector<8x8xf32>
    %cst_168 = arith.constant dense<0.000000e+00> : vector<8xf32>
    %589 = vector.multi_reduction <add>, %588, %cst_168 [1] : vector<8x8xf32> to vector<8xf32>
    %590 = vector.shape_cast %589 : vector<8xf32> to vector<8x1xf32>
    %591 = tpu.reciprocal %590 {approx = true} : vector<8x1xf32> -> vector<8x1xf32>
    %592 = vector.broadcast %591 : vector<8x1xf32> to vector<8x8xf32>
    %593 = arith.mulf %588, %592 : vector<8x8xf32>
    %cst_169 = arith.constant dense<0.000000e+00> : vector<8x128xf32>
    %594 = tpu.matmul %593, %15, %cst_169 {dimension_numbers = #tpu.dot_dimension_numbers<[1], [1], [0], [0], [0, 0, 1, 0], [], []>} : vector<8x8xf32>, vector<128x8xf32>, vector<8x128xf32> -> vector<8x128xf32>
    %cst_170 = arith.constant dense<0.000000e+00> : vector<8x32xf32>
    %595 = tpu.matmul %559, %8, %cst_170 {dimension_numbers = #tpu.dot_dimension_numbers<[1], [0], [0], [1], [0, 0, 1, 1], [], []>} : vector<8x32xf32>, vector<32x32xf32>, vector<8x32xf32> -> vector<8x32xf32>
    %596 = arith.mulf %578, %594 : vector<8x128xf32>
    %cst_171 = arith.constant dense<0.000000e+00> : vector<8x32xf32>
    %597 = tpu.matmul %596, %9, %cst_171 {dimension_numbers = #tpu.dot_dimension_numbers<[1], [0], [0], [1], [0, 0, 1, 1], [], []>} : vector<8x128xf32>, vector<128x32xf32>, vector<8x32xf32> -> vector<8x32xf32>
    %598 = arith.addf %595, %597 : vector<8x32xf32>
    %599 = vector.broadcast %10 : vector<1x32xf32> to vector<8x32xf32>
    %600 = arith.addf %598, %599 : vector<8x32xf32>
    %601 = math.tanh %600 : vector<8x32xf32>
    %cst_172 = arith.constant dense<0.000000e+00> : vector<8x32xf32>
    %602 = tpu.matmul %601, %11, %cst_172 {dimension_numbers = #tpu.dot_dimension_numbers<[1], [0], [0], [1], [0, 0, 1, 1], [], []>} : vector<8x32xf32>, vector<32x32xf32>, vector<8x32xf32> -> vector<8x32xf32>
    %603 = vector.broadcast %12 : vector<1x32xf32> to vector<8x32xf32>
    %604 = arith.addf %602, %603 : vector<8x32xf32>
    %605 = math.tanh %604 : vector<8x32xf32>
    %606 = arith.addf %522, %605 : vector<8x32xf32>
    %c7_i32 = arith.constant 7 : i32
    %607 = arith.index_cast %c7_i32 : i32 to index
    %c0_173 = arith.constant 0 : index
    %c0_174 = arith.constant 0 : index
    %608 = vector.load %arg0[%607, %c0_173, %c0_174] : memref<8x8x32xf32, #tpu.memory_space<vmem>>, vector<1x8x32xf32>
    %609 = vector.shape_cast %608 : vector<1x8x32xf32> to vector<8x32xf32>
    %610 = vector.extract_strided_slice %609 {offsets = [0, 0], sizes = [8, 16], strides = [1, 1]} : vector<8x32xf32> to vector<8x16xf32>
    %611 = vector.extract_strided_slice %609 {offsets = [0, 16], sizes = [8, 16], strides = [1, 1]} : vector<8x32xf32> to vector<8x16xf32>
    %cst_175 = arith.constant dense<0.000000e+00> : vector<8x96xf32>
    %612 = tpu.matmul %610, %0, %cst_175 {dimension_numbers = #tpu.dot_dimension_numbers<[1], [0], [0], [1], [0, 0, 1, 1], [], []>} : vector<8x16xf32>, vector<16x96xf32>, vector<8x96xf32> -> vector<8x96xf32>
    %613 = vector.broadcast %1 : vector<1x96xf32> to vector<8x96xf32>
    %614 = arith.addf %612, %613 : vector<8x96xf32>
    %cst_176 = arith.constant dense<0.000000e+00> : vector<8x96xf32>
    %615 = tpu.matmul %559, %2, %cst_176 {dimension_numbers = #tpu.dot_dimension_numbers<[1], [0], [0], [1], [0, 0, 1, 1], [], []>} : vector<8x32xf32>, vector<32x96xf32>, vector<8x96xf32> -> vector<8x96xf32>
    %616 = vector.extract_strided_slice %614 {offsets = [0, 0], sizes = [8, 32], strides = [1, 1]} : vector<8x96xf32> to vector<8x32xf32>
    %617 = vector.extract_strided_slice %615 {offsets = [0, 0], sizes = [8, 32], strides = [1, 1]} : vector<8x96xf32> to vector<8x32xf32>
    %618 = arith.addf %616, %617 : vector<8x32xf32>
    %619 = arith.negf %618 : vector<8x32xf32>
    %620 = math.exp %619 : vector<8x32xf32>
    %cst_177 = arith.constant 1.000000e+00 : f32
    %621 = vector.broadcast %cst_177 : f32 to vector<8x32xf32>
    %622 = arith.addf %621, %620 : vector<8x32xf32>
    %623 = arith.divf %621, %622 : vector<8x32xf32>
    %624 = vector.extract_strided_slice %614 {offsets = [0, 32], sizes = [8, 32], strides = [1, 1]} : vector<8x96xf32> to vector<8x32xf32>
    %625 = vector.extract_strided_slice %615 {offsets = [0, 32], sizes = [8, 32], strides = [1, 1]} : vector<8x96xf32> to vector<8x32xf32>
    %626 = arith.addf %624, %625 : vector<8x32xf32>
    %627 = arith.negf %626 : vector<8x32xf32>
    %628 = math.exp %627 : vector<8x32xf32>
    %cst_178 = arith.constant 1.000000e+00 : f32
    %629 = vector.broadcast %cst_178 : f32 to vector<8x32xf32>
    %630 = arith.addf %629, %628 : vector<8x32xf32>
    %631 = arith.divf %629, %630 : vector<8x32xf32>
    %632 = vector.extract_strided_slice %614 {offsets = [0, 64], sizes = [8, 32], strides = [1, 1]} : vector<8x96xf32> to vector<8x32xf32>
    %633 = vector.extract_strided_slice %615 {offsets = [0, 64], sizes = [8, 32], strides = [1, 1]} : vector<8x96xf32> to vector<8x32xf32>
    %634 = vector.broadcast %3 : vector<1x32xf32> to vector<8x32xf32>
    %635 = arith.addf %633, %634 : vector<8x32xf32>
    %636 = arith.mulf %623, %635 : vector<8x32xf32>
    %637 = arith.addf %632, %636 : vector<8x32xf32>
    %638 = math.tanh %637 : vector<8x32xf32>
    %cst_179 = arith.constant 1.000000e+00 : f32
    %639 = vector.broadcast %cst_179 : f32 to vector<8x32xf32>
    %640 = arith.subf %639, %631 : vector<8x32xf32>
    %641 = arith.mulf %640, %638 : vector<8x32xf32>
    %642 = arith.mulf %631, %559 : vector<8x32xf32>
    %643 = arith.addf %641, %642 : vector<8x32xf32>
    %cst_180 = arith.constant dense<0.000000e+00> : vector<8x128xf32>
    %644 = tpu.matmul %611, %4, %cst_180 {dimension_numbers = #tpu.dot_dimension_numbers<[1], [0], [0], [1], [0, 0, 1, 1], [], []>} : vector<8x16xf32>, vector<16x128xf32>, vector<8x128xf32> -> vector<8x128xf32>
    %645 = vector.broadcast %5 : vector<1x128xf32> to vector<8x128xf32>
    %646 = arith.addf %644, %645 : vector<8x128xf32>
    %647 = math.tanh %646 : vector<8x128xf32>
    %648 = vector.broadcast %14 : vector<1x128xf32> to vector<8x128xf32>
    %649 = arith.addf %647, %648 : vector<8x128xf32>
    %650 = arith.mulf %578, %649 : vector<8x128xf32>
    %cst_181 = arith.constant dense<0.000000e+00> : vector<8x8xf32>
    %651 = tpu.matmul %650, %15, %cst_181 {dimension_numbers = #tpu.dot_dimension_numbers<[1], [0], [0], [1], [0, 0, 1, 1], [], []>} : vector<8x128xf32>, vector<128x8xf32>, vector<8x8xf32> -> vector<8x8xf32>
    %652 = arith.negf %651 : vector<8x8xf32>
    %653 = math.exp %652 : vector<8x8xf32>
    %cst_182 = arith.constant 1.000000e+00 : f32
    %654 = vector.broadcast %cst_182 : f32 to vector<8x8xf32>
    %655 = arith.addf %654, %653 : vector<8x8xf32>
    %656 = arith.divf %654, %655 : vector<8x8xf32>
    %cst_183 = arith.constant dense<0.000000e+00> : vector<8x128xf32>
    %657 = tpu.matmul %656, %15, %cst_183 {dimension_numbers = #tpu.dot_dimension_numbers<[1], [1], [0], [0], [0, 0, 1, 0], [], []>} : vector<8x8xf32>, vector<128x8xf32>, vector<8x128xf32> -> vector<8x128xf32>
    %cst_184 = arith.constant 1.000000e+00 : f32
    %658 = vector.broadcast %cst_184 : f32 to vector<8x128xf32>
    %659 = arith.subf %658, %657 : vector<8x128xf32>
    %660 = arith.mulf %578, %659 : vector<8x128xf32>
    %661 = arith.mulf %649, %657 : vector<8x128xf32>
    %662 = arith.addf %660, %661 : vector<8x128xf32>
    %cst_185 = arith.constant dense<0.000000e+00> : vector<8x16xf32>
    %663 = tpu.matmul %643, %6, %cst_185 {dimension_numbers = #tpu.dot_dimension_numbers<[1], [0], [0], [1], [0, 0, 1, 1], [], []>} : vector<8x32xf32>, vector<32x16xf32>, vector<8x16xf32> -> vector<8x16xf32>
    %664 = vector.broadcast %7 : vector<1x16xf32> to vector<8x16xf32>
    %665 = arith.addf %663, %664 : vector<8x16xf32>
    %666 = math.tanh %665 : vector<8x16xf32>
    %cst_186 = arith.constant dense<0.000000e+00> : vector<8x8xf32>
    %667 = tpu.matmul %666, %13, %cst_186 {dimension_numbers = #tpu.dot_dimension_numbers<[1], [1], [0], [0], [0, 0, 1, 0], [], []>} : vector<8x16xf32>, vector<8x16xf32>, vector<8x8xf32> -> vector<8x8xf32>
    %cst_187 = arith.constant dense<0xFF800000> : vector<8xf32>
    %668 = vector.multi_reduction <maximumf>, %667, %cst_187 [1] : vector<8x8xf32> to vector<8xf32>
    %669 = vector.shape_cast %668 : vector<8xf32> to vector<8x1xf32>
    %670 = vector.broadcast %669 : vector<8x1xf32> to vector<8x8xf32>
    %671 = arith.subf %667, %670 : vector<8x8xf32>
    %672 = math.exp %671 : vector<8x8xf32>
    %cst_188 = arith.constant dense<0.000000e+00> : vector<8xf32>
    %673 = vector.multi_reduction <add>, %672, %cst_188 [1] : vector<8x8xf32> to vector<8xf32>
    %674 = vector.shape_cast %673 : vector<8xf32> to vector<8x1xf32>
    %675 = tpu.reciprocal %674 {approx = true} : vector<8x1xf32> -> vector<8x1xf32>
    %676 = vector.broadcast %675 : vector<8x1xf32> to vector<8x8xf32>
    %677 = arith.mulf %672, %676 : vector<8x8xf32>
    %cst_189 = arith.constant dense<0.000000e+00> : vector<8x128xf32>
    %678 = tpu.matmul %677, %15, %cst_189 {dimension_numbers = #tpu.dot_dimension_numbers<[1], [1], [0], [0], [0, 0, 1, 0], [], []>} : vector<8x8xf32>, vector<128x8xf32>, vector<8x128xf32> -> vector<8x128xf32>
    %cst_190 = arith.constant dense<0.000000e+00> : vector<8x32xf32>
    %679 = tpu.matmul %643, %8, %cst_190 {dimension_numbers = #tpu.dot_dimension_numbers<[1], [0], [0], [1], [0, 0, 1, 1], [], []>} : vector<8x32xf32>, vector<32x32xf32>, vector<8x32xf32> -> vector<8x32xf32>
    %680 = arith.mulf %662, %678 : vector<8x128xf32>
    %cst_191 = arith.constant dense<0.000000e+00> : vector<8x32xf32>
    %681 = tpu.matmul %680, %9, %cst_191 {dimension_numbers = #tpu.dot_dimension_numbers<[1], [0], [0], [1], [0, 0, 1, 1], [], []>} : vector<8x128xf32>, vector<128x32xf32>, vector<8x32xf32> -> vector<8x32xf32>
    %682 = arith.addf %679, %681 : vector<8x32xf32>
    %683 = vector.broadcast %10 : vector<1x32xf32> to vector<8x32xf32>
    %684 = arith.addf %682, %683 : vector<8x32xf32>
    %685 = math.tanh %684 : vector<8x32xf32>
    %cst_192 = arith.constant dense<0.000000e+00> : vector<8x32xf32>
    %686 = tpu.matmul %685, %11, %cst_192 {dimension_numbers = #tpu.dot_dimension_numbers<[1], [0], [0], [1], [0, 0, 1, 1], [], []>} : vector<8x32xf32>, vector<32x32xf32>, vector<8x32xf32> -> vector<8x32xf32>
    %687 = vector.broadcast %12 : vector<1x32xf32> to vector<8x32xf32>
    %688 = arith.addf %686, %687 : vector<8x32xf32>
    %689 = math.tanh %688 : vector<8x32xf32>
    %690 = arith.addf %606, %689 : vector<8x32xf32>
    %c8_i32 = arith.constant 8 : i32
    %cst_193 = arith.constant 1.250000e-01 : f32
    %691 = vector.broadcast %cst_193 : f32 to vector<8x32xf32>
    %692 = arith.mulf %690, %691 : vector<8x32xf32>
    %c0_194 = arith.constant 0 : index
    %c0_195 = arith.constant 0 : index
    %693 = vector.load %arg17[%c0_194, %c0_195] : memref<8x32xf32, #tpu.memory_space<vmem>>, vector<8x32xf32>
    tpu.vector_store %arg17[%c0_194, %c0_195], %692 {strides = array<i32>} : memref<8x32xf32, #tpu.memory_space<vmem>>, vector<8x32xf32>,
    return
  }
}

module attributes {stable_mosaic.version = 11 : i64} {
  func.func @_logp_kernel(%arg0: i32, %arg1: memref<8x32xf32, #tpu.memory_space<vmem>>, %arg2: memref<128x32xf32, #tpu.memory_space<vmem>>, %arg3: memref<8x1xf32, #tpu.memory_space<vmem>>, %arg4: memref<8x128xf32, #tpu.memory_space<vmem>>) attributes {dimension_semantics = [#tpu.dimension_semantics<parallel>], iteration_bounds = array<i64: 2>, scalar_prefetch = 0 : i64, scratch_operands = 0 : i64, tpu.core_type = #tpu.core_type<tc>, window_params = [{pipeline_mode = #tpu.pipeline_mode<synchronous>, transform_indices = @transform_0, window_bounds = array<i64: 8, 32>}, {transform_indices = @transform_1, window_bounds = array<i64: 128, 32>}, {pipeline_mode = #tpu.pipeline_mode<synchronous>, transform_indices = @transform_2, window_bounds = array<i64: 8, 1>}, {transform_indices = @transform_3, window_bounds = array<i64: 8, 128>}]} {
    %c0 = arith.constant 0 : index
    %c0_0 = arith.constant 0 : index
    %0 = vector.load %arg1[%c0, %c0_0] : memref<8x32xf32, #tpu.memory_space<vmem>>, vector<8x32xf32>
    %c0_1 = arith.constant 0 : index
    %c0_2 = arith.constant 0 : index
    %1 = vector.load %arg2[%c0_1, %c0_2] : memref<128x32xf32, #tpu.memory_space<vmem>>, vector<128x32xf32>
    %cst = arith.constant dense<0.000000e+00> : vector<8x128xf32>
    %2 = tpu.matmul %0, %1, %cst {dimension_numbers = #tpu.dot_dimension_numbers<[1], [1], [0], [0], [0, 0, 1, 0], [], []>} : vector<8x32xf32>, vector<128x32xf32>, vector<8x128xf32> -> vector<8x128xf32>
    %c0_3 = arith.constant 0 : index
    %c0_4 = arith.constant 0 : index
    %3 = vector.load %arg3[%c0_3, %c0_4] : memref<8x1xf32, #tpu.memory_space<vmem>>, vector<8x1xf32>
    %4 = vector.broadcast %3 : vector<8x1xf32> to vector<8x128xf32>
    %5 = arith.subf %2, %4 : vector<8x128xf32>
    %c0_5 = arith.constant 0 : index
    %c0_6 = arith.constant 0 : index
    %6 = vector.load %arg4[%c0_5, %c0_6] : memref<8x128xf32, #tpu.memory_space<vmem>>, vector<8x128xf32>
    tpu.vector_store %arg4[%c0_5, %c0_6], %5 {strides = array<i32>} : memref<8x128xf32, #tpu.memory_space<vmem>>, vector<8x128xf32>,
    return
  }
  func.func @transform_0(%arg0: i32) -> (i32, i32) {
    %c0_i32 = arith.constant 0 : i32
    %c0_i32_0 = arith.constant 0 : i32
    %c0_i32_1 = arith.constant 0 : i32
    return %c0_i32, %c0_i32_0 : i32, i32
  }
  func.func @transform_1(%arg0: i32) -> (i32, i32) {
    %c0_i32 = arith.constant 0 : i32
    %c0_i32_0 = arith.constant 0 : i32
    return %arg0, %c0_i32 : i32, i32
  }
  func.func @transform_2(%arg0: i32) -> (i32, i32) {
    %c0_i32 = arith.constant 0 : i32
    %c0_i32_0 = arith.constant 0 : i32
    %c0_i32_1 = arith.constant 0 : i32
    return %c0_i32, %c0_i32_0 : i32, i32
  }
  func.func @transform_3(%arg0: i32) -> (i32, i32) {
    %c0_i32 = arith.constant 0 : i32
    %c0_i32_0 = arith.constant 0 : i32
    return %c0_i32, %arg0 : i32, i32
  }
}

</mosaic_0001>

<bundles_post_ra>
// kernel: tile.19
= control target key start
LH: loop header
LB: loop body
LE: loop exit
PB: predicated region body
PF: predicated region fallthrough
CT: control target
= control target key end

     0   :  { %vm4_vm0 = vcmask 1047556   ;;  %s209_s14 = smov 96   ;;  %s210_s19 = smov 112   ;;  %vm6_vm1 = vcmask 130048   ;;  %vm25_vm2 = vcmask 1048448   ;;  %vm46_vm3 = vcmask 917248   ;;  %s388_s0 = inlined_call_operand.vmem [shape: f32[16,8,16], index: 0, kind: input, shape index: {}]   ;;  %s389_s1 = inlined_call_operand.vmem [shape: f32[16,128], index: 1, kind: output, shape index: {}]  }
   0x1   :  { %v172_v0 = vld [vmem:[%s388_s0 + $0x6] ss:$8 sm:$0xf]   ;;  %v167_v3 = vld [vmem:[%s388_s0 + $0x7] ss:$8 sm:$0xf]  }
   0x2   :  { %v173_v1 = vld [vmem:[%s388_s0 + $0x6] ss:$8 sm:$0xf0]   ;;  %v168_v4 = vld [vmem:[%s388_s0 + $0x7] ss:$8 sm:$0xf0]  }
   0x3   :  { %v43_v2 = vsel %vm4_vm0, %v173_v1, %v172_v0  ;;  %v22_v5 = vsel %vm4_vm0, %v168_v4, %v167_v3  ;;  %v174_v6 = vld [vmem:[%s388_s0 + $0x46] ss:$8 sm:$0xf]   ;;  %v169_v9 = vld [vmem:[%s388_s0 + $0x47] ss:$8 sm:$0xf]  }
   0x4   :  { %44 = vrot.lane.b32.xlu1 %v43_v2, %s209_s14  ;;  %v175_v7 = vld [vmem:[%s388_s0 + $0x46] ss:$8 sm:$0xf0]   ;;  %23 = vrot.lane.b32.xlu0 %v22_v5, %s210_s19  ;;  %v170_v10 = vld [vmem:[%s388_s0 + $0x47] ss:$8 sm:$0xf0]  }
   0x5   :  { %v53_v8 = vsel %vm4_vm0, %v175_v7, %v174_v6  ;;  %v32_v11 = vsel %vm4_vm0, %v170_v10, %v169_v9  ;;  %v179_v12 = vld [vmem:[%s388_s0 + $0x45] ss:$8 sm:$0xf]   ;;  %v184_v18 = vld [vmem:[%s388_s0 + $0x44] ss:$8 sm:$0xf]  }
   0x6   :  { %v180_v13 = vld [vmem:[%s388_s0 + $0x45] ss:$8 sm:$0xf0]   ;;  %v185_v19 = vld [vmem:[%s388_s0 + $0x44] ss:$8 sm:$0xf0]  }
   0x7   :  { %v177_v14 = vld [vmem:[%s388_s0 + $0x5] ss:$8 sm:$0xf]   ;;  %v74_v16 = vsel %vm4_vm0, %v180_v13, %v179_v12  ;;  %v182_v20 = vld [vmem:[%s388_s0 + $0x4] ss:$8 sm:$0xf]   ;;  %v95_v22 = vsel %vm4_vm0, %v185_v19, %v184_v18 }
   0x8   :  { %54 = vrot.lane.b32.xlu1 %v53_v8, %s209_s14  ;;  %v178_v15 = vld [vmem:[%s388_s0 + $0x5] ss:$8 sm:$0xf0]   ;;  %33 = vrot.lane.b32.xlu0 %v32_v11, %s210_s19  ;;  %v183_v21 = vld [vmem:[%s388_s0 + $0x4] ss:$8 sm:$0xf0]  }
   0x9   :  { %v64_v17 = vsel %vm4_vm0, %v178_v15, %v177_v14  ;;  %s211_s11 = smov 80   ;;  %v85_v23 = vsel %vm4_vm0, %v183_v21, %v182_v20  ;;  %v189_v24 = vld [vmem:[%s388_s0 + $0x43] ss:$8 sm:$0xf]   ;;  %s212_s20 = smov 64   ;;  %vm67_vm4 = vcmask 786048  }
   0xa   :  { %v190_v25 = vld [vmem:[%s388_s0 + $0x43] ss:$8 sm:$0xf0]   ;;  %v194_v28 = vld [vmem:[%s388_s0 + $0x42] ss:$8 sm:$0xf]  }
   0xb   :  { %v187_v26 = vld [vmem:[%s388_s0 + $0x3] ss:$8 sm:$0xf]   ;;  %v195_v29 = vld [vmem:[%s388_s0 + $0x42] ss:$8 sm:$0xf0]   ;;  %v116_v30 = vsel %vm4_vm0, %v190_v25, %v189_v24 }
   0xc   :  { %75 = vrot.lane.b32.xlu1 %v74_v16, %s211_s11  ;;  %65 = vrot.lane.b32.xlu0 %v64_v17, %s211_s11  ;;  %v188_v27 = vld [vmem:[%s388_s0 + $0x3] ss:$8 sm:$0xf0]   ;;  %v192_v31 = vld [vmem:[%s388_s0 + $0x2] ss:$8 sm:$0xf]   ;;  %v137_v40 = vsel %vm4_vm0, %v195_v29, %v194_v28 }
   0xd   :  { %v2_v32 = vld [vmem:[%s388_s0] ss:$8 sm:$0xf]   ;;  %v106_v33 = vsel %vm4_vm0, %v188_v27, %v187_v26  ;;  %v193_v36 = vld [vmem:[%s388_s0 + $0x2] ss:$8 sm:$0xf0]  }
   0xe   :  { %v3_v34 = vld [vmem:[%s388_s0] ss:$8 sm:$0xf0]   ;;  %s213_s8 = smov 48   ;;  %v127_v41 = vsel %vm4_vm0, %v193_v36, %v192_v31  ;;  %s215_s21 = smov 16   ;;  %vm88_vm5 = vcmask 654848  }
   0xf   :  { %v164_v35 = vld [vmem:[%s388_s0 + $0x40] ss:$8 sm:$0xf]   ;;  %v5_v37 = vsel %vm4_vm0, %v3_v34, %v2_v32  ;;  %v199_v42 = vld [vmem:[%s388_s0 + $0x41] ss:$8 sm:$0xf]  }
  0x10   :  { %96 = vrot.lane.b32.xlu1 %v95_v22, %s212_s20  ;;  %86 = vrot.lane.b32.xlu0 %v85_v23, %s212_s20  ;;  %v165_v38 = vld [vmem:[%s388_s0 + $0x40] ss:$8 sm:$0xf0]   ;;  %7 = vst.msk [vmem:[%s389_s1] sm:$0xff] %vm6_vm1, %v5_v37   ;;  %vm109_vm6 = vcmask 523648   ;;  %vm130_vm7 = vcmask 392448  }
  0x11   :  { %v13_v39 = vsel %vm4_vm0, %v165_v38, %v164_v35  ;;  %v200_v43 = vld [vmem:[%s388_s0 + $0x41] ss:$8 sm:$0xf0]   ;;  %vm151_vm8 = vcmask 261248  }
  0x12   :  { %166 = vst.msk [vmem:[%s389_s1 + $0x8] sm:$0xff] %vm6_vm1, %v13_v39   ;;  %v197_v44 = vld [vmem:[%s388_s0 + $0x1] ss:$8 sm:$0xf]   ;;  %v158_v46 = vsel %vm4_vm0, %v200_v43, %v199_v42 }
  0x13   :  { %v198_v45 = vld [vmem:[%s388_s0 + $0x1] ss:$8 sm:$0xf0]   ;;  %s214_s0 = smov 32  }
  0x14   :  { %117 = vrot.lane.b32.xlu1 %v116_v30, %s213_s8  ;;  %107 = vrot.lane.b32.xlu0 %v106_v33, %s213_s8  ;;  %v148_v47 = vsel %vm4_vm0, %v198_v45, %v197_v44 }
  0x18   :  { %138 = vrot.lane.b32.xlu1 %v137_v40, %s214_s0  ;;  %128 = vrot.lane.b32.xlu0 %v127_v41, %s214_s0 }
  0x1c   :  { %159 = vrot.lane.b32.xlu1 %v158_v46, %s215_s21  ;;  %149 = vrot.lane.b32.xlu0 %v148_v47, %s215_s21 }
  0x76   :  { %v45_v48 = vpop.permute.xlu1 %44   ;;  %v24_v49 = vpop.permute.xlu0 %23  }
  0x77   :  { %26 = vst.msk [vmem:[%s389_s1] sm:$0xff] %vm25_vm2, %v24_v49  }
  0x78   :  { %47 = vst.msk [vmem:[%s389_s1] sm:$0xff] %vm46_vm3, %v45_v48  }
  0x7a   :  { %v55_v50 = vpop.permute.xlu1 %54   ;;  %v34_v51 = vpop.permute.xlu0 %33  }
  0x7b   :  { %171 = vst.msk [vmem:[%s389_s1 + $0x8] sm:$0xff] %vm25_vm2, %v34_v51  }
  0x7c   :  { %176 = vst.msk [vmem:[%s389_s1 + $0x8] sm:$0xff] %vm46_vm3, %v55_v50  }
  0x7e   :  { %v76_v52 = vpop.permute.xlu1 %75   ;;  %v66_v53 = vpop.permute.xlu0 %65  }
  0x7f   :  { %181 = vst.msk [vmem:[%s389_s1 + $0x8] sm:$0xff] %vm67_vm4, %v76_v52   ;;  %68 = vst.msk [vmem:[%s389_s1] sm:$0xff] %vm67_vm4, %v66_v53  }
  0x82   :  { %v97_v54 = vpop.permute.xlu1 %96   ;;  %v87_v55 = vpop.permute.xlu0 %86  }
  0x83   :  { %186 = vst.msk [vmem:[%s389_s1 + $0x8] sm:$0xff] %vm88_vm5, %v97_v54   ;;  %89 = vst.msk [vmem:[%s389_s1] sm:$0xff] %vm88_vm5, %v87_v55  }
  0x86   :  { %v118_v56 = vpop.permute.xlu1 %117   ;;  %v108_v57 = vpop.permute.xlu0 %107  }
  0x87   :  { %191 = vst.msk [vmem:[%s389_s1 + $0x8] sm:$0xff] %vm109_vm6, %v118_v56   ;;  %110 = vst.msk [vmem:[%s389_s1] sm:$0xff] %vm109_vm6, %v108_v57  }
  0x8a   :  { %v139_v58 = vpop.permute.xlu1 %138   ;;  %v129_v59 = vpop.permute.xlu0 %128  }
  0x8b   :  { %196 = vst.msk [vmem:[%s389_s1 + $0x8] sm:$0xff] %vm130_vm7, %v139_v58   ;;  %131 = vst.msk [vmem:[%s389_s1] sm:$0xff] %vm130_vm7, %v129_v59  }
  0x8e   :  { %v160_v60 = vpop.permute.xlu1 %159   ;;  %v150_v61 = vpop.permute.xlu0 %149  }
  0x8f   :  { %201 = vst.msk [vmem:[%s389_s1 + $0x8] sm:$0xff] %vm151_vm8, %v160_v60   ;;  %152 = vst.msk [vmem:[%s389_s1] sm:$0xff] %vm151_vm8, %v150_v61  }

// kernel: kvmn_forward_pallas.5
= control target key start
LH: loop header
LB: loop body
LE: loop exit
PB: predicated region body
PF: predicated region fallthrough
CT: control target
= control target key end

     0   :  { %8 = vsyncpa [#allocation3], 0  ;;  %s1281_s0 = inlined_call_operand.hbm [shape: f32[256,32], index: 0, kind: input, shape index: {}]   ;;  %s1282_s1 = inlined_call_operand.hbm [shape: f32[32,32], index: 1, kind: input, shape index: {}]   ;;  %s1283_s2 = inlined_call_operand.hbm [shape: f32[1,32], index: 2, kind: input, shape index: {}]   ;;  %s1284_s3 = inlined_call_operand.hbm [shape: f32[256,32], index: 3, kind: output, shape index: {}]  }
   0x1   :  { %10 = vsyncpa [#allocation3 + $0x1], 0 }
   0x2   :  { %11 = vsyncpa [#allocation6], 0 }
   0x3   :  { %12 = vsyncpa [#allocation4], 0 }
   0x4   :  { %14 = vsyncpa [#allocation4 + $0x1], 0  ;;  %s967_s12 = smov 0   ;;  %s969_s13 = smov 0  }
   0x5   :  { %s971_s14 = smov 0   ;;  %s973_s15 = smov 0  }
   0x6 LB: > { %s988_s16 = sadd.s32 4294967295, %s937_s15   ;;  %s577_s17 = sadd.s32 4294967294, %s937_s15   ;;  %s937_s15 = sphi %s973_s15, %s1304_s15   ;;  %s933_s14 = sphi %s971_s14, %s1303_s14   ;;  %s929_s13 = sphi %s969_s13, %s1302_s13   ;;  %s925_s12 = sphi %s967_s12, %s1301_s12  }
   0x7   : > { %p40_p0 = scmp.ne.s32.totalorder %s929_s13, %s925_s12  ;;  %p1285_p1 = scmp.eq.s32.totalorder %s988_s16, 0 }
   0x8   : > { %p112_p3 = scmp.eq.s32.totalorder %s577_s17, 1  ;;  %p578_p5 = scmp.ge.s32.totalorder %s937_s15, 1 }
   0x9   : > { %p997_p4 = por %p1285_p1, %p40_p0  ;;  %p119_p7 = scmp.lt.s32.totalorder %s937_s15, 3 }
   0xa   : > { %p1002_p6 = por %p112_p3, %p40_p0  ;;  %s939_s21 = smov [#allocation5]  }
   0xb   : > { %s1288_s18 = scalar_select %p997_p4, 1, 0 }
   0xc   : > { %s1289_s19 = scalar_select %p1002_p6, 1, 0 }
   0xd   : > { %p1007_p8 = pnand %p578_p5, %p119_p7  ;;  %s131_s22 = sshll.u32 %s939_s21, 4  ;;  %s1011_s22 = int_to_ptr.vmem [resolvable:$true] %s131_s22 }
   0xe   : > { %s940_s24 = smov [#allocation7]   ;;  %s781_s28 = scalar_lea.hbm %s1282_s1, 512 }
   0xf   : > { %p690_p9 = pneg %p1007_p8  ;;  %s145_s25 = sshll.u32 %s940_s24, 4  ;;  %s1022_s25 = int_to_ptr.vmem [resolvable:$true] %s145_s25 }
  0x10   : > { %p782_p12 = scmp.ne.s32.totalorder %s1282_s1, %s781_s28  ;;  %p788_p5 = scmp.lt.u32.totalorder %s781_s28, %s1282_s1 }
  0x11   : > { %p1018_p11 = pnand %p690_p9, %p1285_p1 }
  0x13   : > { %p783_p13 = pneg %p1018_p11 }
  0x15   : > { %p784_p0 = pnand %p783_p13, %p782_p12 }
  0x17   : > { %p785_p3 = pneg %p784_p0 }
  0x19   : > { %p790_p7 = pnand %p788_p5, %p785_p3 }
  0x1b   : > { %793 = shalt.err (!%p790_p7)
}
  0x1c   : > { %s794_s6 = scalar_lea.vmem %s1011_s22, 512  ;;  %p802_p2 = scmp.lt.s32.totalorder %s1011_s22, %s1011_s22 }
  0x1d   : > { %p795_p9 = scmp.ne.s32.totalorder %s1011_s22, %s794_s6  ;;  %p803_p12 = scmp.lt.s32.totalorder %s794_s6, %s794_s6 }
  0x1f   : > { %p797_p10 = pnand %p795_p9, %p783_p13  ;;  %p804_p0 = por %p803_p12, %p802_p2 }
  0x21   : > { %p798_p1 = pneg %p797_p10 }
  0x23   : > { %p805_p6 = pnand %p804_p0, %p798_p1 }
  0x25   : > { %808 = shalt.err (!%p805_p6)
}
  0x26   : > { %s941_s7 = smov 128   ;;  %s942_s8 = smov 8  }
  0x27   : > { %693 = dma.hbm_to_vmem [thread:$0]  (!%p1018_p11), %s1282_s1, 512, %s1011_s22, [#allocation6], %s941_s7, %s941_s7, %s942_s8  }
  0x28   : > { %s809_s21 = scalar_lea.hbm %s1283_s2, 16 }
  0x29   : > { %p810_p1 = scmp.ne.s32.totalorder %s1283_s2, %s809_s21  ;;  %p816_p10 = scmp.lt.u32.totalorder %s809_s21, %s1283_s2 }
  0x2b   : > { %p812_p2 = pnand %p810_p1, %p783_p13 }
  0x2d   : > { %p813_p6 = pneg %p812_p2 }
  0x2f   : > { %p818_p3 = pnand %p816_p10, %p813_p6 }
  0x31   : > { %821 = shalt.err (!%p818_p3)
}
  0x32   : > { %s822_s22 = scalar_lea.vmem %s1022_s25, 16  ;;  %s829_s29 = scalar_lea.vmem %s1022_s25, 32 }
  0x33   : > { %p823_p5 = scmp.ne.s32.totalorder %s1022_s25, %s822_s22  ;;  %p830_p12 = scmp.lt.s32.totalorder %s1022_s25, %s1022_s25 }
  0x34   : > { %p831_p0 = scmp.lt.s32.totalorder %s829_s29, %s822_s22 }
  0x35   : > { %p825_p7 = pnand %p823_p5, %p783_p13 }
  0x36   : > { %p832_p1 = por %p831_p0, %p830_p12 }
  0x37   : > { %p826_p9 = pneg %p825_p7 }
  0x39   : > { %p833_p2 = pnand %p832_p1, %p826_p9 }
  0x3b   : > { %836 = shalt.err (!%p833_p2)
}
  0x3c   : > { %696 = dma.hbm_to_vmem [thread:$0]  (!%p1018_p11), %s1283_s2, 16, %s1022_s25, [#allocation6]  }
  0x3d   : > { %s1081_s5 = sadd.s32 1, %s937_s15   ;;  %s27_s23 = sadd.s32 1, %s933_s14 }
  0x3e   : > { %s24_s6 = ssub.s32 %s937_s15, %s1081_s5  ;;  %p34_p13 = scmp.ne.s32.totalorder %s933_s14, %s929_s13 }
  0x3f   : > { %p25_p6 = scmp.eq.s32.totalorder %s24_s6, 0  ;;  %p35_p10 = scmp.eq.s32.totalorder %s937_s15, 0 }
  0x40   : > { %p1292_p3 = scmp.eq.s32.totalorder %s988_s16, 1  ;;  %p707_p7 = scmp.lt.s32.totalorder %s937_s15, 2 }
  0x41   : > { %s1097_s10 = scalar_select %p25_p6, %s933_s14, %s27_s23  }
  0x42   : > { %p1091_p5 = por %p1292_p3, %p34_p13  ;;  %p36_p9 = por %p35_p10, %p34_p13 }
  0x43   : > { %s156_s11 = sand.u32 1, %s933_s14   ;;  %s612_s25 = sshll.u32 %s937_s15, 11 }
  0x44   : > { %s1293_s9 = scalar_select %p1091_p5, 1, 0 }
  0x45   : > { %s582_s17 = sshll.u32 %s156_s11, 7  ;;  %s1104_s26 = scalar_lea.hbm %s1281_s0, %s612_s25 }
  0x46   : > { %s160_s27 = scalar_lea.vmem [#allocation2], %s582_s17  ;;  %p1108_p11 = pnand %p707_p7, %p36_p9 }
  0x47   : > { %s167_s28 = sshll.u32 %s160_s27, 4  ;;  %s1112_s29 = scalar_lea.sflag [#allocation3], %s156_s11  ;;  %s1106_s28 = int_to_ptr.vmem [resolvable:$true] %s167_s28 }
  0x48   : > { %s837_s30 = scalar_lea.hbm %s1104_s26, 2048  ;;  %p839_p0 = pneg %p1108_p11 }
  0x49   : > { %p838_p12 = scmp.ne.s32.totalorder %s1104_s26, %s837_s30  ;;  %s842_s6 = scalar_lea.hbm %s1281_s0, 4096 }
  0x4a   : > { %p843_p13 = scmp.lt.u32.totalorder %s1104_s26, %s1281_s0  ;;  %p844_p6 = scmp.lt.u32.totalorder %s842_s6, %s837_s30 }
  0x4b   : > { %p840_p1 = pnand %p839_p0, %p838_p12  ;;  %p846_p3 = scmp.lt.u32.totalorder %s837_s30, %s1104_s26 }
  0x4c   : > { %p845_p10 = por %p844_p6, %p843_p13 }
  0x4d   : > { %p841_p2 = pneg %p840_p1 }
  0x4e   : > { %p847_p7 = por %p846_p3, %p845_p10 }
  0x50   : > { %p848_p9 = pnand %p847_p7, %p841_p2 }
  0x52   : > { %851 = shalt.err (!%p848_p9)
}
  0x53   : > { %s852_s11 = scalar_lea.vmem %s1106_s28, 2048  ;;  %s943_s21 = smov [#allocation2]  }
  0x54   : > { %p853_p12 = scmp.ne.s32.totalorder %s1106_s28, %s852_s11  ;;  %s857_s24 = sshll.u32 %s943_s21, 4  ;;  %s858_s24 = int_to_ptr.vmem [resolvable:$false] %s857_s24 }
  0x55   : > { %s859_s27 = scalar_lea.vmem %s858_s24, 4096  ;;  %p860_p4 = scmp.lt.s32.totalorder %s1106_s28, %s858_s24 }
  0x56   : > { %p855_p1 = pnand %p853_p12, %p839_p0  ;;  %p861_p13 = scmp.lt.s32.totalorder %s859_s27, %s852_s11 }
  0x58   : > { %p856_p5 = pneg %p855_p1  ;;  %p862_p6 = por %p861_p13, %p860_p4 }
  0x5a   : > { %p863_p10 = pnand %p862_p6, %p856_p5 }
  0x5c   : > { %866 = shalt.err (!%p863_p10)
}
  0x5d   : > { %700 = dma.hbm_to_vmem [thread:$0]  (!%p1108_p11), %s1104_s26, 2048, %s1106_s28, %s1112_s29, %s941_s7, %s941_s7, %s942_s8  }
  0x5e   : > { %179 = sbr.rel (%p1007_p8) target bundleno = 372 (0x174), region = 32  ;;  %s1146_s30 = sand.u32 (!%p1007_p8), 1, %s929_s13  }
  0x5f   : > { %s586_s4 = sshll.u32 (!%p1007_p8), %s1146_s30, 7  ;;  %s182_s23 = scalar_lea.sflag (!%p1007_p8), [#allocation3], %s1146_s30 }
  0x60   : > { %s1152_s22 = scalar_lea.vmem (!%p1007_p8), [#allocation2], %s586_s4  ;;  %p1295_p4 = scmp.ne.s32.totalorder (!%p1007_p8), %s1288_s18, 0 }
  0x65   : > { %912 = dma.done.wait (%p1295_p4), %s182_s23, 2048  }
  0x66   : > { %914 = vsyncadd (%p1295_p4), %s182_s23, 4294965248  ;;  %p1296_p5 = scmp.eq.s32.totalorder %s988_s16, 0 }
  0x68   : > { %916 = dma.done.wait (%p1296_p5), [#allocation6], 528   ;;  %p1297_p8 = pmov %p1296_p5 }
  0x69   : > { %vm245_vm0 = vcmask 261120   ;;  %v234_v0 = vld [vmem:[#allocation5] sm:$0xff]  ;;  %v235_v1 = vld [vmem:[#allocation5 + $0x8] sm:$0xff]  ;;  %v236_v2 = vld [vmem:[#allocation5 + $0x10] sm:$0xff]  ;;  %s1196_s18 = scalar_lea.vmem [#allocation8], %s586_s4  ;;  %s613_s20 = sshll.u32 %s988_s16, 11 }
  0x6a   : > { %918 = vsyncadd (%p1297_p8), [#allocation6], 4294966768  ;;  %v666_v3 = vpack.c.bf16 %v235_v1, %v234_v0  ;;  %v237_v4 = vld [vmem:[#allocation5 + $0x18] sm:$0xff]  ;;  %v218_v5 = vld [vmem:[%s1152_s22] sm:$0xff]  ;;  %s485_s7 = sshll.u32 %s1196_s18, 4  ;;  %s1229_s28 = scalar_lea.hbm %s1284_s3, %s613_s20  ;;  %s1231_s7 = int_to_ptr.vmem [resolvable:$true] %s485_s7 }
  0x6b   : > { %v226_v6 = vld [vmem:[%s1152_s22 + $0x40] sm:$0xff]  ;;  %v670_v7 = vpack.c.bf16 %v237_v4, %v236_v2  ;;  %642 = vmatprep.mubr.msk.f32.mxu0 %vm245_vm0, %v218_v5  ;;  %v219_v8 = vld [vmem:[%s1152_s22 + $0x8] sm:$0xff]  ;;  %v220_v10 = vld [vmem:[%s1152_s22 + $0x10] sm:$0xff]  ;;  %s472_s16 = scalar_lea.sflag [#allocation4], %s1146_s30  ;;  %s867_s29 = scalar_lea.vmem %s1231_s7, 2048 }
  0x6c   : > { %654 = vmatprep.mubr.msk.f32.mxu1 %vm245_vm0, %v226_v6  ;;  %667 = vmatprep.subr.bf16.mxu0 %v666_v3  ;;  %v227_v9 = vld [vmem:[%s1152_s22 + $0x48] sm:$0xff]  ;;  %v228_v11 = vld [vmem:[%s1152_s22 + $0x50] sm:$0xff]  ;;  %v221_v12 = vld [vmem:[%s1152_s22 + $0x18] sm:$0xff]  ;;  %p868_p11 = scmp.ne.s32.totalorder %s1231_s7, %s867_s29  ;;  %p1298_p0 = scmp.ne.s32.totalorder %s1293_s9, 0 }
  0x6d   : > { %674 = vmatprep.subr.bf16.mxu1 %v666_v3  ;;  %669 = vmatpush3.bf16.msra.mxu0 %v666_v3  ;;  %v229_v13 = vld [vmem:[%s1152_s22 + $0x58] sm:$0xff]  ;;  %v222_v14 = vld [vmem:[%s1152_s22 + $0x20] sm:$0xff]  ;;  %v223_v16 = vld [vmem:[%s1152_s22 + $0x28] sm:$0xff]  ;;  %s944_s6 = smov [#allocation8]  }
  0x6e   : > { %676 = vmatpush3.bf16.msra.mxu1 %v666_v3  ;;  %671 = vmatprep.subr.bf16.mxu0 %v670_v7  ;;  %v230_v15 = vld [vmem:[%s1152_s22 + $0x60] sm:$0xff]  ;;  %v231_v17 = vld [vmem:[%s1152_s22 + $0x68] sm:$0xff]  ;;  %v224_v18 = vld [vmem:[%s1152_s22 + $0x30] sm:$0xff]  ;;  %p869_p2 = pnand %p868_p11, %p1298_p0  ;;  %s871_s17 = sshll.u32 %s944_s6, 4  ;;  %s872_s17 = int_to_ptr.vmem [resolvable:$false] %s871_s17 }
  0x6f   : > { %675 = vmatprep.subr.bf16.mxu1 %v670_v7  ;;  %v232_v19 = vld [vmem:[%s1152_s22 + $0x70] sm:$0xff]  ;;  %v225_v20 = vld [vmem:[%s1152_s22 + $0x38] sm:$0xff]  ;;  %v590_v22 = vld [vmem:[#allocation7] ss:$0 sm:$0xff]  ;;  %s873_s25 = scalar_lea.vmem %s872_s17, 4096  ;;  %p874_p7 = scmp.lt.s32.totalorder %s1231_s7, %s872_s17 }
  0x70   : > { %v233_v21 = vld [vmem:[%s1152_s22 + $0x78] sm:$0xff]  ;;  %p870_p3 = pneg %p869_p2  ;;  %p875_p9 = scmp.lt.s32.totalorder %s873_s25, %s867_s29 }
  0x71   : > { %673 = vmatpush3.bf16.msra.mxu0 %v670_v7 }
  0x72   : > { %677 = vmatpush3.bf16.msra.mxu1 %v670_v7  ;;  %p876_p12 = por %p875_p9, %p874_p7 }
  0x74   : > { %643 = vmatmul.mubr.msk.f32.vlgmr.msra.gmra.mrb[0].mxu0 %vm245_vm0, %v219_v8  ;;  %p877_p1 = pnand %p876_p12, %p870_p3 }
  0x75   : > { %655 = vmatmul.mubr.msk.f32.vlgmr.msra.gmra.mrb[0].mxu1 %vm245_vm0, %v227_v9  ;;  %645 = vmatprep.mubr.msk.f32.mxu0 %vm245_vm0, %v220_v10 }
  0x76   : > { %657 = vmatprep.mubr.msk.f32.mxu1 %vm245_vm0, %v228_v11 }
  0x78   : > { %646 = vmatmul.mubr.msk.f32.gmra.mrb[2].mxu0 %vm245_vm0, %v221_v12 }
  0x79   : > { %658 = vmatmul.mubr.msk.f32.gmra.mrb[2].mxu1 %vm245_vm0, %v229_v13  ;;  %648 = vmatprep.mubr.msk.f32.mxu0 %vm245_vm0, %v222_v14 }
  0x7a   : > { %660 = vmatprep.mubr.msk.f32.mxu1 %vm245_vm0, %v230_v15 }
  0x7c   : > { %649 = vmatmul.mubr.msk.f32.gmra.mrb[4].mxu0 %vm245_vm0, %v223_v16 }
  0x7d   : > { %661 = vmatmul.mubr.msk.f32.gmra.mrb[4].mxu1 %vm245_vm0, %v231_v17  ;;  %651 = vmatprep.mubr.msk.f32.mxu0 %vm245_vm0, %v224_v18 }
  0x7e   : > { %663 = vmatprep.mubr.msk.f32.mxu1 %vm245_vm0, %v232_v19 }
  0x80   : > { %652 = vmatmul.mubr.msk.f32.gmra.mrb[6].mxu0 %vm245_vm0, %v225_v20 }
  0x81   : > { %664 = vmatmul.mubr.msk.f32.gmra.mrb[6].mxu1 %vm245_vm0, %v233_v21 }
 0x147   : > { %v644_v23 = vpop.f32.mrb[0].mxu0 }
 0x148   : > { %v656_v24 = vpop.f32.mrb[0].mxu1  ;;  %v366_v25 = vadd.f32 %v644_v23, %v590_v22  ;;  %v360_v27 = vpop.f32.mrb[1].mxu0 }
 0x149   : > { %v406_v26 = vadd.f32 %v656_v24, %v590_v22  ;;  %v400_v28 = vpop.f32.mrb[1].mxu1  ;;  %v361_v29 = vadd.f32 %v590_v22, %v360_v27 }
 0x14a   : > { %v401_v30 = vadd.f32 %v590_v22, %v400_v28  ;;  %749 = vtanh.f32 %v366_v25 }
 0x14b   : > { %751 = vtanh.f32 %v406_v26  ;;  %v647_v31 = vpop.f32.mrb[2].mxu0 }
 0x14c   : > { %v659_v32 = vpop.f32.mrb[2].mxu1  ;;  %753 = vtanh.f32 %v361_v29  ;;  %v376_v33 = vadd.f32 %v647_v31, %v590_v22  ;;  %v370_v35 = vpop.f32.mrb[3].mxu0 }
 0x14d   : > { %v416_v34 = vadd.f32 %v659_v32, %v590_v22  ;;  %v410_v36 = vpop.f32.mrb[3].mxu1  ;;  %755 = vtanh.f32 %v401_v30  ;;  %v371_v37 = vadd.f32 %v590_v22, %v370_v35 }
 0x14e   : > { %v411_v38 = vadd.f32 %v590_v22, %v410_v36  ;;  %757 = vtanh.f32 %v376_v33 }
 0x14f   : > { %759 = vtanh.f32 %v416_v34  ;;  %v650_v39 = vpop.f32.mrb[4].mxu0 }
 0x150   : > { %v662_v40 = vpop.f32.mrb[4].mxu1  ;;  %761 = vtanh.f32 %v371_v37  ;;  %v386_v41 = vadd.f32 %v650_v39, %v590_v22  ;;  %v380_v43 = vpop.f32.mrb[5].mxu0 }
 0x151   : > { %v426_v42 = vadd.f32 %v662_v40, %v590_v22  ;;  %v420_v44 = vpop.f32.mrb[5].mxu1  ;;  %763 = vtanh.f32 %v411_v38  ;;  %v381_v45 = vadd.f32 %v590_v22, %v380_v43 }
 0x152   : > { %v421_v46 = vadd.f32 %v590_v22, %v420_v44  ;;  %765 = vtanh.f32 %v386_v41 }
 0x153   : > { %767 = vtanh.f32 %v426_v42  ;;  %v653_v47 = vpop.f32.mrb[6].mxu0 }
 0x154   : > { %v665_v48 = vpop.f32.mrb[6].mxu1  ;;  %v750_v49 = vpop.eup %749  ;;  %769 = vtanh.f32 %v381_v45  ;;  %v396_v50 = vadd.f32 %v653_v47, %v590_v22 }
 0x155   : > { %v436_v51 = vadd.f32 %v665_v48, %v590_v22  ;;  %v390_v52 = vpop.f32.mrb[7].mxu0  ;;  %v430_v53 = vpop.f32.mrb[7].mxu1  ;;  %456 = vst.msk [vmem:[%s1196_s18 + $0x8] sm:$0xff] %vm245_vm0, %v750_v49  ;;  %771 = vtanh.f32 %v421_v46 }
 0x156   : > { %v752_v54 = vpop.eup %751  ;;  %v391_v55 = vadd.f32 %v590_v22, %v390_v52  ;;  %v431_v56 = vadd.f32 %v590_v22, %v430_v53  ;;  %773 = vtanh.f32 %v396_v50 }
 0x157   : > { %v754_v57 = vpop.eup %753  ;;  %464 = vst.msk [vmem:[%s1196_s18 + $0x48] sm:$0xff] %vm245_vm0, %v752_v54  ;;  %775 = vtanh.f32 %v436_v51 }
 0x158   : > { %v756_v58 = vpop.eup %755  ;;  %455 = vst.msk [vmem:[%s1196_s18] sm:$0xff] %vm245_vm0, %v754_v57  ;;  %777 = vtanh.f32 %v391_v55 }
 0x159   : > { %v758_v59 = vpop.eup %757  ;;  %463 = vst.msk [vmem:[%s1196_s18 + $0x40] sm:$0xff] %vm245_vm0, %v756_v58  ;;  %779 = vtanh.f32 %v431_v56 }
 0x15a   : > { %v760_v60 = vpop.eup %759  ;;  %458 = vst.msk [vmem:[%s1196_s18 + $0x18] sm:$0xff] %vm245_vm0, %v758_v59 }
 0x15b   : > { %v762_v61 = vpop.eup %761  ;;  %466 = vst.msk [vmem:[%s1196_s18 + $0x58] sm:$0xff] %vm245_vm0, %v760_v60 }
 0x15c   : > { %v764_v62 = vpop.eup %763  ;;  %457 = vst.msk [vmem:[%s1196_s18 + $0x10] sm:$0xff] %vm245_vm0, %v762_v61 }
 0x15d   : > { %v766_v63 = vpop.eup %765  ;;  %465 = vst.msk [vmem:[%s1196_s18 + $0x50] sm:$0xff] %vm245_vm0, %v764_v62 }
 0x15e   : > { %v768_v0 = vpop.eup %767  ;;  %460 = vst.msk [vmem:[%s1196_s18 + $0x28] sm:$0xff] %vm245_vm0, %v766_v63 }
 0x15f   : > { %v770_v1 = vpop.eup %769  ;;  %468 = vst.msk [vmem:[%s1196_s18 + $0x68] sm:$0xff] %vm245_vm0, %v768_v0 }
 0x160   : > { %v772_v2 = vpop.eup %771  ;;  %459 = vst.msk [vmem:[%s1196_s18 + $0x20] sm:$0xff] %vm245_vm0, %v770_v1 }
 0x161   : > { %v774_v3 = vpop.eup %773  ;;  %467 = vst.msk [vmem:[%s1196_s18 + $0x60] sm:$0xff] %vm245_vm0, %v772_v2 }
 0x162   : > { %v776_v4 = vpop.eup %775  ;;  %462 = vst.msk [vmem:[%s1196_s18 + $0x38] sm:$0xff] %vm245_vm0, %v774_v3 }
 0x163   : > { %v778_v5 = vpop.eup %777  ;;  %470 = vst.msk [vmem:[%s1196_s18 + $0x78] sm:$0xff] %vm245_vm0, %v776_v4 }
 0x164   : > { %v780_v6 = vpop.eup %779  ;;  %461 = vst.msk [vmem:[%s1196_s18 + $0x30] sm:$0xff] %vm245_vm0, %v778_v5 }
 0x165   : > { %469 = vst.msk [vmem:[%s1196_s18 + $0x70] sm:$0xff] %vm245_vm0, %v780_v6 }
 0x166   : > { %880 = shalt.err (!%p877_p1)
}
 0x167   : > { %s881_s11 = scalar_lea.hbm %s1229_s28, 2048  ;;  %s885_s27 = scalar_lea.hbm %s1284_s3, 4096 }
 0x168   : > { %p882_p13 = scmp.ne.s32.totalorder %s1229_s28, %s881_s11  ;;  %p886_p4 = scmp.lt.u32.totalorder %s1229_s28, %s1284_s3 }
 0x169   : > { %p887_p5 = scmp.lt.u32.totalorder %s885_s27, %s881_s11  ;;  %p889_p11 = scmp.lt.u32.totalorder %s881_s11, %s1229_s28 }
 0x16a   : > { %p883_p6 = pnand %p882_p13, %p1298_p0 }
 0x16b   : > { %p888_p8 = por %p887_p5, %p886_p4 }
 0x16c   : > { %p884_p10 = pneg %p883_p6 }
 0x16d   : > { %p890_p2 = por %p889_p11, %p888_p8 }
 0x16f   : > { %p891_p3 = pnand %p890_p2, %p884_p10 }
 0x171   : > { %894 = shalt.err (!%p891_p3)
}
 0x172   : > { %s945_s22 = smov 128   ;;  %s946_s18 = smov 8  }
 0x173   : > { %688 = dma.vmem_to_hbm [thread:$0]  (%p1298_p0), %s1231_s7, 2048, %s1229_s28, %s472_s16, %s945_s22, %s945_s22, %s946_s18  }
 0x174 PF: > { %s500_s20 = sand.u32 1, %s925_s12   ;;  %p1299_p7 = scmp.ne.s32.totalorder %s1289_s19, 0 }
 0x175   : > { %p1300_p9 = scmp.ge.s32.totalorder %s937_s15, 2  ;;  %s501_s8 = scalar_lea.sflag [#allocation4], %s500_s20 }
 0x177   : > { %p702_p12 = pnand %p1300_p9, %p1299_p7 }
 0x179   : > { %920 = dma.done.wait (!%p702_p12), %s501_s8, 2048  }
 0x17a   : > { %922 = vsyncadd (!%p702_p12), %s501_s8, 4294965248  ;;  %p17_p1 = scmp.ge.s32.totalorder %s1081_s5, 4   ;;  %s1301_s12 = smov %s929_s13 }
 0x17b   : > { %s1302_s13 = smov %s933_s14  ;;  %s1303_s14 = smov %s1097_s10 }
 0x17c   : > { %s1304_s15 = smov %s1081_s5  ;;  %19 = sbr.rel (!%p17_p1) target bundleno = 6 (0x6), region = 85 }
 0x183   :  { %506 = vsyncpa [#allocation3], 1 }
 0x184   :  { %508 = vsyncpa [#allocation3 + $0x1], 1 }
 0x185   :  { %509 = vsyncpa [#allocation6], 1 }
 0x186   :  { %510 = vsyncpa [#allocation4], 1 }
 0x187   :  { %512 = vsyncpa [#allocation4 + $0x1], 1 }

// kernel: kvmn_forward_pallas.6
= control target key start
LH: loop header
LB: loop body
LE: loop exit
PB: predicated region body
PF: predicated region fallthrough
CT: control target
= control target key end

     0   :  { %7 = vsyncpa [#allocation5], 0  ;;  %s970_s0 = inlined_call_operand.hbm [shape: f32[8,32], index: 0, kind: input, shape index: {}]   ;;  %s971_s1 = inlined_call_operand.hbm [shape: f32[256,32], index: 1, kind: input, shape index: {}]   ;;  %s972_s2 = inlined_call_operand.hbm [shape: f32[8,1], index: 2, kind: output, shape index: {}]  }
   0x1   :  { %8 = vsyncpa [#allocation8], 0 }
   0x2   :  { %10 = vsyncpa [#allocation8 + $0x1], 0 }
   0x3   :  { %11 = vsyncpa [#allocation6], 0  ;;  %s756_s9 = smov 0   ;;  %s758_s10 = smov 0  }
   0x4   :  { %s760_s11 = smov 0   ;;  %s762_s12 = smov 0  }
   0x5 LB: > { %s775_s13 = sadd.s32 4294967295, %s728_s12   ;;  %s778_s14 = sadd.s32 1, %s728_s12   ;;  %s728_s12 = sphi %s762_s12, %s993_s12   ;;  %s724_s11 = sphi %s760_s11, %s992_s11   ;;  %s720_s10 = sphi %s758_s10, %s991_s10   ;;  %s716_s9 = sphi %s756_s9, %s990_s9  }
   0x6   : > { %s42_s15 = ssub.s32 %s728_s12, %s778_s14  ;;  %s45_s16 = sadd.s32 1, %s724_s11 }
   0x7   : > { %p43_p0 = scmp.eq.s32.totalorder %s42_s15, 0  ;;  %p52_p1 = scmp.ne.s32.totalorder %s724_s11, %s720_s10 }
   0x8   : > { %p53_p2 = scmp.eq.s32.totalorder %s728_s12, 0  ;;  %p58_p3 = scmp.ne.s32.totalorder %s720_s10, %s716_s9 }
   0x9   : > { %s788_s17 = scalar_select %p43_p0, %s724_s11, %s45_s16  }
   0xa   : > { %p790_p4 = por %p53_p2, %p52_p1  ;;  %p973_p5 = scmp.eq.s32.totalorder %s775_s13, 0 }
   0xb   : > { %p413_p6 = scmp.ge.s32.totalorder %s728_s12, 1  ;;  %p90_p7 = scmp.lt.s32.totalorder %s728_s12, 3 }
   0xc   : > { %p799_p8 = por %p973_p5, %p58_p3  ;;  %s730_s21 = smov [#allocation4]  }
   0xd   : > { %p804_p10 = pnand %p413_p6, %p90_p7  ;;  %s103_s22 = sshll.u32 %s730_s21, 4  ;;  %s104_s22 = int_to_ptr.vmem [resolvable:$true] %s103_s22 }
   0xe   : > { %s978_s19 = scalar_select %p799_p8, 1, 0 }
   0xf   : > { %s979_s20 = scalar_select %p804_p10, 1, 0 }
  0x10   : > { %p540_p11 = pneg %p804_p10  ;;  %p549_p12 = scmp.lt.s32.totalorder %s728_s12, 2 }
  0x11   : > { %s114_s23 = sand.u32 1, %s724_s11   ;;  %s602_s29 = scalar_lea.hbm %s970_s0, 128 }
  0x12   : > { %p814_p13 = pnand %p540_p11, %p973_p5  ;;  %p820_p0 = pnand %p549_p12, %p790_p4 }
  0x13   : > { %s416_s26 = sshll.u32 %s114_s23, 7  ;;  %p603_p1 = scmp.ne.s32.totalorder %s970_s0, %s602_s29 }
  0x14   : > { %s981_s25 = scalar_select %p820_p0, 1, 0 }
  0x15   : > { %p604_p2 = pneg %p814_p13  ;;  %p609_p4 = scmp.lt.u32.totalorder %s602_s29, %s970_s0 }
  0x17   : > { %p605_p3 = pnand %p604_p2, %p603_p1 }
  0x19   : > { %p606_p6 = pneg %p605_p3 }
  0x1b   : > { %p611_p7 = pnand %p609_p4, %p606_p6 }
  0x1d   : > { %614 = shalt.err (!%p611_p7)
}
  0x1e   : > { %s615_s6 = scalar_lea.vmem %s104_s22, 128  ;;  %p623_p5 = scmp.lt.s32.totalorder %s104_s22, %s104_s22 }
  0x1f   : > { %p616_p11 = scmp.ne.s32.totalorder %s104_s22, %s615_s6  ;;  %p624_p8 = scmp.lt.s32.totalorder %s615_s6, %s615_s6 }
  0x21   : > { %p618_p12 = pnand %p616_p11, %p604_p2  ;;  %p625_p10 = por %p624_p8, %p623_p5 }
  0x23   : > { %p619_p9 = pneg %p618_p12 }
  0x25   : > { %p626_p0 = pnand %p625_p10, %p619_p9 }
  0x27   : > { %629 = shalt.err (!%p626_p0)
}
  0x28   : > { %543 = dma.hbm_to_vmem [thread:$0]  (!%p814_p13), %s970_s0, 128, %s104_s22, [#allocation5]  }
  0x29   : > { %s445_s9 = sshll.u32 %s728_s12, 11  ;;  %s118_s21 = scalar_lea.vmem [#allocation7], %s416_s26 }
  0x2a   : > { %s844_s18 = scalar_lea.hbm %s971_s1, %s445_s9  ;;  %s125_s27 = sshll.u32 %s118_s21, 4  ;;  %s846_s27 = int_to_ptr.vmem [resolvable:$true] %s125_s27 }
  0x2b   : > { %s848_s24 = scalar_lea.sflag [#allocation8], %s114_s23  ;;  %s630_s28 = scalar_lea.hbm %s844_s18, 2048 }
  0x2c   : > { %p631_p5 = scmp.ne.s32.totalorder %s844_s18, %s630_s28  ;;  %p982_p8 = scmp.ne.s32.totalorder %s981_s25, 0 }
  0x2d   : > { %s635_s29 = scalar_lea.hbm %s971_s1, 4096  ;;  %p636_p0 = scmp.lt.u32.totalorder %s844_s18, %s971_s1 }
  0x2e   : > { %p632_p9 = pneg %p982_p8  ;;  %p637_p1 = scmp.lt.u32.totalorder %s635_s29, %s630_s28 }
  0x2f   : > { %p639_p3 = scmp.lt.u32.totalorder %s630_s28, %s844_s18 }
  0x30   : > { %p633_p10 = pnand %p632_p9, %p631_p5  ;;  %p638_p2 = por %p637_p1, %p636_p0 }
  0x32   : > { %p634_p13 = pneg %p633_p10  ;;  %p640_p6 = por %p639_p3, %p638_p2 }
  0x34   : > { %p641_p4 = pnand %p640_p6, %p634_p13 }
  0x36   : > { %644 = shalt.err (!%p641_p4)
}
  0x37   : > { %s645_s23 = scalar_lea.vmem %s846_s27, 2048  ;;  %s731_s26 = smov [#allocation7]  }
  0x38   : > { %p646_p7 = scmp.ne.s32.totalorder %s846_s27, %s645_s23  ;;  %s650_s4 = sshll.u32 %s731_s26, 4  ;;  %s651_s4 = int_to_ptr.vmem [resolvable:$false] %s650_s4 }
  0x39   : > { %s652_s5 = scalar_lea.vmem %s651_s4, 4096  ;;  %p653_p5 = scmp.lt.s32.totalorder %s846_s27, %s651_s4 }
  0x3a   : > { %p648_p11 = pnand %p646_p7, %p632_p9  ;;  %p654_p10 = scmp.lt.s32.totalorder %s652_s5, %s645_s23 }
  0x3c   : > { %p649_p12 = pneg %p648_p11  ;;  %p655_p0 = por %p654_p10, %p653_p5 }
  0x3e   : > { %p656_p1 = pnand %p655_p0, %p649_p12 }
  0x40   : > { %659 = shalt.err (!%p656_p1)
}
  0x41   : > { %s732_s6 = smov 128   ;;  %s733_s7 = smov 8  }
  0x42   : > { %547 = dma.hbm_to_vmem [thread:$0]  (!%p982_p8), %s844_s18, 2048, %s846_s27, %s848_s24, %s732_s6, %s732_s6, %s733_s7  }
  0x43   : > { %p983_p9 = scmp.ne.s32.totalorder %s979_s20, 0 }
  0x44   : > { %p984_p13 = scmp.eq.s32.totalorder (!%p983_p9), %s775_s13, 0 }
  0x45   : > { %137 = sbr.rel (%p983_p9) target bundleno = 848 (0x350), region = 28 }
  0x4c   : > { %703 = dma.done.wait (%p984_p13), [#allocation5], 128   ;;  %p985_p2 = pmov %p984_p13 }
  0x4d   : > { %s143_s8 = sand.u32 1, %s720_s10   ;;  %p986_p3 = scmp.ne.s32.totalorder %s978_s19, 0 }
  0x4e   : > { %705 = vsyncadd (%p985_p2), [#allocation5], 4294967168  ;;  %s421_s9 = sshll.u32 %s143_s8, 7  ;;  %s144_s15 = scalar_lea.sflag [#allocation8], %s143_s8 }
  0x4f   : > { %s883_s16 = scalar_lea.vmem [#allocation7], %s421_s9 }
  0x50   : > { %707 = dma.done.wait (%p986_p3), %s144_s15, 2048  }
  0x51   : > { %709 = vsyncadd (%p986_p3), %s144_s15, 4294965248  ;;  %p987_p8 = scmp.ne.s32.totalorder %s775_s13, 0 }
  0x52   : > { %vm168_vm0 = vcmask (!%p987_p8), 7168   ;;  %v734_v0 = vmov (!%p987_p8), -inf   ;;  %v735_v1 = vmov (!%p987_p8), 0.0  }
  0x53   : > { %167 = sbr.rel (%p987_p8) target bundleno = 90 (0x5a), region = 40  ;;  %169 = vst.msk [vmem:[#allocation2] sm:$0xff] (!%p987_p8), %vm168_vm0, %v734_v0  ;;  %170 = vst.msk [vmem:[#allocation3] sm:$0xff] (!%p987_p8), %vm168_vm0, %v735_v1 }
  0x5a PF: > { %v172_v2 = vld [vmem:[%s883_s16] sm:$0xff]  ;;  %v173_v3 = vld [vmem:[%s883_s16 + $0x8] sm:$0xff]  ;;  %vm188_vm1 = vcmask 261120   ;;  %v736_v4 = vmov 0.0|0.0   ;;  %vm737_vm3 = vmmov 0   ;;  %v738_v7 = vmov 0.0  }
  0x5b   : > { %498 = vmatprep.subr.bf16.mxu0 %v736_v4  ;;  %v499_v5 = vpack.c.bf16 %v173_v3, %v172_v2  ;;  %vm895_vm2 = vmpackc.low %vm188_vm1, %vm188_vm1  ;;  %495 = vmatprep.mubr.msk.f32.mxu0 %vm737_vm3, %v738_v7  ;;  %v174_v8 = vld [vmem:[%s883_s16 + $0x10] sm:$0xff]  ;;  %v175_v9 = vld [vmem:[%s883_s16 + $0x18] sm:$0xff]  ;;  %v739_v32 = vmov 0   ;;  %vm330_vm4 = vcmask 7168   ;;  %p440_p6 = scmp.ne.s32.totalorder %s775_s13, 1 }
  0x5c   : > { %v503_v10 = vpack.c.bf16 %v175_v9, %v174_v8  ;;  %v176_v11 = vld [vmem:[%s883_s16 + $0x20] sm:$0xff]  ;;  %v177_v12 = vld [vmem:[%s883_s16 + $0x28] sm:$0xff]  ;;  %v178_v14 = vld [vmem:[%s883_s16 + $0x30] sm:$0xff]  ;;  %595 = vset.pattern.permute.xlu0 %v739_v32 }
  0x5d   : > { %501 = vmatpush3.bf16.xpose.msk.msra.mxu0 %vm895_vm2, %v499_v5  ;;  %v507_v13 = vpack.c.bf16 %v177_v12, %v176_v11  ;;  %v179_v15 = vld [vmem:[%s883_s16 + $0x38] sm:$0xff]  ;;  %v180_v17 = vld [vmem:[%s883_s16 + $0x40] sm:$0xff]  ;;  %v181_v18 = vld [vmem:[%s883_s16 + $0x48] sm:$0xff] }
  0x5e   : > { %502 = vmatprep.subr.bf16.mxu0 %v736_v4  ;;  %v511_v16 = vpack.c.bf16 %v179_v15, %v178_v14  ;;  %v515_v19 = vpack.c.bf16 %v181_v18, %v180_v17  ;;  %v182_v20 = vld [vmem:[%s883_s16 + $0x50] sm:$0xff]  ;;  %v183_v21 = vld [vmem:[%s883_s16 + $0x58] sm:$0xff]  ;;  %v184_v23 = vld [vmem:[%s883_s16 + $0x60] sm:$0xff] }
  0x5f   : > { %v519_v22 = vpack.c.bf16 %v183_v21, %v182_v20  ;;  %v185_v24 = vld [vmem:[%s883_s16 + $0x68] sm:$0xff]  ;;  %v186_v26 = vld [vmem:[%s883_s16 + $0x70] sm:$0xff]  ;;  %v187_v27 = vld [vmem:[%s883_s16 + $0x78] sm:$0xff] }
  0x60   : > { %v523_v25 = vpack.c.bf16 %v185_v24, %v184_v23  ;;  %v527_v28 = vpack.c.bf16 %v187_v27, %v186_v26  ;;  %v171_v29 = vld [vmem:[#allocation4] sm:$0xff]  ;;  %v310_v33 = vld [vmem:[#allocation2] sm:$0xff]  ;;  %v314_v43 = vld [vmem:[#allocation3] sm:$0xff] }
  0x65   : > { %505 = vmatpush3.bf16.xpose.msk.msra.mxu0 %vm895_vm2, %v503_v10 }
  0x66   : > { %506 = vmatprep.subr.bf16.mxu0 %v736_v4 }
  0x6d   : > { %509 = vmatpush3.bf16.xpose.msk.msra.mxu0 %vm895_vm2, %v507_v13 }
  0x6e   : > { %510 = vmatprep.subr.bf16.mxu0 %v736_v4 }
  0x75   : > { %513 = vmatpush3.bf16.xpose.msk.msra.mxu0 %vm895_vm2, %v511_v16 }
  0x76   : > { %514 = vmatprep.subr.bf16.mxu0 %v736_v4 }
  0x7d   : > { %517 = vmatpush3.bf16.xpose.msk.msra.mxu0 %vm895_vm2, %v515_v19 }
  0x7e   : > { %518 = vmatprep.subr.bf16.mxu0 %v736_v4 }
  0x85   : > { %521 = vmatpush3.bf16.xpose.msk.msra.mxu0 %vm895_vm2, %v519_v22 }
  0x86   : > { %522 = vmatprep.subr.bf16.mxu0 %v736_v4 }
  0x8d   : > { %525 = vmatpush3.bf16.xpose.msk.msra.mxu0 %vm895_vm2, %v523_v25 }
  0x8e   : > { %526 = vmatprep.subr.bf16.mxu0 %v736_v4 }
  0x95   : > { %529 = vmatpush3.bf16.xpose.msk.msra.mxu0 %vm895_vm2, %v527_v28 }
  0x9c   : > { %496 = vmatmul.mubr.msk.f32.vlgmr.msra.gmra.mrb[0].mxu0 %vm188_vm1, %v171_v29 }
 0x16f   : > { %v306_v30 = vpop.f32.mrb[0].mxu0 }
 0x170   : > { %311 = vmax.xlane.f32.xlu0 %v306_v30  ;;  %v497_v31 = vpop.f32.mrb[1].mxu0 }
 0x1fd   : > { %v312_v34 = vpop.xlane.xlu0 %311 }
 0x1fe   : > { %v313_v35 = vmax.f32 %v310_v33, %v312_v34 }
 0x200   : > { %v315_v36 = vsub.f32 %v310_v33, %v313_v35  ;;  %332 = vst.msk [vmem:[#allocation2] sm:$0xff] %vm330_vm4, %v313_v35  ;;  %321 = vperm.xlu0 %595, %v313_v35  }
 0x202   : > { %v316_v41 = vmul.f32 1.442695, %v315_v36 }
 0x207   : > { %v337_v49 = vld [vmem:[#allocation2] sm:$0xff] (!%p440_p6) }
 0x27f   : > { %v322_v37 = vpop.permute.xlu0 %321 }
 0x280   : > { %v324_v38 = vsub.f32 %v306_v30, %v322_v37 }
 0x282   : > { %v325_v39 = vmul.f32 1.442695, %v324_v38 }
 0x284   : > { %596 = vpow2.f32 %v325_v39 }
 0x285   : > { %598 = vpow2.f32 %v316_v41 }
 0x28e   : > { %v597_v40 = vpop.eup %596 }
 0x28f   : > { %327 = vadd.xlane.f32.xlu1 %v597_v40  ;;  %v599_v42 = vpop.eup %598 }
 0x290   : > { %v318_v44 = vmul.f32 %v599_v42, %v314_v43 }
 0x319   : > { %336 = sbr.rel (%p440_p6) target bundleno = 823 (0x337), region = 44 }
 0x31c   : > { %v328_v45 = vpop.xlane.xlu1 %327 }
 0x31d   : > { %v329_v46 = vadd.f32 %v328_v45, %v318_v44 }
 0x31f   : > { %331 = vst.msk [vmem:[#allocation3] sm:$0xff] %vm330_vm4, %v329_v46 }
 0x326   : > { %v338_v47 = vld [vmem:[#allocation3] sm:$0xff] }
 0x327   : > { %600 = vlog2.f32 %v338_v47 }
 0x331   : > { %v601_v48 = vpop.eup %600 }
 0x332   : > { %v340_v50 = vmul.f32 0.6931472, %v601_v48 }
 0x334   : > { %v341_v51 = vadd.f32 %v340_v50, %v337_v49 }
 0x336   : > { %342 = vst.msk [vmem:[#allocation9] sm:$0xff] %vm330_vm4, %v341_v51 }
 0x337 PF: > { %p551_p4 = scmp.eq.s32.totalorder %s775_s13, 1  ;;  %s740_s19 = smov [#allocation9]  }
 0x338   : > { %s350_s20 = sshll.u32 %s740_s19, 4  ;;  %s351_s20 = int_to_ptr.vmem [resolvable:$true] %s350_s20 }
 0x339   : > { %s660_s25 = scalar_lea.vmem %s351_s20, 128  ;;  %p667_p5 = scmp.lt.s32.totalorder %s351_s20, %s351_s20 }
 0x33a   : > { %p661_p7 = scmp.ne.s32.totalorder %s351_s20, %s660_s25  ;;  %p668_p10 = scmp.lt.s32.totalorder %s660_s25, %s660_s25 }
 0x33c   : > { %p662_p11 = pnand %p661_p7, %p551_p4  ;;  %p669_p0 = por %p668_p10, %p667_p5 }
 0x33e   : > { %p663_p12 = pneg %p662_p11 }
 0x340   : > { %p670_p1 = pnand %p669_p0, %p663_p12 }
 0x342   : > { %673 = shalt.err (!%p670_p1)
}
 0x343   : > { %s674_s27 = scalar_lea.hbm %s972_s2, 128 }
 0x344   : > { %p675_p9 = scmp.ne.s32.totalorder %s972_s2, %s674_s27  ;;  %p680_p3 = scmp.lt.u32.totalorder %s674_s27, %s972_s2 }
 0x346   : > { %p676_p13 = pnand %p675_p9, %p551_p4 }
 0x348   : > { %p677_p2 = pneg %p676_p13 }
 0x34a   : > { %p682_p8 = pnand %p680_p3, %p677_p2 }
 0x34c   : > { %685 = shalt.err (!%p682_p8)
}
 0x34d   : > { %537 = dma.vmem_to_hbm [thread:$0]  (%p551_p4), %s351_s20, 128, %s972_s2, [#allocation6]  }
 0x34e   : > { %711 = dma.done.wait (%p551_p4), [#allocation6], 128  }
 0x34f   : > { %713 = vsyncadd (%p551_p4), [#allocation6], 4294967168 }
 0x350 PF: > { %p14_p6 = scmp.ge.s32.totalorder %s778_s14, 4   ;;  %s990_s9 = smov %s720_s10 }
 0x351   : > { %s991_s10 = smov %s724_s11  ;;  %s992_s11 = smov %s788_s17 }
 0x352   : > { %s993_s12 = smov %s778_s14  ;;  %16 = sbr.rel (!%p14_p6) target bundleno = 5 (0x5), region = 78 }
 0x359   :  { %363 = vsyncpa [#allocation5], 1 }
 0x35a   :  { %365 = vsyncpa [#allocation5 + $0x1], 1 }
 0x35b   :  { %366 = vsyncpa [#allocation8], 1 }
 0x35c   :  { %368 = vsyncpa [#allocation8 + $0x1], 1 }
 0x35d   :  { %369 = vsyncpa [#allocation6], 1 }
 0x35e   :  { %371 = vsyncpa [#allocation6 + $0x1], 1 }

// kernel: kvmn_forward_pallas.7
= control target key start
LH: loop header
LB: loop body
LE: loop exit
PB: predicated region body
PF: predicated region fallthrough
CT: control target
= control target key end

     0   :  { %8 = vsyncpa [#allocation3], 0  ;;  %s1128_s0 = inlined_call_operand.hbm [shape: f32[8,32], index: 0, kind: input, shape index: {}]   ;;  %s1129_s1 = inlined_call_operand.hbm [shape: f32[256,32], index: 1, kind: input, shape index: {}]   ;;  %s1130_s2 = inlined_call_operand.hbm [shape: f32[8,1], index: 2, kind: input, shape index: {}]   ;;  %s1131_s3 = inlined_call_operand.hbm [shape: f32[8,256], index: 3, kind: output, shape index: {}]  }
   0x1   :  { %9 = vsyncpa [#allocation6], 0 }
   0x2   :  { %11 = vsyncpa [#allocation6 + $0x1], 0 }
   0x3   :  { %12 = vsyncpa [#allocation4], 0 }
   0x4   :  { %14 = vsyncpa [#allocation4 + $0x1], 0  ;;  %s852_s12 = smov 0   ;;  %s854_s13 = smov 0  }
   0x5   :  { %s856_s14 = smov 0   ;;  %s858_s15 = smov 0  }
   0x6 LB: > { %s873_s16 = sadd.s32 4294967295, %s820_s15   ;;  %s467_s17 = sadd.s32 4294967294, %s820_s15   ;;  %s820_s15 = sphi %s858_s15, %s1160_s15   ;;  %s816_s14 = sphi %s856_s14, %s1159_s14   ;;  %s812_s13 = sphi %s854_s13, %s1158_s13   ;;  %s808_s12 = sphi %s852_s12, %s1157_s12  }
   0x7   : > { %s877_s18 = sadd.s32 1, %s820_s15   ;;  %s48_s19 = sadd.s32 1, %s816_s14 }
   0x8   : > { %s45_s20 = ssub.s32 %s820_s15, %s877_s18  ;;  %p55_p0 = scmp.ne.s32.totalorder %s816_s14, %s812_s13 }
   0x9   : > { %p46_p1 = scmp.eq.s32.totalorder %s45_s20, 0  ;;  %p56_p2 = scmp.eq.s32.totalorder %s820_s15, 0 }
   0xa   : > { %p61_p3 = scmp.ne.s32.totalorder %s812_s13, %s808_s12  ;;  %p1132_p4 = scmp.eq.s32.totalorder %s873_s16, 0 }
   0xb   : > { %s889_s21 = scalar_select %p46_p1, %s816_s14, %s48_s19  }
   0xc   : > { %p891_p5 = por %p56_p2, %p55_p0  ;;  %p897_p6 = por %p1132_p4, %p61_p3 }
   0xd   : > { %p106_p7 = scmp.eq.s32.totalorder %s873_s16, 1  ;;  %p112_p8 = scmp.eq.s32.totalorder %s467_s17, 1 }
   0xe   : > { %s1138_s23 = scalar_select %p897_p6, 1, 0 }
   0xf   : > { %p468_p9 = scmp.ge.s32.totalorder %s820_s15, 1  ;;  %p119_p10 = scmp.lt.s32.totalorder %s820_s15, 3 }
  0x10   : > { %p904_p11 = por %p106_p7, %p55_p0  ;;  %p908_p12 = por %p112_p8, %p61_p3 }
  0x11   : > { %p912_p13 = pnand %p468_p9, %p119_p10  ;;  %s822_s27 = smov [#allocation7]  }
  0x12   : > { %s1139_s24 = scalar_select %p904_p11, 1, 0 }
  0x13   : > { %s1140_s25 = scalar_select %p908_p12, 1, 0 }
  0x14   : > { %s1141_s26 = scalar_select %p912_p13, 1, 0 }
  0x15   : > { %p598_p2 = pneg %p912_p13  ;;  %s143_s28 = sshll.u32 %s822_s27, 4  ;;  %s144_s28 = int_to_ptr.vmem [resolvable:$true] %s143_s28 }
  0x16   : > { %p615_p4 = scmp.lt.s32.totalorder %s820_s15, 2  ;;  %p1142_p0 = scmp.eq.s32.totalorder %s873_s16, 0 }
  0x17   : > { %s823_s4 = smov [#allocation2]   ;;  %s660_s8 = scalar_lea.hbm %s1130_s2, 128 }
  0x18   : > { %p922_p7 = pnand %p598_p2, %p1142_p0  ;;  %p928_p3 = pnand %p615_p4, %p891_p5 }
  0x19   : > { %s132_s5 = sshll.u32 %s823_s4, 4  ;;  %p661_p8 = scmp.ne.s32.totalorder %s1130_s2, %s660_s8  ;;  %s932_s5 = int_to_ptr.vmem [resolvable:$true] %s132_s5 }
  0x1a   : > { %s1144_s30 = scalar_select %p928_p3, 1, 0 }
  0x1b   : > { %p662_p9 = pneg %p922_p7  ;;  %p667_p10 = scmp.lt.u32.totalorder %s660_s8, %s1130_s2 }
  0x1d   : > { %p663_p4 = pnand %p662_p9, %p661_p8 }
  0x1f   : > { %p664_p5 = pneg %p663_p4 }
  0x21   : > { %p669_p2 = pnand %p667_p10, %p664_p5 }
  0x23   : > { %672 = shalt.err (!%p669_p2)
}
  0x24   : > { %s673_s19 = scalar_lea.vmem %s144_s28, 128  ;;  %p681_p11 = scmp.lt.s32.totalorder %s144_s28, %s144_s28 }
  0x25   : > { %p674_p0 = scmp.ne.s32.totalorder %s144_s28, %s673_s19  ;;  %p682_p6 = scmp.lt.s32.totalorder %s673_s19, %s673_s19 }
  0x27   : > { %p676_p1 = pnand %p674_p0, %p662_p9  ;;  %p683_p13 = por %p682_p6, %p681_p11 }
  0x29   : > { %p677_p12 = pneg %p676_p1 }
  0x2b   : > { %p684_p3 = pnand %p683_p13, %p677_p12 }
  0x2d   : > { %687 = shalt.err (!%p684_p3)
}
  0x2e   : > { %604 = dma.hbm_to_vmem [thread:$0]  (!%p922_p7), %s1130_s2, 128, %s144_s28, [#allocation6]  }
  0x2f   : > { %s154_s27 = sand.u32 1, %s820_s15   ;;  %s688_s7 = scalar_lea.hbm %s1128_s0, 128 }
  0x30   : > { %p689_p1 = scmp.ne.s32.totalorder %s1128_s0, %s688_s7  ;;  %p695_p12 = scmp.lt.u32.totalorder %s688_s7, %s1128_s0 }
  0x32   : > { %p691_p6 = pnand %p689_p1, %p662_p9 }
  0x34   : > { %p692_p11 = pneg %p691_p6 }
  0x36   : > { %p697_p13 = pnand %p695_p12, %p692_p11 }
  0x38   : > { %700 = shalt.err (!%p697_p13)
}
  0x39   : > { %s701_s28 = scalar_lea.vmem %s932_s5, 128  ;;  %p709_p5 = scmp.lt.s32.totalorder %s932_s5, %s932_s5 }
  0x3a   : > { %p702_p3 = scmp.ne.s32.totalorder %s932_s5, %s701_s28  ;;  %p710_p10 = scmp.lt.s32.totalorder %s701_s28, %s701_s28 }
  0x3c   : > { %p704_p8 = pnand %p702_p3, %p662_p9  ;;  %p711_p2 = por %p710_p10, %p709_p5 }
  0x3e   : > { %p705_p4 = pneg %p704_p8 }
  0x40   : > { %p712_p0 = pnand %p711_p2, %p705_p4 }
  0x42   : > { %715 = shalt.err (!%p712_p0)
}
  0x43   : > { %601 = dma.hbm_to_vmem [thread:$0]  (!%p922_p7), %s1128_s0, 128, %s932_s5, [#allocation3]  }
  0x44   : > { %s156_s20 = sand.u32 1, %s816_s14   ;;  %s501_s4 = sshll.u32 %s820_s15, 11 }
  0x45   : > { %s472_s22 = sshll.u32 %s156_s20, 7  ;;  %s987_s8 = scalar_lea.hbm %s1129_s1, %s501_s4 }
  0x46   : > { %s158_s29 = scalar_lea.vmem [#allocation5], %s472_s22  ;;  %s991_s10 = scalar_lea.sflag [#allocation6], %s154_s27 }
  0x47   : > { %s165_s9 = sshll.u32 %s158_s29, 4  ;;  %s716_s11 = scalar_lea.hbm %s987_s8, 2048  ;;  %s989_s9 = int_to_ptr.vmem [resolvable:$true] %s165_s9 }
  0x48   : > { %p717_p7 = scmp.ne.s32.totalorder %s987_s8, %s716_s11  ;;  %p1145_p9 = scmp.ne.s32.totalorder %s1144_s30, 0 }
  0x49   : > { %s721_s17 = scalar_lea.hbm %s1129_s1, 4096  ;;  %p722_p12 = scmp.lt.u32.totalorder %s987_s8, %s1129_s1 }
  0x4a   : > { %p718_p1 = pneg %p1145_p9  ;;  %p723_p13 = scmp.lt.u32.totalorder %s721_s17, %s716_s11 }
  0x4b   : > { %p725_p8 = scmp.lt.u32.totalorder %s716_s11, %s987_s8 }
  0x4c   : > { %p719_p6 = pnand %p718_p1, %p717_p7  ;;  %p724_p3 = por %p723_p13, %p722_p12 }
  0x4e   : > { %p720_p11 = pneg %p719_p6  ;;  %p726_p4 = por %p725_p8, %p724_p3 }
  0x50   : > { %p727_p5 = pnand %p726_p4, %p720_p11 }
  0x52   : > { %730 = shalt.err (!%p727_p5)
}
  0x53   : > { %s731_s27 = scalar_lea.vmem %s989_s9, 2048  ;;  %s824_s22 = smov [#allocation5]  }
  0x54   : > { %p732_p10 = scmp.ne.s32.totalorder %s989_s9, %s731_s27  ;;  %s736_s4 = sshll.u32 %s824_s22, 4  ;;  %s737_s4 = int_to_ptr.vmem [resolvable:$false] %s736_s4 }
  0x55   : > { %s738_s6 = scalar_lea.vmem %s737_s4, 4096  ;;  %p739_p7 = scmp.lt.s32.totalorder %s989_s9, %s737_s4 }
  0x56   : > { %p734_p2 = pnand %p732_p10, %p718_p1  ;;  %p740_p6 = scmp.lt.s32.totalorder %s738_s6, %s731_s27 }
  0x58   : > { %p735_p0 = pneg %p734_p2  ;;  %p741_p12 = por %p740_p6, %p739_p7 }
  0x5a   : > { %p742_p13 = pnand %p741_p12, %p735_p0 }
  0x5c   : > { %745 = shalt.err (!%p742_p13)
}
  0x5d   : > { %s825_s7 = smov 128   ;;  %s826_s29 = smov 8  }
  0x5e   : > { %608 = dma.hbm_to_vmem [thread:$0]  (!%p1145_p9), %s987_s8, 2048, %s989_s9, %s991_s10, %s825_s7, %s825_s7, %s826_s29  }
  0x5f   : > { %p1146_p1 = scmp.ne.s32.totalorder %s1141_s26, 0 }
  0x60   : > { %p1147_p11 = scmp.eq.s32.totalorder (!%p1146_p1), %s873_s16, 0 }
  0x61   : > { %177 = sbr.rel (%p1146_p1) target bundleno = 408 (0x198), region = 32 }
  0x68   : > { %791 = dma.done.wait (%p1147_p11), [#allocation3], 128   ;;  %p1148_p3 = pmov %p1147_p11 }
  0x69   : > { %s183_s11 = sand.u32 1, %s873_s16   ;;  %s1027_s5 = sand.u32 1, %s812_s13  }
  0x6a   : > { %793 = vsyncadd (%p1148_p3), [#allocation3], 4294967168  ;;  %s477_s28 = sshll.u32 %s1027_s5, 7  ;;  %s184_s17 = scalar_lea.sflag [#allocation6], %s183_s11 }
  0x6b   : > { %s1030_s30 = scalar_lea.vmem [#allocation5], %s477_s28  ;;  %p1149_p9 = scmp.ne.s32.totalorder %s1138_s23, 0 }
  0x6d   : > { %795 = dma.done.wait (%p1149_p9), %s184_s17, 2048  }
  0x6e   : > { %797 = vsyncadd (%p1149_p9), %s184_s17, 4294965248  ;;  %p1150_p8 = pmov %p1148_p3 }
  0x6f   : > { %p1151_p4 = pmov %p1148_p3 }
  0x70   : > { %799 = dma.done.wait (%p1150_p8), [#allocation6], 128  }
  0x71   : > { %801 = vsyncadd (%p1151_p4), [#allocation6], 4294967168  ;;  %v827_v0 = vmov 0.0|0.0   ;;  %vm828_vm0 = vmmov 0   ;;  %v829_v1 = vmov 0.0   ;;  %v830_v2 = vmov 0  }
  0x72   : > { %554 = vmatprep.subr.bf16.mxu0 %v827_v0  ;;  %551 = vmatprep.mubr.msk.f32.mxu0 %vm828_vm0, %v829_v1  ;;  %vm232_vm1 = vcmask 261120   ;;  %v216_v3 = vld [vmem:[%s1030_s30] sm:$0xff]  ;;  %v217_v4 = vld [vmem:[%s1030_s30 + $0x8] sm:$0xff]  ;;  %v218_v7 = vld [vmem:[%s1030_s30 + $0x10] sm:$0xff]  ;;  %s479_s23 = sshll.u32 %s1027_s5, 3  ;;  %s498_s26 = sshll.u32 %s873_s16, 7 }
  0x73   : > { %659 = vset.pattern.permute.xlu0 %v830_v2  ;;  %vm1044_vm2 = vmpackc.low %vm232_vm1, %vm232_vm1  ;;  %v555_v6 = vpack.c.bf16 %v217_v4, %v216_v3  ;;  %v219_v8 = vld [vmem:[%s1030_s30 + $0x18] sm:$0xff]  ;;  %v354_v9 = vld [vmem:[#allocation7] sm:$0xff]  ;;  %s213_s8 = scalar_lea.vmem [#allocation8], %s479_s23  ;;  %s1084_s20 = scalar_lea.hbm %s1131_s3, %s498_s26 }
  0x74   : > { %357 = vperm.xlu0 %659, %v354_v9   ;;  %v559_v10 = vpack.c.bf16 %v219_v8, %v218_v7  ;;  %v220_v11 = vld [vmem:[%s1030_s30 + $0x20] sm:$0xff]  ;;  %v221_v12 = vld [vmem:[%s1030_s30 + $0x28] sm:$0xff]  ;;  %v222_v14 = vld [vmem:[%s1030_s30 + $0x30] sm:$0xff]  ;;  %s376_s9 = sshll.u32 %s213_s8, 4  ;;  %s363_s27 = scalar_lea.sflag [#allocation4], %s1027_s5  ;;  %s1086_s9 = int_to_ptr.vmem [resolvable:$true] %s376_s9 }
  0x75   : > { %557 = vmatpush3.bf16.xpose.msk.msra.mxu0 %vm1044_vm2, %v555_v6  ;;  %v563_v13 = vpack.c.bf16 %v221_v12, %v220_v11  ;;  %v223_v15 = vld [vmem:[%s1030_s30 + $0x38] sm:$0xff]  ;;  %v224_v17 = vld [vmem:[%s1030_s30 + $0x40] sm:$0xff]  ;;  %v225_v18 = vld [vmem:[%s1030_s30 + $0x48] sm:$0xff]  ;;  %s746_s22 = scalar_lea.vmem %s1086_s9, 128  ;;  %p1154_p10 = scmp.ne.s32.totalorder %s1139_s24, 0 }
  0x76   : > { %558 = vmatprep.subr.bf16.mxu0 %v827_v0  ;;  %v567_v16 = vpack.c.bf16 %v223_v15, %v222_v14  ;;  %v571_v19 = vpack.c.bf16 %v225_v18, %v224_v17  ;;  %v226_v20 = vld [vmem:[%s1030_s30 + $0x50] sm:$0xff]  ;;  %v227_v21 = vld [vmem:[%s1030_s30 + $0x58] sm:$0xff]  ;;  %v228_v23 = vld [vmem:[%s1030_s30 + $0x60] sm:$0xff]  ;;  %p747_p5 = scmp.ne.s32.totalorder %s1086_s9, %s746_s22  ;;  %s831_s16 = smov [#allocation8]  }
  0x77   : > { %v575_v22 = vpack.c.bf16 %v227_v21, %v226_v20  ;;  %v229_v24 = vld [vmem:[%s1030_s30 + $0x68] sm:$0xff]  ;;  %v230_v26 = vld [vmem:[%s1030_s30 + $0x70] sm:$0xff]  ;;  %v231_v27 = vld [vmem:[%s1030_s30 + $0x78] sm:$0xff]  ;;  %s750_s4 = sshll.u32 %s831_s16, 4  ;;  %s751_s4 = int_to_ptr.vmem [resolvable:$false] %s750_s4 }
  0x78   : > { %v579_v25 = vpack.c.bf16 %v229_v24, %v228_v23  ;;  %v583_v28 = vpack.c.bf16 %v231_v27, %v230_v26  ;;  %v215_v29 = vld [vmem:[#allocation2] sm:$0xff]  ;;  %p748_p2 = pnand %p747_p5, %p1154_p10  ;;  %s752_s6 = scalar_lea.vmem %s751_s4, 256 }
  0x79   : > { %p753_p7 = scmp.lt.s32.totalorder %s1086_s9, %s751_s4  ;;  %p754_p6 = scmp.lt.s32.totalorder %s752_s6, %s746_s22 }
  0x7a   : > { %p749_p0 = pneg %p748_p2 }
  0x7b   : > { %p755_p12 = por %p754_p6, %p753_p7 }
  0x7d   : > { %561 = vmatpush3.bf16.xpose.msk.msra.mxu0 %vm1044_vm2, %v559_v10  ;;  %p756_p13 = pnand %p755_p12, %p749_p0 }
  0x7e   : > { %562 = vmatprep.subr.bf16.mxu0 %v827_v0 }
  0x85   : > { %565 = vmatpush3.bf16.xpose.msk.msra.mxu0 %vm1044_vm2, %v563_v13 }
  0x86   : > { %566 = vmatprep.subr.bf16.mxu0 %v827_v0 }
  0x8d   : > { %569 = vmatpush3.bf16.xpose.msk.msra.mxu0 %vm1044_vm2, %v567_v16 }
  0x8e   : > { %570 = vmatprep.subr.bf16.mxu0 %v827_v0 }
  0x95   : > { %573 = vmatpush3.bf16.xpose.msk.msra.mxu0 %vm1044_vm2, %v571_v19 }
  0x96   : > { %574 = vmatprep.subr.bf16.mxu0 %v827_v0 }
  0x9d   : > { %577 = vmatpush3.bf16.xpose.msk.msra.mxu0 %vm1044_vm2, %v575_v22 }
  0x9e   : > { %578 = vmatprep.subr.bf16.mxu0 %v827_v0 }
  0xa5   : > { %581 = vmatpush3.bf16.xpose.msk.msra.mxu0 %vm1044_vm2, %v579_v25 }
  0xa6   : > { %582 = vmatprep.subr.bf16.mxu0 %v827_v0 }
  0xad   : > { %585 = vmatpush3.bf16.xpose.msk.msra.mxu0 %vm1044_vm2, %v583_v28 }
  0xb4   : > { %552 = vmatmul.mubr.msk.f32.vlgmr.msra.gmra.mrb[0].mxu0 %vm232_vm1, %v215_v29 }
  0xf3   : > { %v358_v30 = vpop.permute.xlu0 %357 }
 0x187   : > { %v350_v31 = vpop.f32.mrb[0].mxu0 }
 0x188   : > { %v360_v32 = vsub.f32 %v350_v31, %v358_v30  ;;  %v553_v33 = vpop.f32.mrb[1].mxu0 }
 0x18a   : > { %361 = vst [vmem:[%s213_s8] sm:$0xff] %v360_v32 }
 0x18b   : > { %759 = shalt.err (!%p756_p13)
}
 0x18c   : > { %s760_s7 = scalar_lea.hbm %s1084_s20, 128  ;;  %s764_s5 = scalar_lea.hbm %s1131_s3, 256 }
 0x18d   : > { %p761_p1 = scmp.ne.s32.totalorder %s1084_s20, %s760_s7  ;;  %p765_p9 = scmp.lt.u32.totalorder %s1084_s20, %s1131_s3 }
 0x18e   : > { %p766_p8 = scmp.lt.u32.totalorder %s764_s5, %s760_s7  ;;  %p768_p5 = scmp.lt.u32.totalorder %s760_s7, %s1084_s20 }
 0x18f   : > { %p762_p11 = pnand %p761_p1, %p1154_p10 }
 0x190   : > { %p767_p4 = por %p766_p8, %p765_p9 }
 0x191   : > { %p763_p3 = pneg %p762_p11 }
 0x192   : > { %p769_p2 = por %p768_p5, %p767_p4 }
 0x194   : > { %p770_p0 = pnand %p769_p2, %p763_p3 }
 0x196   : > { %773 = shalt.err (!%p770_p0)
}
 0x197   : > { %596 = dma.vmem_to_hbm [thread:$0]  (%p1154_p10), %s1086_s9, 128, %s1084_s20, %s363_s27  }
 0x198 PF: > { %s388_s30 = sand.u32 1, %s808_s12   ;;  %p1155_p7 = scmp.ne.s32.totalorder %s1140_s25, 0 }
 0x199   : > { %p1156_p6 = scmp.ge.s32.totalorder %s820_s15, 2  ;;  %s389_s23 = scalar_lea.sflag [#allocation4], %s388_s30 }
 0x19b   : > { %p610_p12 = pnand %p1156_p6, %p1155_p7 }
 0x19d   : > { %803 = dma.done.wait (!%p610_p12), %s389_s23, 128  }
 0x19e   : > { %805 = vsyncadd (!%p610_p12), %s389_s23, 4294967168  ;;  %p17_p13 = scmp.ge.s32.totalorder %s877_s18, 4   ;;  %s1157_s12 = smov %s812_s13 }
 0x19f   : > { %s1158_s13 = smov %s816_s14  ;;  %s1159_s14 = smov %s889_s21 }
 0x1a0   : > { %s1160_s15 = smov %s877_s18  ;;  %19 = sbr.rel (!%p17_p13) target bundleno = 6 (0x6), region = 86 }
 0x1a7   :  { %394 = vsyncpa [#allocation3], 1 }
 0x1a8   :  { %396 = vsyncpa [#allocation3 + $0x1], 1 }
 0x1a9   :  { %397 = vsyncpa [#allocation6], 1 }
 0x1aa   :  { %399 = vsyncpa [#allocation6 + $0x1], 1 }
 0x1ab   :  { %400 = vsyncpa [#allocation4], 1 }
 0x1ac   :  { %402 = vsyncpa [#allocation4 + $0x1], 1 }

// kernel: kvmn_forward_pallas.4
= control target key start
LH: loop header
LB: loop body
LE: loop exit
PB: predicated region body
PF: predicated region fallthrough
CT: control target
= control target key end

     0   :  { %s13098_s0 = inlined_call_operand.vmem [shape: f32[8,8,32], index: 0, kind: input, shape index: {}]   ;;  %s13099_s1 = inlined_call_operand.vmem [shape: f32[16,96], index: 1, kind: input, shape index: {}]   ;;  %s13100_s2 = inlined_call_operand.vmem [shape: f32[1,96], index: 2, kind: input, shape index: {}]   ;;  %s13101_s3 = inlined_call_operand.vmem [shape: f32[32,96], index: 3, kind: input, shape index: {}]   ;;  %s13102_s4 = inlined_call_operand.vmem [shape: f32[1,32], index: 4, kind: input, shape index: {}]   ;;  %s13103_s5 = inlined_call_operand.vmem [shape: f32[16,128], index: 5, kind: input, shape index: {}]   ;;  %s13104_s6 = inlined_call_operand.vmem [shape: f32[1,128], index: 6, kind: input, shape index: {}]   ;;  %s13105_s7 = inlined_call_operand.vmem [shape: f32[32,16], index: 7, kind: input, shape index: {}]   ;;  %s13106_s8 = inlined_call_operand.vmem [shape: f32[1,16], index: 8, kind: input, shape index: {}]   ;;  %s13107_s9 = inlined_call_operand.vmem [shape: f32[32,32], index: 9, kind: input, shape index: {}]   ;;  %s13108_s10 = inlined_call_operand.vmem [shape: f32[128,32], index: 10, kind: input, shape index: {}]   ;;  %s13109_s11 = inlined_call_operand.vmem [shape: f32[1,32], index: 11, kind: input, shape index: {}]   ;;  %s13110_s12 = inlined_call_operand.vmem [shape: f32[32,32], index: 12, kind: input, shape index: {}]   ;;  %s13111_s13 = inlined_call_operand.vmem [shape: f32[1,32], index: 13, kind: input, shape index: {}]   ;;  %s13112_s14 = inlined_call_operand.vmem [shape: f32[8,16], index: 14, kind: input, shape index: {}]   ;;  %s13113_s15 = inlined_call_operand.vmem [shape: f32[1,128], index: 15, kind: input, shape index: {}]   ;;  %s13114_s16 = inlined_call_operand.vmem [shape: f32[128,8], index: 16, kind: input, shape index: {}]   ;;  %s13115_s17 = inlined_call_operand.hbm [shape: f32[8,32], index: 17, kind: output, shape index: {}]  }
   0x1   :  { %13118 = sst [smem:[#allocation5_spill]] %s13098_s0 }
   0x2   :  { %13119 = sst [smem:[#allocation6_spill]] %s13099_s1 }
   0x3   :  { %v7060_v0 = vld [vmem:[%s13102_s4] ss:$0 sm:$0xff]  ;;  %s13120_s28 = sld [smem:[#allocation6_spill]]  ;;  %s11171_s30 = smov 64   ;;  %v11172_v3 = vmov 0.0|0.0   ;;  %vm11173_vm0 = vmmov 0  }
   0x4   :  { %284 = vrot.lane.b32.xlu0 %v7060_v0, %s11171_s30  ;;  %9814 = vmatprep.subr.bf16.mxu1 %v11172_v3  ;;  %v60_v5 = vld [vmem:[%s13101_s3] sm:$0xff]  ;;  %v11174_v6 = vmov 0.0   ;;  %s13121_s20 = sld [smem:[#allocation5_spill]]  ;;  %v61_v8 = vld [vmem:[%s13101_s3 + $0x8] sm:$0xff]  ;;  %vm124_vm1 = vcmask 130048   ;;  %v62_v12 = vld [vmem:[%s13101_s3 + $0x10] sm:$0xff] }
   0x5   :  { %8194 = vmatprep.mubr.msk.f32.mxu1 %vm11173_vm0, %v11174_v6  ;;  %9823 = vmatprep.subr.bf16.mxu0 %v11172_v3  ;;  %v11294_v9 = vpack.c.bf16 %v61_v8, %v60_v5  ;;  %v65_v10 = vld [vmem:[%s13103_s5] sm:$0xff]  ;;  %v66_v11 = vld [vmem:[%s13103_s5 + $0x8] sm:$0xff]  ;;  %v63_v13 = vld [vmem:[%s13101_s3 + $0x18] sm:$0xff] }
   0x6   :  { %8212 = vmatprep.mubr.msk.f32.mxu0 %vm11173_vm0, %v11174_v6  ;;  %v11311_v14 = vpack.c.bf16 %v66_v11, %v65_v10 }
   0x9   :  { %v57_v1 = vld [vmem:[%s13120_s28] sm:$0xff]  ;;  %v58_v2 = vld [vmem:[%s13120_s28 + $0x8] sm:$0xff] }
   0xa   :  { %v11279_v4 = vpack.c.bf16 %v58_v2, %v57_v1  ;;  %v117_v7 = vld [vmem:[%s13121_s20] sm:$0xff] }
   0xc   :  { %9816 = vmatpush3.bf16.msra.mxu1 %v11279_v4 }
   0xd   :  { %9817 = vmatprep.subr.bf16.mxu1 %v11172_v3 }
   0xe   :  { %22 = vsyncpa [#allocation3], 0  ;;  %s11175_s18 = smov 112   ;;  %9825 = vmatpush3.bf16.msra.mxu0 %v11311_v14  ;;  %v11317_v15 = vpack.c.bf16 %v63_v13, %v62_v12  ;;  %v101_v17 = vld [vmem:[%s13114_s16] sm:$0xff]  ;;  %v102_v18 = vld [vmem:[%s13114_s16 + $0x8] sm:$0xff]  ;;  %vm472_vm2 = vcmask 64512  }
   0xf   :  { %313 = vrot.lane.b32.xlu0 %v117_v7, %s11175_s18  ;;  %8195 = vmatmul.mubr.msk.f32.vlgmr.msra.gmra.mrb[0].mxu1 %vm124_vm1, %v117_v7  ;;  %v11336_v19 = vpack.c.bf16 %v102_v18, %v101_v17  ;;  %v103_v20 = vld [vmem:[%s13114_s16 + $0x10] sm:$0xff]  ;;  %v104_v21 = vld [vmem:[%s13114_s16 + $0x18] sm:$0xff]  ;;  %v105_v24 = vld [vmem:[%s13114_s16 + $0x20] sm:$0xff]  ;;  %s11176_s3 = smov 96   ;;  %vm198_vm4 = vcmask 261120  }
  0x10   :  { %9819 = vmatpush3.bf16.msra.mxu1 %v11294_v9  ;;  %8205 = vmatprep.mubr.msk.f32.mxu1 %vm11173_vm0, %v11174_v6  ;;  %v11346_v23 = vpack.c.bf16 %v104_v21, %v103_v20  ;;  %v106_v25 = vld [vmem:[%s13114_s16 + $0x28] sm:$0xff]  ;;  %v107_v27 = vld [vmem:[%s13114_s16 + $0x30] sm:$0xff]  ;;  %v108_v28 = vld [vmem:[%s13114_s16 + $0x38] sm:$0xff] }
  0x11   :  { %9820 = vmatprep.subr.bf16.mxu1 %v11172_v3  ;;  %9826 = vmatprep.subr.bf16.mxu0 %v11172_v3  ;;  %v11358_v26 = vpack.c.bf16 %v106_v25, %v105_v24  ;;  %v11368_v29 = vpack.c.bf16 %v108_v28, %v107_v27  ;;  %v109_v30 = vld [vmem:[%s13114_s16 + $0x40] sm:$0xff]  ;;  %v110_v31 = vld [vmem:[%s13114_s16 + $0x48] sm:$0xff]  ;;  %v111_v33 = vld [vmem:[%s13114_s16 + $0x50] sm:$0xff] }
  0x12   :  { %v11379_v32 = vpack.c.bf16 %v110_v31, %v109_v30  ;;  %v112_v34 = vld [vmem:[%s13114_s16 + $0x58] sm:$0xff]  ;;  %v113_v36 = vld [vmem:[%s13114_s16 + $0x60] sm:$0xff]  ;;  %v114_v37 = vld [vmem:[%s13114_s16 + $0x68] sm:$0xff] }
  0x13   :  { %v11389_v35 = vpack.c.bf16 %v112_v34, %v111_v33  ;;  %v11398_v38 = vpack.c.bf16 %v114_v37, %v113_v36  ;;  %v115_v39 = vld [vmem:[%s13114_s16 + $0x70] sm:$0xff]  ;;  %v116_v40 = vld [vmem:[%s13114_s16 + $0x78] sm:$0xff]  ;;  %v11418_v47 = vld [vmem:[%s13100_s2] ss:$0 sm:$0xff] }
  0x14   :  { %9822 = vmatpush3.bf16.msra.mxu1 %v11317_v15  ;;  %v11409_v41 = vpack.c.bf16 %v116_v40, %v115_v39  ;;  %v11424_v53 = vld [vmem:[%s13104_s6] ss:$0 sm:$0xff]  ;;  %vm11438_vm3 = vmpackc.low %vm472_vm2, %vm472_vm2  ;;  %v69_v7 = vld [vmem:[%s13105_s7 + $0x8] sm:$0xff] }
  0x15   :  { %9850 = vmatprep.subr.bf16.mxu1 %v11172_v3  ;;  %v11430_v59 = vld [vmem:[%s13113_s15] ss:$0 sm:$0xff]  ;;  %v70_v8 = vld [vmem:[%s13105_s7 + $0x10] sm:$0xff]  ;;  %v71_v11 = vld [vmem:[%s13105_s7 + $0x18] sm:$0xff] }
  0x16   :  { %v68_v5 = vld [vmem:[%s13105_s7] sm:$0xff]  ;;  %v11492_v12 = vpack.c.bf16 %v71_v11, %v70_v8  ;;  %v84_v8 = vld [vmem:[%s13108_s10 + $0x38] sm:$0xff] }
  0x17   :  { %8206 = vmatmul.mubr.f32.vlgmr.msra.gmra.mrb[2].mxu1 %v11174_v6  ;;  %v11486_v10 = vpack.c.bf16 %v69_v7, %v68_v5  ;;  %v11514_v34 = vld [vmem:[%s13112_s14] sm:$0xff]  ;;  %v83_v7 = vld [vmem:[%s13108_s10 + $0x30] sm:$0xff] }
  0x18   :  { %8282 = vmatprep.mubr.msk.f32.mxu1 %vm11173_vm0, %v11174_v6  ;;  %v11524_v39 = vld [vmem:[%s13106_s8] ss:$0 sm:$0xff]  ;;  %v11603_v11 = vpack.c.bf16 %v84_v8, %v83_v7 }
  0x1d   :  { %9853 = vmatpush3.bf16.xpose.msk.msra.mxu1 %vm11438_vm3, %v11336_v19 }
  0x1e   :  { %9854 = vmatprep.subr.bf16.mxu1 %v11172_v3 }
  0x25   :  { %9857 = vmatpush3.bf16.xpose.msk.msra.mxu1 %vm11438_vm3, %v11346_v23 }
  0x26   :  { %9858 = vmatprep.subr.bf16.mxu1 %v11172_v3 }
  0x2d   :  { %9861 = vmatpush3.bf16.xpose.msk.msra.mxu1 %vm11438_vm3, %v11358_v26 }
  0x2e   :  { %9862 = vmatprep.subr.bf16.mxu1 %v11172_v3 }
  0x35   :  { %9865 = vmatpush3.bf16.xpose.msk.msra.mxu1 %vm11438_vm3, %v11368_v29 }
  0x36   :  { %9866 = vmatprep.subr.bf16.mxu1 %v11172_v3 }
  0x3d   :  { %9869 = vmatpush3.bf16.xpose.msk.msra.mxu1 %vm11438_vm3, %v11379_v32 }
  0x3e   :  { %9870 = vmatprep.subr.bf16.mxu1 %v11172_v3 }
  0x45   :  { %9873 = vmatpush3.bf16.xpose.msk.msra.mxu1 %vm11438_vm3, %v11389_v35 }
  0x46   :  { %9874 = vmatprep.subr.bf16.mxu1 %v11172_v3 }
  0x4d   :  { %9877 = vmatpush3.bf16.xpose.msk.msra.mxu1 %vm11438_vm3, %v11398_v38 }
  0x4e   :  { %9878 = vmatprep.subr.bf16.mxu1 %v11172_v3 }
  0x55   :  { %9881 = vmatpush3.bf16.xpose.msk.msra.mxu1 %vm11438_vm3, %v11409_v41 }
  0x56   :  { %9920 = vmatprep.subr.bf16.mxu1 %v11172_v3 }
  0x76   :  { %v11328_v16 = vpop.permute.xlu0 %284 }
  0x81   :  { %v314_v22 = vpop.permute.xlu0 %313 }
  0x82   :  { %8213 = vmatmul.mubr.msk.f32.vlgmr.msra.gmra.mrb[0].mxu0 %vm124_vm1, %v314_v22 }
  0x83   :  { %9828 = vmatpush3.bf16.msra.mxu0 %v11336_v19  ;;  %8247 = vmatprep.mubr.msk.f32.mxu0 %vm11173_vm0, %v11174_v6 }
  0x84   :  { %9829 = vmatprep.subr.bf16.mxu0 %v11172_v3 }
  0x87   :  { %9831 = vmatpush3.bf16.msra.mxu0 %v11346_v23 }
  0x88   :  { %9832 = vmatprep.subr.bf16.mxu0 %v11172_v3 }
  0x8b   :  { %9834 = vmatpush3.bf16.msra.mxu0 %v11358_v26 }
  0x8c   :  { %9835 = vmatprep.subr.bf16.mxu0 %v11172_v3 }
  0x8f   :  { %9837 = vmatpush3.bf16.msra.mxu0 %v11368_v29 }
  0x90   :  { %9838 = vmatprep.subr.bf16.mxu0 %v11172_v3 }
  0x93   :  { %9840 = vmatpush3.bf16.msra.mxu0 %v11379_v32 }
  0x94   :  { %9841 = vmatprep.subr.bf16.mxu0 %v11172_v3 }
  0x97   :  { %9843 = vmatpush3.bf16.msra.mxu0 %v11389_v35 }
  0x98   :  { %9844 = vmatprep.subr.bf16.mxu0 %v11172_v3 }
  0x9b   :  { %9846 = vmatpush3.bf16.msra.mxu0 %v11398_v38 }
  0x9c   :  { %9847 = vmatprep.subr.bf16.mxu0 %v11172_v3 }
  0x9f   :  { %9849 = vmatpush3.bf16.msra.mxu0 %v11409_v41 }
  0xa0   :  { %9882 = vmatprep.subr.bf16.mxu0 %v11172_v3 }
  0xe2   :  { %v194_v42 = vpop.f32.mrb[0].mxu1 }
  0xe3   :  { %v8196_v43 = vpop.f32.mrb[1].mxu1  ;;  %v195_v48 = vadd.f32 %v11418_v47, %v194_v42 }
  0xea   :  { %v268_v44 = vpop.f32.mrb[2].mxu1 }
  0xeb   :  { %v8207_v45 = vpop.f32.mrb[3].mxu1  ;;  %v287_v46 = vadd.f32 %v11328_v16, %v268_v44  ;;  %v272_v49 = vadd.f32 %v268_v44, %v195_v48 }
  0xed   :  { %289 = vrot.lane.b32.xlu1 %v287_v46, %s11171_s30  ;;  %v7059_v50 = vmul.f32 -1.442695, %v272_v49 }
  0xef   :  { %10957 = vpow2.f32 %v7059_v50 }
  0xf9   :  { %v10958_v51 = vpop.eup %10957 }
  0xfa   :  { %v276_v52 = vadd.f32 1.0, %v10958_v51 }
  0xfc   :  { %10959 = vrcp.f32 %v276_v52 }
 0x106   :  { %v10960_v57 = vpop.eup %10959 }
 0x107   :  { %v299_v25 = vsub.f32 1.0, %v10960_v57  ;;  %v305_v28 = vmul.f32 0.0, %v10960_v57 }
 0x155   :  { %v383_v54 = vpop.f32.mrb[0].mxu0 }
 0x156   :  { %v384_v55 = vadd.f32 %v11424_v53, %v383_v54  ;;  %v8214_v56 = vpop.f32.mrb[1].mxu0 }
 0x157   :  { %v77_v56 = vld [vmem:[%s13108_s10] sm:$0xff] }
 0x158   :  { %10961 = vtanh.f32 %v384_v55  ;;  %v7107_v55 = vld [vmem:[%s13121_s20 + $0x8] sm:$0xff] }
 0x15f   :  { %v290_v58 = vpop.permute.xlu1 %289 }
 0x160   :  { %v292_v60 = vmul.f32 %v10960_v57, %v290_v58  ;;  %v78_v57 = vld [vmem:[%s13108_s10 + $0x8] sm:$0xff]  ;;  %v79_v58 = vld [vmem:[%s13108_s10 + $0x10] sm:$0xff] }
 0x162   :  { %v10962_v61 = vpop.eup %10961  ;;  %294 = vrot.lane.b32.xlu1 %v292_v60, %s11171_s30  ;;  %v11577_v60 = vpack.c.bf16 %v78_v57, %v77_v56 }
 0x163   :  { %v11434_v62 = vadd.f32 %v10962_v61, %v11430_v59  ;;  %v80_v61 = vld [vmem:[%s13108_s10 + $0x18] sm:$0xff] }
 0x165   :  { %v395_v0 = vmul.f32 0.0, %v11434_v62 }
 0x167   :  { %8248 = vmatmul.mubr.f32.vlgmr.msra.gmra.mrb[2].mxu0 %v395_v0  ;;  %v11583_v0 = vpack.c.bf16 %v80_v61, %v79_v58 }
 0x168   :  { %8293 = vmatprep.mubr.msk.f32.mxu0 %vm11173_vm0, %v11174_v6  ;;  %9884 = vmatpush3.bf16.msra.mxu0 %v11486_v10 }
 0x169   :  { %9885 = vmatprep.subr.bf16.mxu0 %v11172_v3 }
 0x16c   :  { %9887 = vmatpush3.bf16.msra.mxu0 %v11492_v12 }
 0x16d   :  { %8296 = vmatprep.subr.mxu0 %v11174_v6 }
 0x1d4   :  { %v295_v1 = vpop.permute.xlu1 %294 }
 0x1d5   :  { %v297_v2 = vadd.f32 %v295_v1, %v195_v48  ;;  %v81_v1 = vld [vmem:[%s13108_s10 + $0x20] sm:$0xff] }
 0x1d7   :  { %10963 = vtanh.f32 %v297_v2  ;;  %v82_v2 = vld [vmem:[%s13108_s10 + $0x28] sm:$0xff] }
 0x1d8   :  { %v11593_v5 = vpack.c.bf16 %v82_v2, %v81_v1 }
 0x1e1   :  { %v10964_v13 = vpop.eup %10963 }
 0x1e2   :  { %301 = vrot.lane.b32.xlu0 %v10964_v13, %s11176_s3  ;;  %v85_v13 = vld [vmem:[%s13108_s10 + $0x40] sm:$0xff] }
 0x23a   :  { %v462_v17 = vpop.f32.mrb[2].mxu0 }
 0x23b   :  { %v7064_v18 = vmul.f32 -1.442695, %v462_v17  ;;  %v8249_v20 = vpop.f32.mrb[3].mxu0  ;;  %v86_v17 = vld [vmem:[%s13108_s10 + $0x48] sm:$0xff] }
 0x23c   :  { %v87_v20 = vld [vmem:[%s13108_s10 + $0x50] sm:$0xff] }
 0x23d   :  { %10965 = vpow2.f32 %v7064_v18  ;;  %v11613_v18 = vpack.c.bf16 %v86_v17, %v85_v13  ;;  %v94_v17 = vld [vmem:[%s13110_s12] sm:$0xff] }
 0x247   :  { %v10966_v21 = vpop.eup %10965 }
 0x248   :  { %v469_v22 = vadd.f32 1.0, %v10966_v21  ;;  %v88_v21 = vld [vmem:[%s13108_s10 + $0x58] sm:$0xff] }
 0x24a   :  { %10967 = vrcp.f32 %v469_v22  ;;  %v11623_v22 = vpack.c.bf16 %v88_v21, %v87_v20  ;;  %v96_v20 = vld [vmem:[%s13110_s12 + $0x10] sm:$0xff] }
 0x254   :  { %v10968_v24 = vpop.eup %10967  ;;  %v302_v27 = vpop.permute.xlu0 %301 }
 0x255   :  { %8283 = vmatmul.mubr.msk.f32.vlgmr.msra.gmra.mrb[4].mxu1 %vm472_vm2, %v10968_v24  ;;  %v304_v30 = vmul.f32 %v302_v27, %v299_v25  ;;  %v89_v24 = vld [vmem:[%s13108_s10 + $0x60] sm:$0xff]  ;;  %v90_v25 = vld [vmem:[%s13108_s10 + $0x68] sm:$0xff] }
 0x256   :  { %8368 = vmatprep.mubr.msk.f32.mxu1 %vm11173_vm0, %v11174_v6  ;;  %9922 = vmatpush3.bf16.msra.mxu1 %v11577_v60  ;;  %v11633_v27 = vpack.c.bf16 %v90_v25, %v89_v24  ;;  %v97_v24 = vld [vmem:[%s13110_s12 + $0x18] sm:$0xff] }
 0x257   :  { %v11501_v31 = vadd.f32 %v305_v28, %v304_v30  ;;  %9923 = vmatprep.subr.bf16.mxu1 %v11172_v3  ;;  %v91_v28 = vld [vmem:[%s13108_s10 + $0x70] sm:$0xff]  ;;  %v92_v30 = vld [vmem:[%s13108_s10 + $0x78] sm:$0xff]  ;;  %v11746_v25 = vpack.c.bf16 %v97_v24, %v96_v20 }
 0x259   :  { %605 = vrot.lane.b32.xlu1 %v11501_v31, %s11176_s3 }
 0x25a   :  { %9925 = vmatpush3.bf16.msra.mxu1 %v11583_v0 }
 0x25b   :  { %9926 = vmatprep.subr.bf16.mxu1 %v11172_v3 }
 0x25e   :  { %9928 = vmatpush3.bf16.msra.mxu1 %v11593_v5 }
 0x25f   :  { %9929 = vmatprep.subr.bf16.mxu1 %v11172_v3 }
 0x262   :  { %9931 = vmatpush3.bf16.msra.mxu1 %v11603_v11 }
 0x263   :  { %9932 = vmatprep.subr.bf16.mxu1 %v11172_v3 }
 0x266   :  { %9934 = vmatpush3.bf16.msra.mxu1 %v11613_v18 }
 0x267   :  { %9935 = vmatprep.subr.bf16.mxu1 %v11172_v3 }
 0x26a   :  { %9937 = vmatpush3.bf16.msra.mxu1 %v11623_v22 }
 0x26b   :  { %9938 = vmatprep.subr.bf16.mxu1 %v11172_v3 }
 0x26e   :  { %9940 = vmatpush3.bf16.msra.mxu1 %v11633_v27 }
 0x26f   :  { %9941 = vmatprep.subr.bf16.mxu1 %v11172_v3 }
 0x2cb   :  { %v11505_v33 = vpop.permute.xlu1 %605 }
 0x2cc   :  { %8294 = vmatmul.mubr.msk.f32.vlgmr.msra.gmra.mrb[4].mxu0 %vm198_vm4, %v11505_v33 }
 0x2cd   :  { %8298 = vmatprep.mubr.msk.f32.mxu0 %vm11173_vm0, %v11174_v6  ;;  %8297 = vmatpush3.xpose.msk.msra.mxu0 %vm124_vm1, %v11514_v34 }
 0x2ce   :  { %9888 = vmatprep.subr.bf16.mxu0 %v11172_v3 }
 0x328   :  { %v11519_v36 = vpop.f32.mrb[4].mxu1 }
 0x329   :  { %v8284_v37 = vpop.f32.mrb[5].mxu1 }
 0x32a   :  { %v11643_v37 = vpack.c.bf16 %v92_v30, %v91_v28 }
 0x32c   :  { %9943 = vmatpush3.bf16.msra.mxu1 %v11643_v37 }
 0x32d   :  { %9944 = vmatprep.subr.bf16.mxu1 %v11172_v3 }
 0x39f   :  { %v675_v40 = vpop.f32.mrb[4].mxu0 }
 0x3a0   :  { %v676_v42 = vadd.f32 %v11524_v39, %v675_v40  ;;  %v8295_v43 = vpop.f32.mrb[5].mxu0 }
 0x3a2   :  { %10969 = vtanh.f32 %v676_v42 }
 0x3ac   :  { %v10970_v44 = vpop.eup %10969 }
 0x3ad   :  { %8299 = vmatmul.mubr.msk.f32.vlgmr.msra.gmra.mrb[6].mxu0 %vm124_vm1, %v10970_v44  ;;  %v594_v44 = vsub.f32 1.0, %v11519_v36 }
 0x3ae   :  { %9891 = vmatpush3.bf16.xpose.msk.msra.mxu0 %vm11438_vm3, %v11336_v19  ;;  %8333 = vmatprep.mubr.msk.f32.mxu0 %vm11173_vm0, %v11174_v6 }
 0x3af   :  { %9892 = vmatprep.subr.bf16.mxu0 %v11172_v3 }
 0x3b6   :  { %9895 = vmatpush3.bf16.xpose.msk.msra.mxu0 %vm11438_vm3, %v11346_v23 }
 0x3b7   :  { %9896 = vmatprep.subr.bf16.mxu0 %v11172_v3 }
 0x3be   :  { %9899 = vmatpush3.bf16.xpose.msk.msra.mxu0 %vm11438_vm3, %v11358_v26 }
 0x3bf   :  { %9900 = vmatprep.subr.bf16.mxu0 %v11172_v3 }
 0x3c6   :  { %9903 = vmatpush3.bf16.xpose.msk.msra.mxu0 %vm11438_vm3, %v11368_v29 }
 0x3c7   :  { %9904 = vmatprep.subr.bf16.mxu0 %v11172_v3 }
 0x3ce   :  { %9907 = vmatpush3.bf16.xpose.msk.msra.mxu0 %vm11438_vm3, %v11379_v32 }
 0x3cf   :  { %9908 = vmatprep.subr.bf16.mxu0 %v11172_v3 }
 0x3d6   :  { %9911 = vmatpush3.bf16.xpose.msk.msra.mxu0 %vm11438_vm3, %v11389_v35 }
 0x3d7   :  { %9912 = vmatprep.subr.bf16.mxu0 %v11172_v3 }
 0x3de   :  { %9915 = vmatpush3.bf16.xpose.msk.msra.mxu0 %vm11438_vm3, %v11398_v38 }
 0x3df   :  { %9916 = vmatprep.subr.bf16.mxu0 %v11172_v3 }
 0x3e6   :  { %9919 = vmatpush3.bf16.xpose.msk.msra.mxu0 %vm11438_vm3, %v11409_v41 }
 0x3e7   :  { %9956 = vmatprep.subr.bf16.mxu0 %v11172_v3 }
 0x480   :  { %v752_v45 = vpop.f32.mrb[6].mxu0 }
 0x481   :  { %v8300_v46 = vpop.f32.mrb[7].mxu0  ;;  %v756_v48 = vsel %vm472_vm2, %v752_v45, -inf }
 0x482   :  { %757 = vmax.xlane.f32.xlu0 %v756_v48  ;;  %v596_v46 = vmul.f32 %v11519_v36, %v11434_v62  ;;  %v73_v48 = vld [vmem:[%s13107_s9] sm:$0xff]  ;;  %v75_v62 = vld [vmem:[%s13107_s9 + $0x10] sm:$0xff]  ;;  %v76_v36 = vld [vmem:[%s13107_s9 + $0x18] sm:$0xff] }
 0x483   :  { %v11717_v57 = vpack.c.bf16 %v76_v36, %v75_v62 }
 0x498   :  { %1242 = vrot.lane.b32.xlu0 %v7107_v55, %s11175_s18 }
 0x50f   :  { %v758_v49 = vpop.xlane.xlu0 %757 }
 0x510   :  { %v759_v50 = vsub.f32 %v752_v45, %v758_v49  ;;  %v595_v45 = vmul.f32 0.0, %v594_v44  ;;  %v74_v49 = vld [vmem:[%s13107_s9 + $0x8] sm:$0xff] }
 0x512   :  { %v760_v51 = vmul.f32 1.442695, %v759_v50  ;;  %v11705_v50 = vadd.f32 %v596_v46, %v595_v45  ;;  %v11755_v46 = vld [vmem:[%s13109_s11] ss:$0 sm:$0xff] }
 0x513   :  { %v1243_v62 = vpop.permute.xlu0 %1242 }
 0x514   :  { %10971 = vpow2.f32 %v760_v51 }
 0x51e   :  { %v10972_v52 = vpop.eup %10971 }
 0x51f   :  { %v762_v54 = vsel %vm472_vm2, %v10972_v52, 0.0 }
 0x520   :  { %763 = vadd.xlane.f32.xlu1 %v762_v54 }
 0x5ad   :  { %v764_v40 = vpop.xlane.xlu1 %763 }
 0x5ae   :  { %10973 = vrcp.f32 %v764_v40 }
 0x5b8   :  { %v10974_v42 = vpop.eup %10973 }
 0x5b9   :  { %v766_v43 = vmul.f32 %v10974_v42, %v10972_v52  ;;  %v11707_v52 = vpack.c.bf16 %v74_v49, %v73_v48 }
 0x5bb   :  { %8334 = vmatmul.mubr.msk.f32.vlgmr.msra.gmra.mrb[8].mxu0 %vm472_vm2, %v766_v43 }
 0x5bc   :  { %9958 = vmatpush3.bf16.msra.mxu0 %v11279_v4  ;;  %8397 = vmatprep.mubr.msk.f32.mxu0 %vm11173_vm0, %v11174_v6 }
 0x5bd   :  { %9959 = vmatprep.subr.bf16.mxu0 %v11172_v3 }
 0x5bf   :  { %8398 = vmatmul.mubr.msk.f32.vlgmr.msra.gmra.mrb[10].mxu0 %vm124_vm1, %v7107_v55 }
 0x5c0   :  { %9961 = vmatpush3.bf16.msra.mxu0 %v11294_v9  ;;  %8408 = vmatprep.mubr.msk.f32.mxu0 %vm11173_vm0, %v11174_v6 }
 0x5c1   :  { %9962 = vmatprep.subr.bf16.mxu0 %v11172_v3 }
 0x5c4   :  { %9964 = vmatpush3.bf16.msra.mxu0 %v11317_v15 }
 0x5c5   :  { %9992 = vmatprep.subr.bf16.mxu0 %v11172_v3 }
 0x5c7   :  { %8409 = vmatmul.mubr.msk.f32.vlgmr.msra.gmra.mrb[12].mxu0 %vm198_vm4, %v11505_v33 }
 0x5c8   :  { %8485 = vmatprep.mubr.msk.f32.mxu0 %vm11173_vm0, %v11174_v6 }
 0x5cd   :  { %9995 = vmatpush3.bf16.xpose.msk.msra.mxu0 %vm11438_vm3, %v11336_v19 }
 0x5ce   :  { %9996 = vmatprep.subr.bf16.mxu0 %v11172_v3 }
 0x5d5   :  { %9999 = vmatpush3.bf16.xpose.msk.msra.mxu0 %vm11438_vm3, %v11346_v23 }
 0x5d6   :  { %10000 = vmatprep.subr.bf16.mxu0 %v11172_v3 }
 0x5dd   :  { %10003 = vmatpush3.bf16.xpose.msk.msra.mxu0 %vm11438_vm3, %v11358_v26 }
 0x5de   :  { %10004 = vmatprep.subr.bf16.mxu0 %v11172_v3 }
 0x5e5   :  { %10007 = vmatpush3.bf16.xpose.msk.msra.mxu0 %vm11438_vm3, %v11368_v29 }
 0x5e6   :  { %10008 = vmatprep.subr.bf16.mxu0 %v11172_v3 }
 0x5ed   :  { %10011 = vmatpush3.bf16.xpose.msk.msra.mxu0 %vm11438_vm3, %v11379_v32 }
 0x5ee   :  { %10012 = vmatprep.subr.bf16.mxu0 %v11172_v3 }
 0x5f5   :  { %10015 = vmatpush3.bf16.xpose.msk.msra.mxu0 %vm11438_vm3, %v11389_v35 }
 0x5f6   :  { %10016 = vmatprep.subr.bf16.mxu0 %v11172_v3 }
 0x5fd   :  { %10019 = vmatpush3.bf16.xpose.msk.msra.mxu0 %vm11438_vm3, %v11398_v38 }
 0x5fe   :  { %10020 = vmatprep.subr.bf16.mxu0 %v11172_v3 }
 0x605   :  { %10023 = vmatpush3.bf16.xpose.msk.msra.mxu0 %vm11438_vm3, %v11409_v41 }
 0x606   :  { %10062 = vmatprep.subr.bf16.mxu0 %v11172_v3 }
 0x68e   :  { %v836_v51 = vpop.f32.mrb[8].mxu0 }
 0x68f   :  { %v840_v54 = vmul.f32 %v836_v51, %v11705_v50  ;;  %v8335_v55 = vpop.f32.mrb[9].mxu0 }
 0x691   :  { %8369 = vmatmul.mubr.f32.vlgmr.msra.gmra.mrb[6].mxu1 %v840_v54 }
 0x692   :  { %9946 = vmatpush3.bf16.msra.mxu1 %v11707_v52  ;;  %v1141_v56 = vpop.f32.mrb[10].mxu0  ;;  %8379 = vmatprep.mubr.msk.f32.mxu1 %vm11173_vm0, %v11174_v6 }
 0x693   :  { %v8399_v58 = vpop.f32.mrb[11].mxu0  ;;  %9947 = vmatprep.subr.bf16.mxu1 %v11172_v3  ;;  %v1142_v7 = vadd.f32 %v11418_v47, %v1141_v56 }
 0x696   :  { %9949 = vmatpush3.bf16.msra.mxu1 %v11717_v57 }
 0x697   :  { %9950 = vmatprep.subr.bf16.mxu1 %v11172_v3 }
 0x699   :  { %8380 = vmatmul.mubr.msk.f32.vlgmr.msra.gmra.mrb[8].mxu1 %vm198_vm4, %v11505_v33  ;;  %v95_v33 = vld [vmem:[%s13110_s12 + $0x8] sm:$0xff] }
 0x69a   :  { %v1211_v61 = vpop.f32.mrb[12].mxu0  ;;  %8390 = vmatprep.mubr.msk.f32.mxu1 %vm11173_vm0, %v11174_v6  ;;  %v11740_v21 = vpack.c.bf16 %v95_v33, %v94_v17 }
 0x69b   :  { %v1222_v1 = vadd.f32 %v1211_v61, %v11328_v16  ;;  %v8410_v2 = vpop.f32.mrb[13].mxu0  ;;  %v1215_v8 = vadd.f32 %v1211_v61, %v1142_v7 }
 0x69c   :  { %9952 = vmatpush3.bf16.msra.mxu1 %v11740_v21 }
 0x69d   :  { %1224 = vrot.lane.b32.xlu1 %v1222_v1, %s11171_s30  ;;  %v7110_v13 = vmul.f32 -1.442695, %v1215_v8  ;;  %9953 = vmatprep.subr.bf16.mxu1 %v11172_v3 }
 0x69f   :  { %10975 = vpow2.f32 %v7110_v13 }
 0x6a0   :  { %9955 = vmatpush3.bf16.msra.mxu1 %v11746_v25 }
 0x6a1   :  { %9965 = vmatprep.subr.bf16.mxu1 %v11172_v3 }
 0x6a9   :  { %v10976_v28 = vpop.eup %10975 }
 0x6aa   :  { %v1219_v30 = vadd.f32 1.0, %v10976_v28 }
 0x6ac   :  { %10977 = vrcp.f32 %v1219_v30 }
 0x6b6   :  { %v10978_v40 = vpop.eup %10977 }
 0x6b7   :  { %v1234_v61 = vsub.f32 1.0, %v10978_v40  ;;  %v1240_v2 = vmul.f32 %v10978_v40, %v11501_v31 }
 0x70f   :  { %v1225_v42 = vpop.permute.xlu1 %1224 }
 0x710   :  { %v1227_v43 = vmul.f32 %v10978_v40, %v1225_v42 }
 0x712   :  { %1229 = vrot.lane.b32.xlu0 %v1227_v43, %s11171_s30 }
 0x764   :  { %v907_v44 = vpop.f32.mrb[6].mxu1 }
 0x765   :  { %v8370_v45 = vpop.f32.mrb[7].mxu1 }
 0x76c   :  { %v977_v48 = vpop.f32.mrb[8].mxu1 }
 0x76d   :  { %v978_v49 = vadd.f32 %v977_v48, %v907_v44  ;;  %v8381_v51 = vpop.f32.mrb[9].mxu1 }
 0x76f   :  { %v987_v54 = vadd.f32 %v11755_v46, %v978_v49 }
 0x771   :  { %10979 = vtanh.f32 %v987_v54 }
 0x77b   :  { %v10980_v55 = vpop.eup %10979 }
 0x77c   :  { %8391 = vmatmul.mubr.msk.f32.vlgmr.msra.gmra.mrb[10].mxu1 %vm198_vm4, %v10980_v55 }
 0x77d   :  { %9967 = vmatpush3.bf16.msra.mxu1 %v11311_v14  ;;  %8415 = vmatprep.mubr.msk.f32.mxu1 %vm11173_vm0, %v11174_v6 }
 0x77e   :  { %9968 = vmatprep.subr.bf16.mxu1 %v11172_v3 }
 0x780   :  { %8416 = vmatmul.mubr.msk.f32.vlgmr.msra.gmra.mrb[12].mxu1 %vm124_vm1, %v1243_v62 }
 0x781   :  { %9970 = vmatpush3.bf16.msra.mxu1 %v11336_v19  ;;  %8450 = vmatprep.mubr.msk.f32.mxu1 %vm11173_vm0, %v11174_v6 }
 0x782   :  { %9971 = vmatprep.subr.bf16.mxu1 %v11172_v3 }
 0x784   :  { %v1230_v36 = vpop.permute.xlu0 %1229 }
 0x785   :  { %v1232_v56 = vadd.f32 %v1230_v36, %v1142_v7  ;;  %9973 = vmatpush3.bf16.msra.mxu1 %v11346_v23 }
 0x786   :  { %9974 = vmatprep.subr.bf16.mxu1 %v11172_v3 }
 0x787   :  { %10981 = vtanh.f32 %v1232_v56 }
 0x789   :  { %9976 = vmatpush3.bf16.msra.mxu1 %v11358_v26 }
 0x78a   :  { %9977 = vmatprep.subr.bf16.mxu1 %v11172_v3 }
 0x78d   :  { %9979 = vmatpush3.bf16.msra.mxu1 %v11368_v29 }
 0x78e   :  { %9980 = vmatprep.subr.bf16.mxu1 %v11172_v3 }
 0x791   :  { %v10982_v58 = vpop.eup %10981  ;;  %9982 = vmatpush3.bf16.msra.mxu1 %v11379_v32 }
 0x792   :  { %1236 = vrot.lane.b32.xlu1 %v10982_v58, %s11176_s3  ;;  %9983 = vmatprep.subr.bf16.mxu1 %v11172_v3 }
 0x795   :  { %9985 = vmatpush3.bf16.msra.mxu1 %v11389_v35 }
 0x796   :  { %9986 = vmatprep.subr.bf16.mxu1 %v11172_v3 }
 0x799   :  { %9988 = vmatpush3.bf16.msra.mxu1 %v11398_v38 }
 0x79a   :  { %9989 = vmatprep.subr.bf16.mxu1 %v11172_v3 }
 0x79d   :  { %9991 = vmatpush3.bf16.msra.mxu1 %v11409_v41 }
 0x79e   :  { %10024 = vmatprep.subr.bf16.mxu1 %v11172_v3 }
 0x804   :  { %v1237_v1 = vpop.permute.xlu1 %1236 }
 0x805   :  { %v1239_v7 = vmul.f32 %v1237_v1, %v1234_v61 }
 0x807   :  { %v11784_v8 = vadd.f32 %v1240_v2, %v1239_v7 }
 0x809   :  { %1473 = vrot.lane.b32.xlu0 %v11784_v8, %s11176_s3 }
 0x84f   :  { %v11788_v13 = vpop.f32.mrb[10].mxu1 }
 0x850   :  { %v8392_v17 = vpop.f32.mrb[11].mxu1 }
 0x853   :  { %v1312_v33 = vpop.f32.mrb[12].mxu1 }
 0x854   :  { %v1313_v20 = vadd.f32 %v11424_v53, %v1312_v33  ;;  %v8417_v24 = vpop.f32.mrb[13].mxu1 }
 0x855   :  { %v7152_v24 = vld [vmem:[%s13121_s20 + $0x10] sm:$0xff] }
 0x856   :  { %10983 = vtanh.f32 %v1313_v20 }
 0x860   :  { %v10984_v28 = vpop.eup %10983 }
 0x861   :  { %v11792_v30 = vadd.f32 %v10984_v28, %v11430_v59 }
 0x863   :  { %v1318_v31 = vmul.f32 %v11792_v30, %v11705_v50 }
 0x865   :  { %8451 = vmatmul.mubr.f32.vlgmr.msra.gmra.mrb[14].mxu1 %v1318_v31 }
 0x866   :  { %10026 = vmatpush3.bf16.msra.mxu1 %v11486_v10  ;;  %8496 = vmatprep.mubr.msk.f32.mxu1 %vm11173_vm0, %v11174_v6 }
 0x867   :  { %10027 = vmatprep.subr.bf16.mxu1 %v11172_v3 }
 0x86a   :  { %10029 = vmatpush3.bf16.msra.mxu1 %v11492_v12 }
 0x86b   :  { %8499 = vmatprep.subr.mxu1 %v11174_v6 }
 0x87b   :  { %v11802_v40 = vpop.permute.xlu0 %1473 }
 0x87c   :  { %8497 = vmatmul.mubr.msk.f32.vlgmr.msra.gmra.mrb[16].mxu1 %vm198_vm4, %v11802_v40 }
 0x87d   :  { %8500 = vmatpush3.xpose.msk.msra.mxu1 %vm124_vm1, %v11514_v34  ;;  %8501 = vmatprep.mubr.msk.f32.mxu1 %vm11173_vm0, %v11174_v6 }
 0x87e   :  { %10030 = vmatprep.subr.bf16.mxu1 %v11172_v3 }
 0x938   :  { %v1385_v42 = vpop.f32.mrb[14].mxu1 }
 0x939   :  { %v7112_v43 = vmul.f32 -1.442695, %v1385_v42  ;;  %v8452_v44 = vpop.f32.mrb[15].mxu1 }
 0x93b   :  { %10985 = vpow2.f32 %v7112_v43 }
 0x945   :  { %v10986_v45 = vpop.eup %10985 }
 0x946   :  { %v1392_v48 = vadd.f32 1.0, %v10986_v45 }
 0x948   :  { %10987 = vrcp.f32 %v1392_v48 }
 0x94f   :  { %v1543_v49 = vpop.f32.mrb[16].mxu1 }
 0x950   :  { %v1544_v51 = vadd.f32 %v11524_v39, %v1543_v49  ;;  %v8498_v54 = vpop.f32.mrb[17].mxu1 }
 0x952   :  { %v10988_v55 = vpop.eup %10987  ;;  %10989 = vtanh.f32 %v1544_v51 }
 0x953   :  { %8486 = vmatmul.mubr.msk.f32.vlgmr.msra.gmra.mrb[14].mxu0 %vm472_vm2, %v10988_v55 }
 0x954   :  { %10064 = vmatpush3.bf16.msra.mxu0 %v11577_v60  ;;  %8571 = vmatprep.mubr.msk.f32.mxu0 %vm11173_vm0, %v11174_v6 }
 0x955   :  { %10065 = vmatprep.subr.bf16.mxu0 %v11172_v3 }
 0x958   :  { %10067 = vmatpush3.bf16.msra.mxu0 %v11583_v0 }
 0x959   :  { %10068 = vmatprep.subr.bf16.mxu0 %v11172_v3 }
 0x95c   :  { %v10990_v62 = vpop.eup %10989  ;;  %10070 = vmatpush3.bf16.msra.mxu0 %v11593_v5 }
 0x95d   :  { %8502 = vmatmul.mubr.msk.f32.vlgmr.msra.gmra.mrb[18].mxu1 %vm124_vm1, %v10990_v62  ;;  %10071 = vmatprep.subr.bf16.mxu0 %v11172_v3 }
 0x95e   :  { %10033 = vmatpush3.bf16.xpose.msk.msra.mxu1 %vm11438_vm3, %v11336_v19  ;;  %8536 = vmatprep.mubr.msk.f32.mxu1 %vm11173_vm0, %v11174_v6 }
 0x95f   :  { %10034 = vmatprep.subr.bf16.mxu1 %v11172_v3 }
 0x960   :  { %10073 = vmatpush3.bf16.msra.mxu0 %v11603_v11 }
 0x961   :  { %10074 = vmatprep.subr.bf16.mxu0 %v11172_v3 }
 0x964   :  { %10076 = vmatpush3.bf16.msra.mxu0 %v11613_v18 }
 0x965   :  { %10077 = vmatprep.subr.bf16.mxu0 %v11172_v3 }
 0x966   :  { %10037 = vmatpush3.bf16.xpose.msk.msra.mxu1 %vm11438_vm3, %v11346_v23 }
 0x967   :  { %10038 = vmatprep.subr.bf16.mxu1 %v11172_v3 }
 0x968   :  { %10079 = vmatpush3.bf16.msra.mxu0 %v11623_v22 }
 0x969   :  { %10080 = vmatprep.subr.bf16.mxu0 %v11172_v3 }
 0x96c   :  { %10082 = vmatpush3.bf16.msra.mxu0 %v11633_v27 }
 0x96d   :  { %10083 = vmatprep.subr.bf16.mxu0 %v11172_v3 }
 0x96e   :  { %10041 = vmatpush3.bf16.xpose.msk.msra.mxu1 %vm11438_vm3, %v11358_v26 }
 0x96f   :  { %10042 = vmatprep.subr.bf16.mxu1 %v11172_v3 }
 0x970   :  { %10085 = vmatpush3.bf16.msra.mxu0 %v11643_v37 }
 0x971   :  { %10086 = vmatprep.subr.bf16.mxu0 %v11172_v3 }
 0x976   :  { %10045 = vmatpush3.bf16.xpose.msk.msra.mxu1 %vm11438_vm3, %v11368_v29 }
 0x977   :  { %10046 = vmatprep.subr.bf16.mxu1 %v11172_v3 }
 0x97e   :  { %10049 = vmatpush3.bf16.xpose.msk.msra.mxu1 %vm11438_vm3, %v11379_v32 }
 0x97f   :  { %10050 = vmatprep.subr.bf16.mxu1 %v11172_v3 }
 0x986   :  { %10053 = vmatpush3.bf16.xpose.msk.msra.mxu1 %vm11438_vm3, %v11389_v35 }
 0x987   :  { %10054 = vmatprep.subr.bf16.mxu1 %v11172_v3 }
 0x98e   :  { %10057 = vmatpush3.bf16.xpose.msk.msra.mxu1 %vm11438_vm3, %v11398_v38 }
 0x98f   :  { %10058 = vmatprep.subr.bf16.mxu1 %v11172_v3 }
 0x996   :  { %10061 = vmatpush3.bf16.xpose.msk.msra.mxu1 %vm11438_vm3, %v11409_v41 }
 0x997   :  { %10098 = vmatprep.subr.bf16.mxu1 %v11172_v3 }
 0xa26   :  { %v1464_v36 = vpop.f32.mrb[14].mxu0 }
 0xa27   :  { %v8487_v56 = vpop.f32.mrb[15].mxu0  ;;  %v1468_v43 = vsub.f32 1.0, %v1464_v36  ;;  %v1470_v45 = vmul.f32 %v1464_v36, %v11792_v30 }
 0xa29   :  { %v1469_v44 = vmul.f32 %v1468_v43, %v11705_v50 }
 0xa2b   :  { %v11922_v48 = vadd.f32 %v1470_v45, %v1469_v44 }
 0xa30   :  { %v1617_v58 = vpop.f32.mrb[18].mxu1 }
 0xa31   :  { %v8503_v61 = vpop.f32.mrb[19].mxu1  ;;  %v1621_v1 = vsel %vm472_vm2, %v1617_v58, -inf }
 0xa32   :  { %1622 = vmax.xlane.f32.xlu1 %v1621_v1 }
 0xabf   :  { %v1623_v2 = vpop.xlane.xlu1 %1622 }
 0xac0   :  { %v1624_v7 = vsub.f32 %v1617_v58, %v1623_v2 }
 0xac2   :  { %v1625_v17 = vmul.f32 1.442695, %v1624_v7 }
 0xac4   :  { %10991 = vpow2.f32 %v1625_v17 }
 0xace   :  { %v10992_v33 = vpop.eup %10991 }
 0xacf   :  { %v1627_v20 = vsel %vm472_vm2, %v10992_v33, 0.0 }
 0xad0   :  { %1628 = vadd.xlane.f32.xlu0 %v1627_v20 }
 0xae6   :  { %2095 = vrot.lane.b32.xlu0 %v7152_v24, %s11175_s18 }
 0xb5d   :  { %v1629_v28 = vpop.xlane.xlu0 %1628 }
 0xb5e   :  { %10993 = vrcp.f32 %v1629_v28 }
 0xb61   :  { %v2096_v43 = vpop.permute.xlu0 %2095 }
 0xb68   :  { %v10994_v31 = vpop.eup %10993 }
 0xb69   :  { %v1631_v42 = vmul.f32 %v10994_v31, %v10992_v33 }
 0xb6b   :  { %8537 = vmatmul.mubr.msk.f32.vlgmr.msra.gmra.mrb[20].mxu1 %vm472_vm2, %v1631_v42 }
 0xb6c   :  { %10100 = vmatpush3.bf16.msra.mxu1 %v11279_v4  ;;  %8600 = vmatprep.mubr.msk.f32.mxu1 %vm11173_vm0, %v11174_v6 }
 0xb6d   :  { %10101 = vmatprep.subr.bf16.mxu1 %v11172_v3 }
 0xb6f   :  { %8601 = vmatmul.mubr.msk.f32.vlgmr.msra.gmra.mrb[22].mxu1 %vm124_vm1, %v7152_v24 }
 0xb70   :  { %10103 = vmatpush3.bf16.msra.mxu1 %v11294_v9  ;;  %8611 = vmatprep.mubr.msk.f32.mxu1 %vm11173_vm0, %v11174_v6 }
 0xb71   :  { %10104 = vmatprep.subr.bf16.mxu1 %v11172_v3 }
 0xb74   :  { %10106 = vmatpush3.bf16.msra.mxu1 %v11317_v15 }
 0xb75   :  { %10134 = vmatprep.subr.bf16.mxu1 %v11172_v3 }
 0xb77   :  { %8612 = vmatmul.mubr.msk.f32.vlgmr.msra.gmra.mrb[24].mxu1 %vm198_vm4, %v11802_v40 }
 0xb78   :  { %8688 = vmatprep.mubr.msk.f32.mxu1 %vm11173_vm0, %v11174_v6 }
 0xb7d   :  { %10137 = vmatpush3.bf16.xpose.msk.msra.mxu1 %vm11438_vm3, %v11336_v19 }
 0xb7e   :  { %10138 = vmatprep.subr.bf16.mxu1 %v11172_v3 }
 0xb85   :  { %10141 = vmatpush3.bf16.xpose.msk.msra.mxu1 %vm11438_vm3, %v11346_v23 }
 0xb86   :  { %10142 = vmatprep.subr.bf16.mxu1 %v11172_v3 }
 0xb8d   :  { %10145 = vmatpush3.bf16.xpose.msk.msra.mxu1 %vm11438_vm3, %v11358_v26 }
 0xb8e   :  { %10146 = vmatprep.subr.bf16.mxu1 %v11172_v3 }
 0xb95   :  { %10149 = vmatpush3.bf16.xpose.msk.msra.mxu1 %vm11438_vm3, %v11368_v29 }
 0xb96   :  { %10150 = vmatprep.subr.bf16.mxu1 %v11172_v3 }
 0xb9d   :  { %10153 = vmatpush3.bf16.xpose.msk.msra.mxu1 %vm11438_vm3, %v11379_v32 }
 0xb9e   :  { %10154 = vmatprep.subr.bf16.mxu1 %v11172_v3 }
 0xba5   :  { %10157 = vmatpush3.bf16.xpose.msk.msra.mxu1 %vm11438_vm3, %v11389_v35 }
 0xba6   :  { %10158 = vmatprep.subr.bf16.mxu1 %v11172_v3 }
 0xbad   :  { %10161 = vmatpush3.bf16.xpose.msk.msra.mxu1 %vm11438_vm3, %v11398_v38 }
 0xbae   :  { %10162 = vmatprep.subr.bf16.mxu1 %v11172_v3 }
 0xbb5   :  { %10165 = vmatpush3.bf16.xpose.msk.msra.mxu1 %vm11438_vm3, %v11409_v41 }
 0xbb6   :  { %10204 = vmatprep.subr.bf16.mxu1 %v11172_v3 }
 0xc3e   :  { %v1701_v49 = vpop.f32.mrb[20].mxu1 }
 0xc3f   :  { %v1705_v51 = vmul.f32 %v1701_v49, %v11922_v48  ;;  %v8538_v54 = vpop.f32.mrb[21].mxu1 }
 0xc41   :  { %8572 = vmatmul.mubr.f32.vlgmr.msra.gmra.mrb[16].mxu0 %v1705_v51 }
 0xc42   :  { %10088 = vmatpush3.bf16.msra.mxu0 %v11707_v52  ;;  %v1994_v55 = vpop.f32.mrb[22].mxu1  ;;  %8582 = vmatprep.mubr.msk.f32.mxu0 %vm11173_vm0, %v11174_v6 }
 0xc43   :  { %v8602_v62 = vpop.f32.mrb[23].mxu1  ;;  %10089 = vmatprep.subr.bf16.mxu0 %v11172_v3  ;;  %v1995_v56 = vadd.f32 %v11418_v47, %v1994_v55 }
 0xc46   :  { %10091 = vmatpush3.bf16.msra.mxu0 %v11717_v57 }
 0xc47   :  { %10092 = vmatprep.subr.bf16.mxu0 %v11172_v3 }
 0xc49   :  { %8583 = vmatmul.mubr.msk.f32.vlgmr.msra.gmra.mrb[18].mxu0 %vm198_vm4, %v11802_v40 }
 0xc4a   :  { %v2064_v50 = vpop.f32.mrb[24].mxu1  ;;  %10094 = vmatpush3.bf16.msra.mxu0 %v11740_v21  ;;  %8593 = vmatprep.mubr.msk.f32.mxu0 %vm11173_vm0, %v11174_v6 }
 0xc4b   :  { %v2075_v30 = vadd.f32 %v2064_v50, %v11328_v16  ;;  %v8613_v36 = vpop.f32.mrb[25].mxu1  ;;  %10095 = vmatprep.subr.bf16.mxu0 %v11172_v3  ;;  %v2068_v40 = vadd.f32 %v2064_v50, %v1995_v56 }
 0xc4d   :  { %2077 = vrot.lane.b32.xlu1 %v2075_v30, %s11171_s30  ;;  %v7155_v58 = vmul.f32 -1.442695, %v2068_v40  ;;  %v11977_v30 = vld [vmem:[%s13111_s13] ss:$0 sm:$0xff] }
 0xc4e   :  { %10097 = vmatpush3.bf16.msra.mxu0 %v11746_v25  ;;  %v1065_v36 = vadd.f32 %v11977_v30, %v11788_v13 }
 0xc4f   :  { %10107 = vmatprep.subr.bf16.mxu0 %v11172_v3  ;;  %10995 = vpow2.f32 %v7155_v58 }
 0xc59   :  { %v10996_v61 = vpop.eup %10995 }
 0xc5a   :  { %v2072_v1 = vadd.f32 1.0, %v10996_v61 }
 0xc5c   :  { %10997 = vrcp.f32 %v2072_v1 }
 0xc66   :  { %v10998_v2 = vpop.eup %10997 }
 0xc67   :  { %v2087_v51 = vsub.f32 1.0, %v10998_v2  ;;  %v2093_v55 = vmul.f32 %v10998_v2, %v11784_v8 }
 0xcbf   :  { %v2078_v7 = vpop.permute.xlu1 %2077 }
 0xcc0   :  { %v2080_v17 = vmul.f32 %v10998_v2, %v2078_v7 }
 0xcc2   :  { %2082 = vrot.lane.b32.xlu1 %v2080_v17, %s11171_s30 }
 0xd14   :  { %v1772_v33 = vpop.f32.mrb[16].mxu0 }
 0xd15   :  { %v8573_v20 = vpop.f32.mrb[17].mxu0 }
 0xd1c   :  { %v1842_v24 = vpop.f32.mrb[18].mxu0 }
 0xd1d   :  { %v1843_v28 = vadd.f32 %v1842_v24, %v1772_v33  ;;  %v8584_v31 = vpop.f32.mrb[19].mxu0 }
 0xd1f   :  { %v1846_v42 = vadd.f32 %v11755_v46, %v1843_v28 }
 0xd21   :  { %10999 = vtanh.f32 %v1846_v42 }
 0xd2b   :  { %v11000_v47 = vpop.eup %10999 }
 0xd2c   :  { %8594 = vmatmul.mubr.msk.f32.vlgmr.msra.gmra.mrb[20].mxu0 %vm198_vm4, %v11000_v47 }
 0xd2d   :  { %10109 = vmatpush3.bf16.msra.mxu0 %v11311_v14  ;;  %8618 = vmatprep.mubr.msk.f32.mxu0 %vm11173_vm0, %v11174_v6 }
 0xd2e   :  { %10110 = vmatprep.subr.bf16.mxu0 %v11172_v3 }
 0xd30   :  { %8619 = vmatmul.mubr.msk.f32.vlgmr.msra.gmra.mrb[22].mxu0 %vm124_vm1, %v2096_v43 }
 0xd31   :  { %10112 = vmatpush3.bf16.msra.mxu0 %v11336_v19  ;;  %8653 = vmatprep.mubr.msk.f32.mxu0 %vm11173_vm0, %v11174_v6 }
 0xd32   :  { %10113 = vmatprep.subr.bf16.mxu0 %v11172_v3 }
 0xd34   :  { %v2083_v44 = vpop.permute.xlu1 %2082 }
 0xd35   :  { %v2085_v45 = vadd.f32 %v2083_v44, %v1995_v56  ;;  %10115 = vmatpush3.bf16.msra.mxu0 %v11346_v23 }
 0xd36   :  { %10116 = vmatprep.subr.bf16.mxu0 %v11172_v3 }
 0xd37   :  { %11001 = vtanh.f32 %v2085_v45 }
 0xd38   :  { %11003 = vtanh.f32 %v1065_v36 }
 0xd39   :  { %10118 = vmatpush3.bf16.msra.mxu0 %v11358_v26 }
 0xd3a   :  { %10119 = vmatprep.subr.bf16.mxu0 %v11172_v3 }
 0xd3d   :  { %10121 = vmatpush3.bf16.msra.mxu0 %v11368_v29 }
 0xd3e   :  { %10122 = vmatprep.subr.bf16.mxu0 %v11172_v3 }
 0xd41   :  { %v11002_v49 = vpop.eup %11001  ;;  %10124 = vmatpush3.bf16.msra.mxu0 %v11379_v32 }
 0xd42   :  { %2089 = vrot.lane.b32.xlu0 %v11002_v49, %s11176_s3  ;;  %10125 = vmatprep.subr.bf16.mxu0 %v11172_v3  ;;  %v11004_v2 = vpop.eup %11003 }
 0xd45   :  { %10127 = vmatpush3.bf16.msra.mxu0 %v11389_v35 }
 0xd46   :  { %10128 = vmatprep.subr.bf16.mxu0 %v11172_v3 }
 0xd49   :  { %10130 = vmatpush3.bf16.msra.mxu0 %v11398_v38 }
 0xd4a   :  { %10131 = vmatprep.subr.bf16.mxu0 %v11172_v3 }
 0xd4d   :  { %10133 = vmatpush3.bf16.msra.mxu0 %v11409_v41 }
 0xd4e   :  { %10166 = vmatprep.subr.bf16.mxu0 %v11172_v3 }
 0xdb4   :  { %v2090_v54 = vpop.permute.xlu0 %2089 }
 0xdb5   :  { %v2092_v62 = vmul.f32 %v2090_v54, %v2087_v51 }
 0xdb7   :  { %v11970_v50 = vadd.f32 %v2093_v55, %v2092_v62 }
 0xdb9   :  { %2326 = vrot.lane.b32.xlu1 %v11970_v50, %s11176_s3 }
 0xdff   :  { %v1917_v56 = vpop.f32.mrb[20].mxu0 }
 0xe00   :  { %v1918_v40 = vadd.f32 %v11977_v30, %v1917_v56  ;;  %v8595_v58 = vpop.f32.mrb[21].mxu0 }
 0xe02   :  { %11005 = vtanh.f32 %v1918_v40 }
 0xe03   :  { %v2165_v8 = vpop.f32.mrb[22].mxu0 }
 0xe04   :  { %v2166_v61 = vadd.f32 %v11424_v53, %v2165_v8  ;;  %v8620_v1 = vpop.f32.mrb[23].mxu0  ;;  %v7197_v8 = vld [vmem:[%s13121_s20 + $0x18] sm:$0xff] }
 0xe06   :  { %11007 = vtanh.f32 %v2166_v61 }
 0xe0c   :  { %v11006_v7 = vpop.eup %11005 }
 0xe0d   :  { %v11983_v17 = vadd.f32 %v11006_v7, %v11004_v2 }
 0xe10   :  { %v11008_v33 = vpop.eup %11007 }
 0xe11   :  { %v11986_v20 = vadd.f32 %v11008_v33, %v11430_v59 }
 0xe13   :  { %v2171_v13 = vmul.f32 %v11986_v20, %v11922_v48 }
 0xe15   :  { %8654 = vmatmul.mubr.f32.vlgmr.msra.gmra.mrb[24].mxu0 %v2171_v13 }
 0xe16   :  { %10168 = vmatpush3.bf16.msra.mxu0 %v11486_v10  ;;  %8699 = vmatprep.mubr.msk.f32.mxu0 %vm11173_vm0, %v11174_v6 }
 0xe17   :  { %10169 = vmatprep.subr.bf16.mxu0 %v11172_v3 }
 0xe1a   :  { %10171 = vmatpush3.bf16.msra.mxu0 %v11492_v12 }
 0xe1b   :  { %8702 = vmatprep.subr.mxu0 %v11174_v6 }
 0xe2b   :  { %v11996_v53 = vpop.permute.xlu1 %2326 }
 0xe2c   :  { %8700 = vmatmul.mubr.msk.f32.vlgmr.msra.gmra.mrb[26].mxu0 %vm198_vm4, %v11996_v53 }
 0xe2d   :  { %8703 = vmatpush3.xpose.msk.msra.mxu0 %vm124_vm1, %v11514_v34  ;;  %8704 = vmatprep.mubr.msk.f32.mxu0 %vm11173_vm0, %v11174_v6 }
 0xe2e   :  { %10172 = vmatprep.subr.bf16.mxu0 %v11172_v3 }
 0xee8   :  { %v2238_v59 = vpop.f32.mrb[24].mxu0 }
 0xee9   :  { %v7157_v24 = vmul.f32 -1.442695, %v2238_v59  ;;  %v8655_v28 = vpop.f32.mrb[25].mxu0 }
 0xeeb   :  { %11009 = vpow2.f32 %v7157_v24 }
 0xef5   :  { %v11010_v31 = vpop.eup %11009 }
 0xef6   :  { %v2245_v42 = vadd.f32 1.0, %v11010_v31 }
 0xef8   :  { %11011 = vrcp.f32 %v2245_v42 }
 0xeff   :  { %v2396_v47 = vpop.f32.mrb[26].mxu0 }
 0xf00   :  { %v2397_v43 = vadd.f32 %v11524_v39, %v2396_v47  ;;  %v8701_v44 = vpop.f32.mrb[27].mxu0 }
 0xf02   :  { %v11012_v45 = vpop.eup %11011  ;;  %11013 = vtanh.f32 %v2397_v43 }
 0xf03   :  { %8689 = vmatmul.mubr.msk.f32.vlgmr.msra.gmra.mrb[26].mxu1 %vm472_vm2, %v11012_v45 }
 0xf04   :  { %10206 = vmatpush3.bf16.msra.mxu1 %v11577_v60  ;;  %8774 = vmatprep.mubr.msk.f32.mxu1 %vm11173_vm0, %v11174_v6 }
 0xf05   :  { %10207 = vmatprep.subr.bf16.mxu1 %v11172_v3 }
 0xf08   :  { %10209 = vmatpush3.bf16.msra.mxu1 %v11583_v0 }
 0xf09   :  { %10210 = vmatprep.subr.bf16.mxu1 %v11172_v3 }
 0xf0c   :  { %v11014_v34 = vpop.eup %11013  ;;  %10212 = vmatpush3.bf16.msra.mxu1 %v11593_v5 }
 0xf0d   :  { %8705 = vmatmul.mubr.msk.f32.vlgmr.msra.gmra.mrb[28].mxu0 %vm124_vm1, %v11014_v34  ;;  %10213 = vmatprep.subr.bf16.mxu1 %v11172_v3 }
 0xf0e   :  { %10175 = vmatpush3.bf16.xpose.msk.msra.mxu0 %vm11438_vm3, %v11336_v19  ;;  %8739 = vmatprep.mubr.msk.f32.mxu0 %vm11173_vm0, %v11174_v6 }
 0xf0f   :  { %10176 = vmatprep.subr.bf16.mxu0 %v11172_v3 }
 0xf10   :  { %10215 = vmatpush3.bf16.msra.mxu1 %v11603_v11 }
 0xf11   :  { %10216 = vmatprep.subr.bf16.mxu1 %v11172_v3 }
 0xf14   :  { %10218 = vmatpush3.bf16.msra.mxu1 %v11613_v18 }
 0xf15   :  { %10219 = vmatprep.subr.bf16.mxu1 %v11172_v3 }
 0xf16   :  { %10179 = vmatpush3.bf16.xpose.msk.msra.mxu0 %vm11438_vm3, %v11346_v23 }
 0xf17   :  { %10180 = vmatprep.subr.bf16.mxu0 %v11172_v3 }
 0xf18   :  { %10221 = vmatpush3.bf16.msra.mxu1 %v11623_v22 }
 0xf19   :  { %10222 = vmatprep.subr.bf16.mxu1 %v11172_v3 }
 0xf1c   :  { %10224 = vmatpush3.bf16.msra.mxu1 %v11633_v27 }
 0xf1d   :  { %10225 = vmatprep.subr.bf16.mxu1 %v11172_v3 }
 0xf1e   :  { %10183 = vmatpush3.bf16.xpose.msk.msra.mxu0 %vm11438_vm3, %v11358_v26 }
 0xf1f   :  { %10184 = vmatprep.subr.bf16.mxu0 %v11172_v3 }
 0xf20   :  { %10227 = vmatpush3.bf16.msra.mxu1 %v11643_v37 }
 0xf21   :  { %10228 = vmatprep.subr.bf16.mxu1 %v11172_v3 }
 0xf26   :  { %10187 = vmatpush3.bf16.xpose.msk.msra.mxu0 %vm11438_vm3, %v11368_v29 }
 0xf27   :  { %10188 = vmatprep.subr.bf16.mxu0 %v11172_v3 }
 0xf2e   :  { %10191 = vmatpush3.bf16.xpose.msk.msra.mxu0 %vm11438_vm3, %v11379_v32 }
 0xf2f   :  { %10192 = vmatprep.subr.bf16.mxu0 %v11172_v3 }
 0xf36   :  { %10195 = vmatpush3.bf16.xpose.msk.msra.mxu0 %vm11438_vm3, %v11389_v35 }
 0xf37   :  { %10196 = vmatprep.subr.bf16.mxu0 %v11172_v3 }
 0xf3e   :  { %10199 = vmatpush3.bf16.xpose.msk.msra.mxu0 %vm11438_vm3, %v11398_v38 }
 0xf3f   :  { %10200 = vmatprep.subr.bf16.mxu0 %v11172_v3 }
 0xf46   :  { %10203 = vmatpush3.bf16.xpose.msk.msra.mxu0 %vm11438_vm3, %v11409_v41 }
 0xf47   :  { %10240 = vmatprep.subr.bf16.mxu0 %v11172_v3 }
 0xfd6   :  { %v2317_v39 = vpop.f32.mrb[26].mxu1 }
 0xfd7   :  { %v8690_v49 = vpop.f32.mrb[27].mxu1  ;;  %v2321_v7 = vsub.f32 1.0, %v2317_v39  ;;  %v2323_v13 = vmul.f32 %v2317_v39, %v11986_v20 }
 0xfd9   :  { %v2322_v33 = vmul.f32 %v2321_v7, %v11922_v48 }
 0xfdb   :  { %v12116_v59 = vadd.f32 %v2323_v13, %v2322_v33 }
 0xfe0   :  { %v2470_v51 = vpop.f32.mrb[28].mxu0 }
 0xfe1   :  { %v8706_v54 = vpop.f32.mrb[29].mxu0  ;;  %v2474_v55 = vsel %vm472_vm2, %v2470_v51, -inf }
 0xfe2   :  { %2475 = vmax.xlane.f32.xlu0 %v2474_v55 }
 0xff8   :  { %2948 = vrot.lane.b32.xlu0 %v7197_v8, %s11175_s18 }
0x106f   :  { %v2476_v62 = vpop.xlane.xlu0 %2475 }
0x1070   :  { %v2477_v36 = vsub.f32 %v2470_v51, %v2476_v62 }
0x1072   :  { %v2478_v56 = vmul.f32 1.442695, %v2477_v36 }
0x1074   :  { %11015 = vpow2.f32 %v2478_v56 }
0x107e   :  { %v11016_v40 = vpop.eup %11015 }
0x107f   :  { %v2480_v58 = vsel %vm472_vm2, %v11016_v40, 0.0 }
0x1080   :  { %2481 = vadd.xlane.f32.xlu1 %v2480_v58 }
0x110d   :  { %v2482_v61 = vpop.xlane.xlu1 %2481 }
0x110e   :  { %11017 = vrcp.f32 %v2482_v61 }
0x1118   :  { %v11018_v1 = vpop.eup %11017 }
0x1119   :  { %v2484_v2 = vmul.f32 %v11018_v1, %v11016_v40  ;;  %v2949_v1 = vpop.permute.xlu0 %2948 }
0x111b   :  { %8740 = vmatmul.mubr.msk.f32.vlgmr.msra.gmra.mrb[30].mxu0 %vm472_vm2, %v2484_v2 }
0x111c   :  { %10242 = vmatpush3.bf16.msra.mxu0 %v11279_v4  ;;  %8803 = vmatprep.mubr.msk.f32.mxu0 %vm11173_vm0, %v11174_v6 }
0x111d   :  { %10243 = vmatprep.subr.bf16.mxu0 %v11172_v3 }
0x111f   :  { %8804 = vmatmul.mubr.msk.f32.vlgmr.msra.gmra.mrb[32].mxu0 %vm124_vm1, %v7197_v8 }
0x1120   :  { %10245 = vmatpush3.bf16.msra.mxu0 %v11294_v9  ;;  %8814 = vmatprep.mubr.msk.f32.mxu0 %vm11173_vm0, %v11174_v6 }
0x1121   :  { %10246 = vmatprep.subr.bf16.mxu0 %v11172_v3 }
0x1124   :  { %10248 = vmatpush3.bf16.msra.mxu0 %v11317_v15 }
0x1125   :  { %10276 = vmatprep.subr.bf16.mxu0 %v11172_v3 }
0x1127   :  { %8815 = vmatmul.mubr.msk.f32.vlgmr.msra.gmra.mrb[34].mxu0 %vm198_vm4, %v11996_v53 }
0x1128   :  { %8891 = vmatprep.mubr.msk.f32.mxu0 %vm11173_vm0, %v11174_v6 }
0x112d   :  { %10279 = vmatpush3.bf16.xpose.msk.msra.mxu0 %vm11438_vm3, %v11336_v19 }
0x112e   :  { %10280 = vmatprep.subr.bf16.mxu0 %v11172_v3 }
0x1135   :  { %10283 = vmatpush3.bf16.xpose.msk.msra.mxu0 %vm11438_vm3, %v11346_v23 }
0x1136   :  { %10284 = vmatprep.subr.bf16.mxu0 %v11172_v3 }
0x113d   :  { %10287 = vmatpush3.bf16.xpose.msk.msra.mxu0 %vm11438_vm3, %v11358_v26 }
0x113e   :  { %10288 = vmatprep.subr.bf16.mxu0 %v11172_v3 }
0x1145   :  { %10291 = vmatpush3.bf16.xpose.msk.msra.mxu0 %vm11438_vm3, %v11368_v29 }
0x1146   :  { %10292 = vmatprep.subr.bf16.mxu0 %v11172_v3 }
0x114d   :  { %10295 = vmatpush3.bf16.xpose.msk.msra.mxu0 %vm11438_vm3, %v11379_v32 }
0x114e   :  { %10296 = vmatprep.subr.bf16.mxu0 %v11172_v3 }
0x1155   :  { %10299 = vmatpush3.bf16.xpose.msk.msra.mxu0 %vm11438_vm3, %v11389_v35 }
0x1156   :  { %10300 = vmatprep.subr.bf16.mxu0 %v11172_v3 }
0x115d   :  { %10303 = vmatpush3.bf16.xpose.msk.msra.mxu0 %vm11438_vm3, %v11398_v38 }
0x115e   :  { %10304 = vmatprep.subr.bf16.mxu0 %v11172_v3 }
0x1165   :  { %10307 = vmatpush3.bf16.xpose.msk.msra.mxu0 %vm11438_vm3, %v11409_v41 }
0x1166   :  { %10346 = vmatprep.subr.bf16.mxu0 %v11172_v3 }
0x11ee   :  { %v2554_v24 = vpop.f32.mrb[30].mxu0 }
0x11ef   :  { %v2558_v28 = vmul.f32 %v2554_v24, %v12116_v59  ;;  %v8741_v31 = vpop.f32.mrb[31].mxu0 }
0x11f1   :  { %8775 = vmatmul.mubr.f32.vlgmr.msra.gmra.mrb[28].mxu1 %v2558_v28 }
0x11f2   :  { %10230 = vmatpush3.bf16.msra.mxu1 %v11707_v52  ;;  %v2847_v42 = vpop.f32.mrb[32].mxu0  ;;  %8785 = vmatprep.mubr.msk.f32.mxu1 %vm11173_vm0, %v11174_v6 }
0x11f3   :  { %v8805_v47 = vpop.f32.mrb[33].mxu0  ;;  %10231 = vmatprep.subr.bf16.mxu1 %v11172_v3 }
0x11f6   :  { %10233 = vmatpush3.bf16.msra.mxu1 %v11717_v57 }
0x11f7   :  { %10234 = vmatprep.subr.bf16.mxu1 %v11172_v3 }
0x11f9   :  { %8786 = vmatmul.mubr.msk.f32.vlgmr.msra.gmra.mrb[30].mxu1 %vm198_vm4, %v11996_v53  ;;  %v12138_v53 = vld [vmem:[%s13100_s2] ss:$0 sm:$0xff] }
0x11fa   :  { %v2917_v48 = vpop.f32.mrb[34].mxu0  ;;  %10236 = vmatpush3.bf16.msra.mxu1 %v11740_v21  ;;  %8796 = vmatprep.mubr.msk.f32.mxu1 %vm11173_vm0, %v11174_v6  ;;  %v2848_v44 = vadd.f32 %v12138_v53, %v2847_v42 }
0x11fb   :  { %v2928_v20 = vadd.f32 %v2917_v48, %v11328_v16  ;;  %v8816_v43 = vpop.f32.mrb[35].mxu0  ;;  %10237 = vmatprep.subr.bf16.mxu1 %v11172_v3 }
0x11fc   :  { %v2921_v45 = vadd.f32 %v2917_v48, %v2848_v44  ;;  %v12177_v43 = vld [vmem:[%s13104_s6] ss:$0 sm:$0xff] }
0x11fd   :  { %2930 = vrot.lane.b32.xlu1 %v2928_v20, %s11171_s30 }
0x11fe   :  { %10239 = vmatpush3.bf16.msra.mxu1 %v11746_v25  ;;  %v7200_v34 = vmul.f32 -1.442695, %v2921_v45 }
0x11ff   :  { %10249 = vmatprep.subr.bf16.mxu1 %v11172_v3 }
0x1200   :  { %11019 = vpow2.f32 %v7200_v34 }
0x120a   :  { %v11020_v39 = vpop.eup %11019 }
0x120b   :  { %v2925_v49 = vadd.f32 1.0, %v11020_v39 }
0x120d   :  { %11021 = vrcp.f32 %v2925_v49  ;;  %v12186_v49 = vld [vmem:[%s13113_s15] ss:$0 sm:$0xff] }
0x1217   :  { %v11022_v51 = vpop.eup %11021 }
0x1218   :  { %v2940_v33 = vsub.f32 1.0, %v11022_v51  ;;  %v2946_v24 = vmul.f32 %v11022_v51, %v11970_v50 }
0x126f   :  { %v2931_v54 = vpop.permute.xlu1 %2930 }
0x1270   :  { %v2933_v55 = vmul.f32 %v11022_v51, %v2931_v54 }
0x1272   :  { %2935 = vrot.lane.b32.xlu0 %v2933_v55, %s11171_s30  ;;  %v12206_v55 = vld [vmem:[%s13112_s14] sm:$0xff] }
0x12c4   :  { %v2625_v62 = vpop.f32.mrb[28].mxu1 }
0x12c5   :  { %v8776_v36 = vpop.f32.mrb[29].mxu1 }
0x12cc   :  { %v2695_v56 = vpop.f32.mrb[30].mxu1 }
0x12cd   :  { %v2696_v40 = vadd.f32 %v2695_v56, %v2625_v62  ;;  %v8787_v58 = vpop.f32.mrb[31].mxu1 }
0x12cf   :  { %v2699_v8 = vadd.f32 %v11755_v46, %v2696_v40 }
0x12d1   :  { %11023 = vtanh.f32 %v2699_v8 }
0x12db   :  { %v11024_v61 = vpop.eup %11023 }
0x12dc   :  { %8797 = vmatmul.mubr.msk.f32.vlgmr.msra.gmra.mrb[32].mxu1 %vm198_vm4, %v11024_v61  ;;  %v12216_v61 = vld [vmem:[%s13106_s8] ss:$0 sm:$0xff] }
0x12dd   :  { %10251 = vmatpush3.bf16.msra.mxu1 %v11311_v14  ;;  %8821 = vmatprep.mubr.msk.f32.mxu1 %vm11173_vm0, %v11174_v6 }
0x12de   :  { %10252 = vmatprep.subr.bf16.mxu1 %v11172_v3 }
0x12e0   :  { %8822 = vmatmul.mubr.msk.f32.vlgmr.msra.gmra.mrb[34].mxu1 %vm124_vm1, %v2949_v1 }
0x12e1   :  { %10254 = vmatpush3.bf16.msra.mxu1 %v11336_v19  ;;  %8856 = vmatprep.mubr.msk.f32.mxu1 %vm11173_vm0, %v11174_v6 }
0x12e2   :  { %10255 = vmatprep.subr.bf16.mxu1 %v11172_v3 }
0x12e4   :  { %v2936_v46 = vpop.permute.xlu0 %2935 }
0x12e5   :  { %v2938_v2 = vadd.f32 %v2936_v46, %v2848_v44  ;;  %10257 = vmatpush3.bf16.msra.mxu1 %v11346_v23 }
0x12e6   :  { %10258 = vmatprep.subr.bf16.mxu1 %v11172_v3 }
0x12e7   :  { %11025 = vtanh.f32 %v2938_v2 }
0x12e9   :  { %10260 = vmatpush3.bf16.msra.mxu1 %v11358_v26 }
0x12ea   :  { %10261 = vmatprep.subr.bf16.mxu1 %v11172_v3 }
0x12ed   :  { %10263 = vmatpush3.bf16.msra.mxu1 %v11368_v29 }
0x12ee   :  { %10264 = vmatprep.subr.bf16.mxu1 %v11172_v3 }
0x12f1   :  { %v11026_v7 = vpop.eup %11025  ;;  %10266 = vmatpush3.bf16.msra.mxu1 %v11379_v32 }
0x12f2   :  { %2942 = vrot.lane.b32.xlu1 %v11026_v7, %s11176_s3  ;;  %10267 = vmatprep.subr.bf16.mxu1 %v11172_v3 }
0x12f5   :  { %10269 = vmatpush3.bf16.msra.mxu1 %v11389_v35 }
0x12f6   :  { %10270 = vmatprep.subr.bf16.mxu1 %v11172_v3 }
0x12f9   :  { %10272 = vmatpush3.bf16.msra.mxu1 %v11398_v38 }
0x12fa   :  { %10273 = vmatprep.subr.bf16.mxu1 %v11172_v3 }
0x12fd   :  { %10275 = vmatpush3.bf16.msra.mxu1 %v11409_v41 }
0x12fe   :  { %10308 = vmatprep.subr.bf16.mxu1 %v11172_v3 }
0x1364   :  { %v2943_v13 = vpop.permute.xlu1 %2942 }
0x1365   :  { %v2945_v28 = vmul.f32 %v2943_v13, %v2940_v33 }
0x1367   :  { %v12169_v31 = vadd.f32 %v2946_v24, %v2945_v28 }
0x1369   :  { %3179 = vrot.lane.b32.xlu0 %v12169_v31, %s11176_s3 }
0x13af   :  { %v2770_v42 = vpop.f32.mrb[32].mxu1 }
0x13b0   :  { %v2771_v47 = vadd.f32 %v11977_v30, %v2770_v42  ;;  %v8798_v48 = vpop.f32.mrb[33].mxu1 }
0x13b2   :  { %11027 = vtanh.f32 %v2771_v47 }
0x13b3   :  { %v3018_v20 = vpop.f32.mrb[34].mxu1 }
0x13b4   :  { %v3019_v44 = vadd.f32 %v12177_v43, %v3018_v20  ;;  %v8823_v50 = vpop.f32.mrb[35].mxu1 }
0x13b6   :  { %11029 = vtanh.f32 %v3019_v44 }
0x13bc   :  { %v11028_v45 = vpop.eup %11027 }
0x13bd   :  { %v12181_v34 = vadd.f32 %v11028_v45, %v11983_v17  ;;  %v7242_v45 = vld [vmem:[%s13121_s20 + $0x20] sm:$0xff] }
0x13c0   :  { %v11030_v39 = vpop.eup %11029 }
0x13c1   :  { %v12189_v51 = vadd.f32 %v12186_v49, %v11030_v39 }
0x13c3   :  { %v3024_v54 = vmul.f32 %v12189_v51, %v12116_v59 }
0x13c5   :  { %8857 = vmatmul.mubr.f32.vlgmr.msra.gmra.mrb[36].mxu1 %v3024_v54 }
0x13c6   :  { %10310 = vmatpush3.bf16.msra.mxu1 %v11486_v10  ;;  %8902 = vmatprep.mubr.msk.f32.mxu1 %vm11173_vm0, %v11174_v6 }
0x13c7   :  { %10311 = vmatprep.subr.bf16.mxu1 %v11172_v3 }
0x13ca   :  { %10313 = vmatpush3.bf16.msra.mxu1 %v11492_v12 }
0x13cb   :  { %8905 = vmatprep.subr.mxu1 %v11174_v6 }
0x13db   :  { %v12199_v17 = vpop.permute.xlu0 %3179 }
0x13dc   :  { %8903 = vmatmul.mubr.msk.f32.vlgmr.msra.gmra.mrb[38].mxu1 %vm198_vm4, %v12199_v17 }
0x13dd   :  { %8906 = vmatpush3.xpose.msk.msra.mxu1 %vm124_vm1, %v12206_v55  ;;  %8907 = vmatprep.mubr.msk.f32.mxu1 %vm11173_vm0, %v11174_v6 }
0x13de   :  { %10314 = vmatprep.subr.bf16.mxu1 %v11172_v3 }
0x1498   :  { %v3091_v62 = vpop.f32.mrb[36].mxu1 }
0x1499   :  { %v7202_v36 = vmul.f32 -1.442695, %v3091_v62  ;;  %v8858_v56 = vpop.f32.mrb[37].mxu1 }
0x149b   :  { %11031 = vpow2.f32 %v7202_v36 }
0x14a5   :  { %v11032_v40 = vpop.eup %11031 }
0x14a6   :  { %v3098_v58 = vadd.f32 1.0, %v11032_v40 }
0x14a8   :  { %11033 = vrcp.f32 %v3098_v58 }
0x14af   :  { %v3249_v8 = vpop.f32.mrb[38].mxu1 }
0x14b0   :  { %v3250_v1 = vadd.f32 %v12216_v61, %v3249_v8  ;;  %v8904_v46 = vpop.f32.mrb[39].mxu1 }
0x14b2   :  { %v11034_v2 = vpop.eup %11033  ;;  %11035 = vtanh.f32 %v3250_v1 }
0x14b3   :  { %8892 = vmatmul.mubr.msk.f32.vlgmr.msra.gmra.mrb[36].mxu0 %vm472_vm2, %v11034_v2 }
0x14b4   :  { %10348 = vmatpush3.bf16.msra.mxu0 %v11577_v60  ;;  %8977 = vmatprep.mubr.msk.f32.mxu0 %vm11173_vm0, %v11174_v6 }
0x14b5   :  { %10349 = vmatprep.subr.bf16.mxu0 %v11172_v3 }
0x14b8   :  { %10351 = vmatpush3.bf16.msra.mxu0 %v11583_v0 }
0x14b9   :  { %10352 = vmatprep.subr.bf16.mxu0 %v11172_v3 }
0x14bc   :  { %v11036_v7 = vpop.eup %11035  ;;  %10354 = vmatpush3.bf16.msra.mxu0 %v11593_v5 }
0x14bd   :  { %8908 = vmatmul.mubr.msk.f32.vlgmr.msra.gmra.mrb[40].mxu1 %vm124_vm1, %v11036_v7  ;;  %10355 = vmatprep.subr.bf16.mxu0 %v11172_v3 }
0x14be   :  { %10317 = vmatpush3.bf16.xpose.msk.msra.mxu1 %vm11438_vm3, %v11336_v19  ;;  %8942 = vmatprep.mubr.msk.f32.mxu1 %vm11173_vm0, %v11174_v6 }
0x14bf   :  { %10318 = vmatprep.subr.bf16.mxu1 %v11172_v3 }
0x14c0   :  { %10357 = vmatpush3.bf16.msra.mxu0 %v11603_v11 }
0x14c1   :  { %10358 = vmatprep.subr.bf16.mxu0 %v11172_v3 }
0x14c4   :  { %10360 = vmatpush3.bf16.msra.mxu0 %v11613_v18 }
0x14c5   :  { %10361 = vmatprep.subr.bf16.mxu0 %v11172_v3 }
0x14c6   :  { %10321 = vmatpush3.bf16.xpose.msk.msra.mxu1 %vm11438_vm3, %v11346_v23 }
0x14c7   :  { %10322 = vmatprep.subr.bf16.mxu1 %v11172_v3 }
0x14c8   :  { %10363 = vmatpush3.bf16.msra.mxu0 %v11623_v22 }
0x14c9   :  { %10364 = vmatprep.subr.bf16.mxu0 %v11172_v3 }
0x14cc   :  { %10366 = vmatpush3.bf16.msra.mxu0 %v11633_v27 }
0x14cd   :  { %10367 = vmatprep.subr.bf16.mxu0 %v11172_v3 }
0x14ce   :  { %10325 = vmatpush3.bf16.xpose.msk.msra.mxu1 %vm11438_vm3, %v11358_v26 }
0x14cf   :  { %10326 = vmatprep.subr.bf16.mxu1 %v11172_v3 }
0x14d0   :  { %10369 = vmatpush3.bf16.msra.mxu0 %v11643_v37 }
0x14d1   :  { %10370 = vmatprep.subr.bf16.mxu0 %v11172_v3 }
0x14d6   :  { %10329 = vmatpush3.bf16.xpose.msk.msra.mxu1 %vm11438_vm3, %v11368_v29 }
0x14d7   :  { %10330 = vmatprep.subr.bf16.mxu1 %v11172_v3 }
0x14de   :  { %10333 = vmatpush3.bf16.xpose.msk.msra.mxu1 %vm11438_vm3, %v11379_v32 }
0x14df   :  { %10334 = vmatprep.subr.bf16.mxu1 %v11172_v3 }
0x14e6   :  { %10337 = vmatpush3.bf16.xpose.msk.msra.mxu1 %vm11438_vm3, %v11389_v35 }
0x14e7   :  { %10338 = vmatprep.subr.bf16.mxu1 %v11172_v3 }
0x14ee   :  { %10341 = vmatpush3.bf16.xpose.msk.msra.mxu1 %vm11438_vm3, %v11398_v38 }
0x14ef   :  { %10342 = vmatprep.subr.bf16.mxu1 %v11172_v3 }
0x14f6   :  { %10345 = vmatpush3.bf16.xpose.msk.msra.mxu1 %vm11438_vm3, %v11409_v41 }
0x14f7   :  { %10382 = vmatprep.subr.bf16.mxu1 %v11172_v3 }
0x1586   :  { %v3170_v33 = vpop.f32.mrb[36].mxu0 }
0x1587   :  { %v8893_v13 = vpop.f32.mrb[37].mxu0  ;;  %v3174_v36 = vsub.f32 1.0, %v3170_v33  ;;  %v3176_v40 = vmul.f32 %v3170_v33, %v12189_v51 }
0x1589   :  { %v3175_v56 = vmul.f32 %v3174_v36, %v12116_v59 }
0x158b   :  { %v12329_v58 = vadd.f32 %v3176_v40, %v3175_v56 }
0x1590   :  { %v3323_v24 = vpop.f32.mrb[40].mxu1 }
0x1591   :  { %v8909_v28 = vpop.f32.mrb[41].mxu1  ;;  %v3327_v42 = vsel %vm472_vm2, %v3323_v24, -inf }
0x1592   :  { %3328 = vmax.xlane.f32.xlu1 %v3327_v42 }
0x161f   :  { %v3329_v47 = vpop.xlane.xlu1 %3328 }
0x1620   :  { %v3330_v48 = vsub.f32 %v3323_v24, %v3329_v47 }
0x1622   :  { %v3331_v20 = vmul.f32 1.442695, %v3330_v48 }
0x1624   :  { %11037 = vpow2.f32 %v3331_v20 }
0x162e   :  { %v11038_v44 = vpop.eup %11037 }
0x162f   :  { %v3333_v50 = vsel %vm472_vm2, %v11038_v44, 0.0 }
0x1630   :  { %3334 = vadd.xlane.f32.xlu0 %v3333_v50 }
0x1646   :  { %3801 = vrot.lane.b32.xlu0 %v7242_v45, %s11175_s18 }
0x16bd   :  { %v3335_v39 = vpop.xlane.xlu0 %3334 }
0x16be   :  { %11039 = vrcp.f32 %v3335_v39 }
0x16c1   :  { %v3802_v40 = vpop.permute.xlu0 %3801 }
0x16c8   :  { %v11040_v54 = vpop.eup %11039 }
0x16c9   :  { %v3337_v62 = vmul.f32 %v11040_v54, %v11038_v44 }
0x16cb   :  { %8943 = vmatmul.mubr.msk.f32.vlgmr.msra.gmra.mrb[42].mxu1 %vm472_vm2, %v3337_v62  ;;  %v12353_v62 = vld [vmem:[%s13109_s11] ss:$0 sm:$0xff] }
0x16cc   :  { %10384 = vmatpush3.bf16.msra.mxu1 %v11279_v4  ;;  %9006 = vmatprep.mubr.msk.f32.mxu1 %vm11173_vm0, %v11174_v6 }
0x16cd   :  { %10385 = vmatprep.subr.bf16.mxu1 %v11172_v3 }
0x16cf   :  { %9007 = vmatmul.mubr.msk.f32.vlgmr.msra.gmra.mrb[44].mxu1 %vm124_vm1, %v7242_v45 }
0x16d0   :  { %10387 = vmatpush3.bf16.msra.mxu1 %v11294_v9  ;;  %9017 = vmatprep.mubr.msk.f32.mxu1 %vm11173_vm0, %v11174_v6 }
0x16d1   :  { %10388 = vmatprep.subr.bf16.mxu1 %v11172_v3 }
0x16d4   :  { %10390 = vmatpush3.bf16.msra.mxu1 %v11317_v15 }
0x16d5   :  { %10418 = vmatprep.subr.bf16.mxu1 %v11172_v3 }
0x16d7   :  { %9018 = vmatmul.mubr.msk.f32.vlgmr.msra.gmra.mrb[46].mxu1 %vm198_vm4, %v12199_v17 }
0x16d8   :  { %9094 = vmatprep.mubr.msk.f32.mxu1 %vm11173_vm0, %v11174_v6 }
0x16dd   :  { %10421 = vmatpush3.bf16.xpose.msk.msra.mxu1 %vm11438_vm3, %v11336_v19 }
0x16de   :  { %10422 = vmatprep.subr.bf16.mxu1 %v11172_v3 }
0x16e5   :  { %10425 = vmatpush3.bf16.xpose.msk.msra.mxu1 %vm11438_vm3, %v11346_v23 }
0x16e6   :  { %10426 = vmatprep.subr.bf16.mxu1 %v11172_v3 }
0x16ed   :  { %10429 = vmatpush3.bf16.xpose.msk.msra.mxu1 %vm11438_vm3, %v11358_v26 }
0x16ee   :  { %10430 = vmatprep.subr.bf16.mxu1 %v11172_v3 }
0x16f5   :  { %10433 = vmatpush3.bf16.xpose.msk.msra.mxu1 %vm11438_vm3, %v11368_v29 }
0x16f6   :  { %10434 = vmatprep.subr.bf16.mxu1 %v11172_v3 }
0x16fd   :  { %10437 = vmatpush3.bf16.xpose.msk.msra.mxu1 %vm11438_vm3, %v11379_v32 }
0x16fe   :  { %10438 = vmatprep.subr.bf16.mxu1 %v11172_v3 }
0x1705   :  { %10441 = vmatpush3.bf16.xpose.msk.msra.mxu1 %vm11438_vm3, %v11389_v35 }
0x1706   :  { %10442 = vmatprep.subr.bf16.mxu1 %v11172_v3 }
0x170d   :  { %10445 = vmatpush3.bf16.xpose.msk.msra.mxu1 %vm11438_vm3, %v11398_v38 }
0x170e   :  { %10446 = vmatprep.subr.bf16.mxu1 %v11172_v3 }
0x1715   :  { %10449 = vmatpush3.bf16.xpose.msk.msra.mxu1 %vm11438_vm3, %v11409_v41 }
0x1716   :  { %10488 = vmatprep.subr.bf16.mxu1 %v11172_v3 }
0x179e   :  { %v3407_v8 = vpop.f32.mrb[42].mxu1 }
0x179f   :  { %v3411_v1 = vmul.f32 %v3407_v8, %v12329_v58  ;;  %v8944_v46 = vpop.f32.mrb[43].mxu1 }
0x17a1   :  { %8978 = vmatmul.mubr.f32.vlgmr.msra.gmra.mrb[38].mxu0 %v3411_v1 }
0x17a2   :  { %10372 = vmatpush3.bf16.msra.mxu0 %v11707_v52  ;;  %v3700_v2 = vpop.f32.mrb[44].mxu1  ;;  %8988 = vmatprep.mubr.msk.f32.mxu0 %vm11173_vm0, %v11174_v6 }
0x17a3   :  { %v9008_v7 = vpop.f32.mrb[45].mxu1  ;;  %10373 = vmatprep.subr.bf16.mxu0 %v11172_v3  ;;  %v3701_v13 = vadd.f32 %v12138_v53, %v3700_v2 }
0x17a6   :  { %10375 = vmatpush3.bf16.msra.mxu0 %v11717_v57 }
0x17a7   :  { %10376 = vmatprep.subr.bf16.mxu0 %v11172_v3 }
0x17a9   :  { %8989 = vmatmul.mubr.msk.f32.vlgmr.msra.gmra.mrb[40].mxu0 %vm198_vm4, %v12199_v17 }
0x17aa   :  { %v3770_v59 = vpop.f32.mrb[46].mxu1  ;;  %10378 = vmatpush3.bf16.msra.mxu0 %v11740_v21  ;;  %8999 = vmatprep.mubr.msk.f32.mxu0 %vm11173_vm0, %v11174_v6 }
0x17ab   :  { %v3781_v51 = vadd.f32 %v3770_v59, %v11328_v16  ;;  %v9019_v33 = vpop.f32.mrb[47].mxu1  ;;  %10379 = vmatprep.subr.bf16.mxu0 %v11172_v3  ;;  %v3774_v17 = vadd.f32 %v3770_v59, %v3701_v13 }
0x17ad   :  { %3783 = vrot.lane.b32.xlu1 %v3781_v51, %s11171_s30  ;;  %v7245_v24 = vmul.f32 -1.442695, %v3774_v17 }
0x17ae   :  { %10381 = vmatpush3.bf16.msra.mxu0 %v11746_v25 }
0x17af   :  { %10391 = vmatprep.subr.bf16.mxu0 %v11172_v3  ;;  %11041 = vpow2.f32 %v7245_v24 }
0x17b9   :  { %v11042_v28 = vpop.eup %11041 }
0x17ba   :  { %v3778_v42 = vadd.f32 1.0, %v11042_v28 }
0x17bc   :  { %11043 = vrcp.f32 %v3778_v42 }
0x17c6   :  { %v11044_v47 = vpop.eup %11043 }
0x17c7   :  { %v3793_v2 = vsub.f32 1.0, %v11044_v47  ;;  %v3799_v59 = vmul.f32 %v11044_v47, %v12169_v31 }
0x181f   :  { %v3784_v48 = vpop.permute.xlu1 %3783 }
0x1820   :  { %v3786_v20 = vmul.f32 %v11044_v47, %v3784_v48 }
0x1822   :  { %3788 = vrot.lane.b32.xlu1 %v3786_v20, %s11171_s30 }
0x1874   :  { %v3478_v44 = vpop.f32.mrb[38].mxu0 }
0x1875   :  { %v8979_v50 = vpop.f32.mrb[39].mxu0 }
0x187c   :  { %v3548_v45 = vpop.f32.mrb[40].mxu0 }
0x187d   :  { %v3549_v39 = vadd.f32 %v3548_v45, %v3478_v44  ;;  %v8990_v54 = vpop.f32.mrb[41].mxu0 }
0x187f   :  { %v3552_v36 = vadd.f32 %v12353_v62, %v3549_v39 }
0x1881   :  { %11045 = vtanh.f32 %v3552_v36 }
0x188b   :  { %v11046_v56 = vpop.eup %11045 }
0x188c   :  { %9000 = vmatmul.mubr.msk.f32.vlgmr.msra.gmra.mrb[42].mxu0 %vm198_vm4, %v11046_v56 }
0x188d   :  { %10393 = vmatpush3.bf16.msra.mxu0 %v11311_v14  ;;  %9024 = vmatprep.mubr.msk.f32.mxu0 %vm11173_vm0, %v11174_v6 }
0x188e   :  { %10394 = vmatprep.subr.bf16.mxu0 %v11172_v3 }
0x1890   :  { %9025 = vmatmul.mubr.msk.f32.vlgmr.msra.gmra.mrb[44].mxu0 %vm124_vm1, %v3802_v40 }
0x1891   :  { %10396 = vmatpush3.bf16.msra.mxu0 %v11336_v19  ;;  %9059 = vmatprep.mubr.msk.f32.mxu0 %vm11173_vm0, %v11174_v6 }
0x1892   :  { %10397 = vmatprep.subr.bf16.mxu0 %v11172_v3 }
0x1894   :  { %v3789_v8 = vpop.permute.xlu1 %3788 }
0x1895   :  { %v3791_v1 = vadd.f32 %v3789_v8, %v3701_v13  ;;  %10399 = vmatpush3.bf16.msra.mxu0 %v11346_v23 }
0x1896   :  { %10400 = vmatprep.subr.bf16.mxu0 %v11172_v3 }
0x1897   :  { %11047 = vtanh.f32 %v3791_v1 }
0x1899   :  { %10402 = vmatpush3.bf16.msra.mxu0 %v11358_v26 }
0x189a   :  { %10403 = vmatprep.subr.bf16.mxu0 %v11172_v3 }
0x189d   :  { %10405 = vmatpush3.bf16.msra.mxu0 %v11368_v29 }
0x189e   :  { %10406 = vmatprep.subr.bf16.mxu0 %v11172_v3 }
0x18a1   :  { %v11048_v46 = vpop.eup %11047  ;;  %10408 = vmatpush3.bf16.msra.mxu0 %v11379_v32 }
0x18a2   :  { %3795 = vrot.lane.b32.xlu0 %v11048_v46, %s11176_s3  ;;  %10409 = vmatprep.subr.bf16.mxu0 %v11172_v3 }
0x18a5   :  { %10411 = vmatpush3.bf16.msra.mxu0 %v11389_v35 }
0x18a6   :  { %10412 = vmatprep.subr.bf16.mxu0 %v11172_v3 }
0x18a9   :  { %10414 = vmatpush3.bf16.msra.mxu0 %v11398_v38 }
0x18aa   :  { %10415 = vmatprep.subr.bf16.mxu0 %v11172_v3 }
0x18ad   :  { %10417 = vmatpush3.bf16.msra.mxu0 %v11409_v41 }
0x18ae   :  { %10450 = vmatprep.subr.bf16.mxu0 %v11172_v3 }
0x1914   :  { %v3796_v7 = vpop.permute.xlu0 %3795 }
0x1915   :  { %v3798_v51 = vmul.f32 %v3796_v7, %v3793_v2 }
0x1917   :  { %v12382_v33 = vadd.f32 %v3799_v59, %v3798_v51 }
0x1919   :  { %4032 = vrot.lane.b32.xlu1 %v12382_v33, %s11176_s3 }
0x195f   :  { %v3623_v13 = vpop.f32.mrb[42].mxu0 }
0x1960   :  { %v3624_v17 = vadd.f32 %v11977_v30, %v3623_v13  ;;  %v9001_v24 = vpop.f32.mrb[43].mxu0 }
0x1962   :  { %11049 = vtanh.f32 %v3624_v17 }
0x1963   :  { %v3871_v28 = vpop.f32.mrb[44].mxu0 }
0x1964   :  { %v3872_v42 = vadd.f32 %v12177_v43, %v3871_v28  ;;  %v9026_v48 = vpop.f32.mrb[45].mxu0 }
0x1966   :  { %11051 = vtanh.f32 %v3872_v42 }
0x196c   :  { %v11050_v20 = vpop.eup %11049 }
0x196d   :  { %v12389_v44 = vadd.f32 %v11050_v20, %v12181_v34  ;;  %v7287_v20 = vld [vmem:[%s13121_s20 + $0x28] sm:$0xff] }
0x1970   :  { %v11052_v31 = vpop.eup %11051 }
0x1971   :  { %v12392_v47 = vadd.f32 %v12186_v49, %v11052_v31 }
0x1973   :  { %v3877_v50 = vmul.f32 %v12392_v47, %v12329_v58 }
0x1975   :  { %9060 = vmatmul.mubr.f32.vlgmr.msra.gmra.mrb[46].mxu0 %v3877_v50 }
0x1976   :  { %10452 = vmatpush3.bf16.msra.mxu0 %v11486_v10  ;;  %9105 = vmatprep.mubr.msk.f32.mxu0 %vm11173_vm0, %v11174_v6 }
0x1977   :  { %10453 = vmatprep.subr.bf16.mxu0 %v11172_v3 }
0x197a   :  { %10455 = vmatpush3.bf16.msra.mxu0 %v11492_v12 }
0x197b   :  { %9108 = vmatprep.subr.mxu0 %v11174_v6 }
0x198b   :  { %v12402_v30 = vpop.permute.xlu1 %4032 }
0x198c   :  { %9106 = vmatmul.mubr.msk.f32.vlgmr.msra.gmra.mrb[48].mxu0 %vm198_vm4, %v12402_v30 }
0x198d   :  { %9109 = vmatpush3.xpose.msk.msra.mxu0 %vm124_vm1, %v12206_v55  ;;  %9110 = vmatprep.mubr.msk.f32.mxu0 %vm11173_vm0, %v11174_v6 }
0x198e   :  { %10456 = vmatprep.subr.bf16.mxu0 %v11172_v3 }
0x1a48   :  { %v3944_v34 = vpop.f32.mrb[46].mxu0 }
0x1a49   :  { %v7247_v45 = vmul.f32 -1.442695, %v3944_v34  ;;  %v9061_v39 = vpop.f32.mrb[47].mxu0 }
0x1a4b   :  { %11053 = vpow2.f32 %v7247_v45 }
0x1a55   :  { %v11054_v54 = vpop.eup %11053 }
0x1a56   :  { %v3951_v36 = vadd.f32 1.0, %v11054_v54 }
0x1a58   :  { %11055 = vrcp.f32 %v3951_v36 }
0x1a5f   :  { %v4102_v56 = vpop.f32.mrb[48].mxu0 }
0x1a60   :  { %v4103_v40 = vadd.f32 %v12216_v61, %v4102_v56  ;;  %v9107_v8 = vpop.f32.mrb[49].mxu0 }
0x1a62   :  { %v11056_v1 = vpop.eup %11055  ;;  %11057 = vtanh.f32 %v4103_v40 }
0x1a63   :  { %9095 = vmatmul.mubr.msk.f32.vlgmr.msra.gmra.mrb[48].mxu1 %vm472_vm2, %v11056_v1 }
0x1a64   :  { %10490 = vmatpush3.bf16.msra.mxu1 %v11577_v60  ;;  %9180 = vmatprep.mubr.msk.f32.mxu1 %vm11173_vm0, %v11174_v6 }
0x1a65   :  { %10491 = vmatprep.subr.bf16.mxu1 %v11172_v3 }
0x1a68   :  { %10493 = vmatpush3.bf16.msra.mxu1 %v11583_v0 }
0x1a69   :  { %10494 = vmatprep.subr.bf16.mxu1 %v11172_v3 }
0x1a6c   :  { %v11058_v46 = vpop.eup %11057  ;;  %10496 = vmatpush3.bf16.msra.mxu1 %v11593_v5 }
0x1a6d   :  { %9111 = vmatmul.mubr.msk.f32.vlgmr.msra.gmra.mrb[50].mxu0 %vm124_vm1, %v11058_v46  ;;  %10497 = vmatprep.subr.bf16.mxu1 %v11172_v3 }
0x1a6e   :  { %10459 = vmatpush3.bf16.xpose.msk.msra.mxu0 %vm11438_vm3, %v11336_v19  ;;  %9145 = vmatprep.mubr.msk.f32.mxu0 %vm11173_vm0, %v11174_v6 }
0x1a6f   :  { %10460 = vmatprep.subr.bf16.mxu0 %v11172_v3 }
0x1a70   :  { %10499 = vmatpush3.bf16.msra.mxu1 %v11603_v11 }
0x1a71   :  { %10500 = vmatprep.subr.bf16.mxu1 %v11172_v3 }
0x1a74   :  { %10502 = vmatpush3.bf16.msra.mxu1 %v11613_v18 }
0x1a75   :  { %10503 = vmatprep.subr.bf16.mxu1 %v11172_v3 }
0x1a76   :  { %10463 = vmatpush3.bf16.xpose.msk.msra.mxu0 %vm11438_vm3, %v11346_v23 }
0x1a77   :  { %10464 = vmatprep.subr.bf16.mxu0 %v11172_v3 }
0x1a78   :  { %10505 = vmatpush3.bf16.msra.mxu1 %v11623_v22 }
0x1a79   :  { %10506 = vmatprep.subr.bf16.mxu1 %v11172_v3 }
0x1a7c   :  { %10508 = vmatpush3.bf16.msra.mxu1 %v11633_v27 }
0x1a7d   :  { %10509 = vmatprep.subr.bf16.mxu1 %v11172_v3 }
0x1a7e   :  { %10467 = vmatpush3.bf16.xpose.msk.msra.mxu0 %vm11438_vm3, %v11358_v26 }
0x1a7f   :  { %10468 = vmatprep.subr.bf16.mxu0 %v11172_v3 }
0x1a80   :  { %10511 = vmatpush3.bf16.msra.mxu1 %v11643_v37 }
0x1a81   :  { %10512 = vmatprep.subr.bf16.mxu1 %v11172_v3 }
0x1a86   :  { %10471 = vmatpush3.bf16.xpose.msk.msra.mxu0 %vm11438_vm3, %v11368_v29 }
0x1a87   :  { %10472 = vmatprep.subr.bf16.mxu0 %v11172_v3 }
0x1a8e   :  { %10475 = vmatpush3.bf16.xpose.msk.msra.mxu0 %vm11438_vm3, %v11379_v32 }
0x1a8f   :  { %10476 = vmatprep.subr.bf16.mxu0 %v11172_v3 }
0x1a96   :  { %10479 = vmatpush3.bf16.xpose.msk.msra.mxu0 %vm11438_vm3, %v11389_v35 }
0x1a97   :  { %10480 = vmatprep.subr.bf16.mxu0 %v11172_v3 }
0x1a9e   :  { %10483 = vmatpush3.bf16.xpose.msk.msra.mxu0 %vm11438_vm3, %v11398_v38 }
0x1a9f   :  { %10484 = vmatprep.subr.bf16.mxu0 %v11172_v3 }
0x1aa6   :  { %10487 = vmatpush3.bf16.xpose.msk.msra.mxu0 %vm11438_vm3, %v11409_v41 }
0x1aa7   :  { %10524 = vmatprep.subr.bf16.mxu0 %v11172_v3 }
0x1b36   :  { %v4023_v2 = vpop.f32.mrb[48].mxu1 }
0x1b37   :  { %v9096_v7 = vpop.f32.mrb[49].mxu1  ;;  %v4027_v45 = vsub.f32 1.0, %v4023_v2  ;;  %v4029_v54 = vmul.f32 %v4023_v2, %v12392_v47 }
0x1b39   :  { %v4028_v39 = vmul.f32 %v4027_v45, %v12329_v58 }
0x1b3b   :  { %v12522_v36 = vadd.f32 %v4029_v54, %v4028_v39 }
0x1b40   :  { %v4176_v59 = vpop.f32.mrb[50].mxu0 }
0x1b41   :  { %v9112_v51 = vpop.f32.mrb[51].mxu0  ;;  %v4180_v13 = vsel %vm472_vm2, %v4176_v59, -inf }
0x1b42   :  { %4181 = vmax.xlane.f32.xlu0 %v4180_v13 }
0x1b58   :  { %4654 = vrot.lane.b32.xlu0 %v7287_v20, %s11175_s18 }
0x1bcf   :  { %v4182_v17 = vpop.xlane.xlu0 %4181 }
0x1bd0   :  { %v4183_v24 = vsub.f32 %v4176_v59, %v4182_v17 }
0x1bd2   :  { %v4184_v28 = vmul.f32 1.442695, %v4183_v24 }
0x1bd3   :  { %v4655_v45 = vpop.permute.xlu0 %4654 }
0x1bd4   :  { %11059 = vpow2.f32 %v4184_v28 }
0x1bde   :  { %v11060_v42 = vpop.eup %11059 }
0x1bdf   :  { %v4186_v48 = vsel %vm472_vm2, %v11060_v42, 0.0 }
0x1be0   :  { %4187 = vadd.xlane.f32.xlu1 %v4186_v48 }
0x1c6d   :  { %v4188_v31 = vpop.xlane.xlu1 %4187 }
0x1c6e   :  { %11061 = vrcp.f32 %v4188_v31 }
0x1c78   :  { %v11062_v50 = vpop.eup %11061 }
0x1c79   :  { %v4190_v34 = vmul.f32 %v11062_v50, %v11060_v42 }
0x1c7b   :  { %9146 = vmatmul.mubr.msk.f32.vlgmr.msra.gmra.mrb[52].mxu0 %vm472_vm2, %v4190_v34 }
0x1c7c   :  { %10526 = vmatpush3.bf16.msra.mxu0 %v11279_v4  ;;  %9209 = vmatprep.mubr.msk.f32.mxu0 %vm11173_vm0, %v11174_v6 }
0x1c7d   :  { %10527 = vmatprep.subr.bf16.mxu0 %v11172_v3 }
0x1c7f   :  { %9210 = vmatmul.mubr.msk.f32.vlgmr.msra.gmra.mrb[54].mxu0 %vm124_vm1, %v7287_v20 }
0x1c80   :  { %10529 = vmatpush3.bf16.msra.mxu0 %v11294_v9  ;;  %9220 = vmatprep.mubr.msk.f32.mxu0 %vm11173_vm0, %v11174_v6 }
0x1c81   :  { %10530 = vmatprep.subr.bf16.mxu0 %v11172_v3 }
0x1c84   :  { %10532 = vmatpush3.bf16.msra.mxu0 %v11317_v15 }
0x1c85   :  { %10560 = vmatprep.subr.bf16.mxu0 %v11172_v3 }
0x1c87   :  { %9221 = vmatmul.mubr.msk.f32.vlgmr.msra.gmra.mrb[56].mxu0 %vm198_vm4, %v12402_v30 }
0x1c88   :  { %9297 = vmatprep.mubr.msk.f32.mxu0 %vm11173_vm0, %v11174_v6 }
0x1c8d   :  { %10563 = vmatpush3.bf16.xpose.msk.msra.mxu0 %vm11438_vm3, %v11336_v19 }
0x1c8e   :  { %10564 = vmatprep.subr.bf16.mxu0 %v11172_v3 }
0x1c95   :  { %10567 = vmatpush3.bf16.xpose.msk.msra.mxu0 %vm11438_vm3, %v11346_v23 }
0x1c96   :  { %10568 = vmatprep.subr.bf16.mxu0 %v11172_v3 }
0x1c9d   :  { %10571 = vmatpush3.bf16.xpose.msk.msra.mxu0 %vm11438_vm3, %v11358_v26 }
0x1c9e   :  { %10572 = vmatprep.subr.bf16.mxu0 %v11172_v3 }
0x1ca5   :  { %10575 = vmatpush3.bf16.xpose.msk.msra.mxu0 %vm11438_vm3, %v11368_v29 }
0x1ca6   :  { %10576 = vmatprep.subr.bf16.mxu0 %v11172_v3 }
0x1cad   :  { %10579 = vmatpush3.bf16.xpose.msk.msra.mxu0 %vm11438_vm3, %v11379_v32 }
0x1cae   :  { %10580 = vmatprep.subr.bf16.mxu0 %v11172_v3 }
0x1cb5   :  { %10583 = vmatpush3.bf16.xpose.msk.msra.mxu0 %vm11438_vm3, %v11389_v35 }
0x1cb6   :  { %10584 = vmatprep.subr.bf16.mxu0 %v11172_v3 }
0x1cbd   :  { %10587 = vmatpush3.bf16.xpose.msk.msra.mxu0 %vm11438_vm3, %v11398_v38 }
0x1cbe   :  { %10588 = vmatprep.subr.bf16.mxu0 %v11172_v3 }
0x1cc5   :  { %10591 = vmatpush3.bf16.xpose.msk.msra.mxu0 %vm11438_vm3, %v11409_v41 }
0x1cc6   :  { %10630 = vmatprep.subr.bf16.mxu0 %v11172_v3 }
0x1d4e   :  { %v4260_v56 = vpop.f32.mrb[52].mxu0 }
0x1d4f   :  { %v4264_v40 = vmul.f32 %v4260_v56, %v12522_v36  ;;  %v9147_v8 = vpop.f32.mrb[53].mxu0 }
0x1d51   :  { %9181 = vmatmul.mubr.f32.vlgmr.msra.gmra.mrb[50].mxu1 %v4264_v40 }
0x1d52   :  { %10514 = vmatpush3.bf16.msra.mxu1 %v11707_v52  ;;  %v4553_v1 = vpop.f32.mrb[54].mxu0  ;;  %9191 = vmatprep.mubr.msk.f32.mxu1 %vm11173_vm0, %v11174_v6 }
0x1d53   :  { %v9211_v46 = vpop.f32.mrb[55].mxu0  ;;  %10515 = vmatprep.subr.bf16.mxu1 %v11172_v3  ;;  %v4554_v7 = vadd.f32 %v12138_v53, %v4553_v1 }
0x1d56   :  { %10517 = vmatpush3.bf16.msra.mxu1 %v11717_v57 }
0x1d57   :  { %10518 = vmatprep.subr.bf16.mxu1 %v11172_v3 }
0x1d59   :  { %9192 = vmatmul.mubr.msk.f32.vlgmr.msra.gmra.mrb[52].mxu1 %vm198_vm4, %v12402_v30 }
0x1d5a   :  { %v4623_v58 = vpop.f32.mrb[56].mxu0  ;;  %10520 = vmatpush3.bf16.msra.mxu1 %v11740_v21  ;;  %9202 = vmatprep.mubr.msk.f32.mxu1 %vm11173_vm0, %v11174_v6 }
0x1d5b   :  { %v4634_v47 = vadd.f32 %v4623_v58, %v11328_v16  ;;  %v9222_v2 = vpop.f32.mrb[57].mxu0  ;;  %10521 = vmatprep.subr.bf16.mxu1 %v11172_v3  ;;  %v4627_v30 = vadd.f32 %v4623_v58, %v4554_v7 }
0x1d5c   :  { %v12577_v2 = vld [vmem:[%s13111_s13] ss:$0 sm:$0xff] }
0x1d5d   :  { %4636 = vrot.lane.b32.xlu1 %v4634_v47, %s11171_s30  ;;  %v7290_v59 = vmul.f32 -1.442695, %v4627_v30 }
0x1d5e   :  { %10523 = vmatpush3.bf16.msra.mxu1 %v11746_v25 }
0x1d5f   :  { %10533 = vmatprep.subr.bf16.mxu1 %v11172_v3  ;;  %11063 = vpow2.f32 %v7290_v59 }
0x1d69   :  { %v11064_v51 = vpop.eup %11063 }
0x1d6a   :  { %v4631_v13 = vadd.f32 1.0, %v11064_v51 }
0x1d6c   :  { %11065 = vrcp.f32 %v4631_v13 }
0x1d76   :  { %v11066_v17 = vpop.eup %11065 }
0x1d77   :  { %v4646_v40 = vsub.f32 1.0, %v11066_v17  ;;  %v4652_v1 = vmul.f32 %v11066_v17, %v12382_v33 }
0x1dcf   :  { %v4637_v24 = vpop.permute.xlu1 %4636 }
0x1dd0   :  { %v4639_v28 = vmul.f32 %v11066_v17, %v4637_v24 }
0x1dd2   :  { %4641 = vrot.lane.b32.xlu0 %v4639_v28, %s11171_s30 }
0x1e24   :  { %v4331_v42 = vpop.f32.mrb[50].mxu1 }
0x1e25   :  { %v9182_v48 = vpop.f32.mrb[51].mxu1 }
0x1e2c   :  { %v4401_v20 = vpop.f32.mrb[52].mxu1 }
0x1e2d   :  { %v4402_v31 = vadd.f32 %v4401_v20, %v4331_v42  ;;  %v9193_v50 = vpop.f32.mrb[53].mxu1 }
0x1e2f   :  { %v4405_v34 = vadd.f32 %v12353_v62, %v4402_v31 }
0x1e31   :  { %11067 = vtanh.f32 %v4405_v34 }
0x1e3b   :  { %v11068_v53 = vpop.eup %11067 }
0x1e3c   :  { %9203 = vmatmul.mubr.msk.f32.vlgmr.msra.gmra.mrb[54].mxu1 %vm198_vm4, %v11068_v53 }
0x1e3d   :  { %10535 = vmatpush3.bf16.msra.mxu1 %v11311_v14  ;;  %9227 = vmatprep.mubr.msk.f32.mxu1 %vm11173_vm0, %v11174_v6 }
0x1e3e   :  { %10536 = vmatprep.subr.bf16.mxu1 %v11172_v3 }
0x1e40   :  { %9228 = vmatmul.mubr.msk.f32.vlgmr.msra.gmra.mrb[56].mxu1 %vm124_vm1, %v4655_v45 }
0x1e41   :  { %10538 = vmatpush3.bf16.msra.mxu1 %v11336_v19  ;;  %9262 = vmatprep.mubr.msk.f32.mxu1 %vm11173_vm0, %v11174_v6 }
0x1e42   :  { %10539 = vmatprep.subr.bf16.mxu1 %v11172_v3 }
0x1e44   :  { %v4642_v39 = vpop.permute.xlu0 %4641 }
0x1e45   :  { %v4644_v54 = vadd.f32 %v4642_v39, %v4554_v7  ;;  %10541 = vmatpush3.bf16.msra.mxu1 %v11346_v23 }
0x1e46   :  { %10542 = vmatprep.subr.bf16.mxu1 %v11172_v3 }
0x1e47   :  { %11069 = vtanh.f32 %v4644_v54 }
0x1e49   :  { %10544 = vmatpush3.bf16.msra.mxu1 %v11358_v26 }
0x1e4a   :  { %10545 = vmatprep.subr.bf16.mxu1 %v11172_v3 }
0x1e4d   :  { %10547 = vmatpush3.bf16.msra.mxu1 %v11368_v29 }
0x1e4e   :  { %10548 = vmatprep.subr.bf16.mxu1 %v11172_v3 }
0x1e51   :  { %v11070_v56 = vpop.eup %11069  ;;  %10550 = vmatpush3.bf16.msra.mxu1 %v11379_v32 }
0x1e52   :  { %4648 = vrot.lane.b32.xlu1 %v11070_v56, %s11176_s3  ;;  %10551 = vmatprep.subr.bf16.mxu1 %v11172_v3 }
0x1e55   :  { %10553 = vmatpush3.bf16.msra.mxu1 %v11389_v35 }
0x1e56   :  { %10554 = vmatprep.subr.bf16.mxu1 %v11172_v3 }
0x1e59   :  { %10556 = vmatpush3.bf16.msra.mxu1 %v11398_v38 }
0x1e5a   :  { %10557 = vmatprep.subr.bf16.mxu1 %v11172_v3 }
0x1e5d   :  { %10559 = vmatpush3.bf16.msra.mxu1 %v11409_v41 }
0x1e5e   :  { %10592 = vmatprep.subr.bf16.mxu1 %v11172_v3 }
0x1ec4   :  { %v4649_v8 = vpop.permute.xlu1 %4648 }
0x1ec5   :  { %v4651_v46 = vmul.f32 %v4649_v8, %v4646_v40 }
0x1ec7   :  { %v12570_v58 = vadd.f32 %v4652_v1, %v4651_v46 }
0x1ec9   :  { %4885 = vrot.lane.b32.xlu0 %v12570_v58, %s11176_s3 }
0x1f0f   :  { %v4476_v47 = vpop.f32.mrb[54].mxu1 }
0x1f10   :  { %v4477_v7 = vadd.f32 %v12577_v2, %v4476_v47  ;;  %v9204_v30 = vpop.f32.mrb[55].mxu1 }
0x1f11   :  { %v7332_v30 = vld [vmem:[%s13121_s20 + $0x30] sm:$0xff] }
0x1f12   :  { %11071 = vtanh.f32 %v4477_v7 }
0x1f13   :  { %v4724_v59 = vpop.f32.mrb[56].mxu1 }
0x1f14   :  { %v4725_v51 = vadd.f32 %v12177_v43, %v4724_v59  ;;  %v9229_v33 = vpop.f32.mrb[57].mxu1 }
0x1f16   :  { %11073 = vtanh.f32 %v4725_v51 }
0x1f1c   :  { %v11072_v13 = vpop.eup %11071 }
0x1f1d   :  { %v12582_v17 = vadd.f32 %v11072_v13, %v12389_v44 }
0x1f20   :  { %v11074_v24 = vpop.eup %11073 }
0x1f21   :  { %v12585_v28 = vadd.f32 %v12186_v49, %v11074_v24 }
0x1f23   :  { %v4730_v42 = vmul.f32 %v12585_v28, %v12522_v36 }
0x1f25   :  { %9263 = vmatmul.mubr.f32.vlgmr.msra.gmra.mrb[58].mxu1 %v4730_v42 }
0x1f26   :  { %10594 = vmatpush3.bf16.msra.mxu1 %v11486_v10  ;;  %9308 = vmatprep.mubr.msk.f32.mxu1 %vm11173_vm0, %v11174_v6 }
0x1f27   :  { %10595 = vmatprep.subr.bf16.mxu1 %v11172_v3 }
0x1f2a   :  { %10597 = vmatpush3.bf16.msra.mxu1 %v11492_v12 }
0x1f2b   :  { %9311 = vmatprep.subr.mxu1 %v11174_v6 }
0x1f3b   :  { %v12595_v43 = vpop.permute.xlu0 %4885 }
0x1f3c   :  { %9309 = vmatmul.mubr.msk.f32.vlgmr.msra.gmra.mrb[60].mxu1 %vm198_vm4, %v12595_v43 }
0x1f3d   :  { %9312 = vmatpush3.xpose.msk.msra.mxu1 %vm124_vm1, %v12206_v55  ;;  %9313 = vmatprep.mubr.msk.f32.mxu1 %vm11173_vm0, %v11174_v6 }
0x1f3e   :  { %10598 = vmatprep.subr.bf16.mxu1 %v11172_v3 }
0x1ff8   :  { %v4797_v49 = vpop.f32.mrb[58].mxu1 }
0x1ff9   :  { %v7292_v44 = vmul.f32 -1.442695, %v4797_v49  ;;  %v9264_v48 = vpop.f32.mrb[59].mxu1 }
0x1ffb   :  { %11075 = vpow2.f32 %v7292_v44 }
0x2005   :  { %v11076_v20 = vpop.eup %11075 }
0x2006   :  { %v4804_v31 = vadd.f32 1.0, %v11076_v20 }
0x2008   :  { %11077 = vrcp.f32 %v4804_v31 }
0x200f   :  { %v4955_v50 = vpop.f32.mrb[60].mxu1 }
0x2010   :  { %v4956_v34 = vadd.f32 %v12216_v61, %v4955_v50  ;;  %v9310_v53 = vpop.f32.mrb[61].mxu1 }
0x2012   :  { %v11078_v45 = vpop.eup %11077  ;;  %11079 = vtanh.f32 %v4956_v34 }
0x2013   :  { %9298 = vmatmul.mubr.msk.f32.vlgmr.msra.gmra.mrb[58].mxu0 %vm472_vm2, %v11078_v45 }
0x2014   :  { %10632 = vmatpush3.bf16.msra.mxu0 %v11577_v60  ;;  %9383 = vmatprep.mubr.msk.f32.mxu0 %vm11173_vm0, %v11174_v6 }
0x2015   :  { %10633 = vmatprep.subr.bf16.mxu0 %v11172_v3 }
0x2018   :  { %10635 = vmatpush3.bf16.msra.mxu0 %v11583_v0 }
0x2019   :  { %10636 = vmatprep.subr.bf16.mxu0 %v11172_v3 }
0x201c   :  { %v11080_v55 = vpop.eup %11079  ;;  %10638 = vmatpush3.bf16.msra.mxu0 %v11593_v5 }
0x201d   :  { %9314 = vmatmul.mubr.msk.f32.vlgmr.msra.gmra.mrb[62].mxu1 %vm124_vm1, %v11080_v55  ;;  %10639 = vmatprep.subr.bf16.mxu0 %v11172_v3 }
0x201e   :  { %10601 = vmatpush3.bf16.xpose.msk.msra.mxu1 %vm11438_vm3, %v11336_v19  ;;  %9348 = vmatprep.mubr.msk.f32.mxu1 %vm11173_vm0, %v11174_v6 }
0x201f   :  { %10602 = vmatprep.subr.bf16.mxu1 %v11172_v3 }
0x2020   :  { %10641 = vmatpush3.bf16.msra.mxu0 %v11603_v11 }
0x2021   :  { %10642 = vmatprep.subr.bf16.mxu0 %v11172_v3 }
0x2024   :  { %10644 = vmatpush3.bf16.msra.mxu0 %v11613_v18 }
0x2025   :  { %10645 = vmatprep.subr.bf16.mxu0 %v11172_v3 }
0x2026   :  { %10605 = vmatpush3.bf16.xpose.msk.msra.mxu1 %vm11438_vm3, %v11346_v23 }
0x2027   :  { %10606 = vmatprep.subr.bf16.mxu1 %v11172_v3 }
0x2028   :  { %10647 = vmatpush3.bf16.msra.mxu0 %v11623_v22 }
0x2029   :  { %10648 = vmatprep.subr.bf16.mxu0 %v11172_v3 }
0x202c   :  { %10650 = vmatpush3.bf16.msra.mxu0 %v11633_v27 }
0x202d   :  { %10651 = vmatprep.subr.bf16.mxu0 %v11172_v3 }
0x202e   :  { %10609 = vmatpush3.bf16.xpose.msk.msra.mxu1 %vm11438_vm3, %v11358_v26 }
0x202f   :  { %10610 = vmatprep.subr.bf16.mxu1 %v11172_v3 }
0x2030   :  { %10653 = vmatpush3.bf16.msra.mxu0 %v11643_v37 }
0x2031   :  { %10654 = vmatprep.subr.bf16.mxu0 %v11172_v3 }
0x2036   :  { %10613 = vmatpush3.bf16.xpose.msk.msra.mxu1 %vm11438_vm3, %v11368_v29 }
0x2037   :  { %10614 = vmatprep.subr.bf16.mxu1 %v11172_v3 }
0x203e   :  { %10617 = vmatpush3.bf16.xpose.msk.msra.mxu1 %vm11438_vm3, %v11379_v32 }
0x203f   :  { %10618 = vmatprep.subr.bf16.mxu1 %v11172_v3 }
0x2046   :  { %10621 = vmatpush3.bf16.xpose.msk.msra.mxu1 %vm11438_vm3, %v11389_v35 }
0x2047   :  { %10622 = vmatprep.subr.bf16.mxu1 %v11172_v3 }
0x204e   :  { %10625 = vmatpush3.bf16.xpose.msk.msra.mxu1 %vm11438_vm3, %v11398_v38 }
0x204f   :  { %10626 = vmatprep.subr.bf16.mxu1 %v11172_v3 }
0x2056   :  { %10629 = vmatpush3.bf16.xpose.msk.msra.mxu1 %vm11438_vm3, %v11409_v41 }
0x2057   :  { %10666 = vmatprep.subr.bf16.mxu1 %v11172_v3 }
0x20e6   :  { %v4876_v61 = vpop.f32.mrb[58].mxu0 }
0x20e7   :  { %v9299_v39 = vpop.f32.mrb[59].mxu0  ;;  %v4880_v13 = vsub.f32 1.0, %v4876_v61  ;;  %v4882_v42 = vmul.f32 %v4876_v61, %v12585_v28 }
0x20e9   :  { %v4881_v24 = vmul.f32 %v4880_v13, %v12522_v36 }
0x20eb   :  { %v12715_v49 = vadd.f32 %v4882_v42, %v4881_v24 }
0x20f0   :  { %v5029_v54 = vpop.f32.mrb[62].mxu1 }
0x20f1   :  { %v9315_v56 = vpop.f32.mrb[63].mxu1  ;;  %v5033_v40 = vsel %vm472_vm2, %v5029_v54, -inf }
0x20f2   :  { %5034 = vmax.xlane.f32.xlu1 %v5033_v40 }
0x217f   :  { %v5035_v8 = vpop.xlane.xlu1 %5034 }
0x2180   :  { %v5036_v1 = vsub.f32 %v5029_v54, %v5035_v8 }
0x2182   :  { %v5037_v46 = vmul.f32 1.442695, %v5036_v1 }
0x2184   :  { %11081 = vpow2.f32 %v5037_v46 }
0x218e   :  { %v11082_v47 = vpop.eup %11081 }
0x218f   :  { %v5039_v7 = vsel %vm472_vm2, %v11082_v47, 0.0 }
0x2190   :  { %5040 = vadd.xlane.f32.xlu0 %v5039_v7 }
0x21a6   :  { %5507 = vrot.lane.b32.xlu0 %v7332_v30, %s11175_s18 }
0x221d   :  { %v5041_v59 = vpop.xlane.xlu0 %5040 }
0x221e   :  { %11083 = vrcp.f32 %v5041_v59 }
0x2228   :  { %v11084_v51 = vpop.eup %11083 }
0x2229   :  { %v5043_v33 = vmul.f32 %v11084_v51, %v11082_v47  ;;  %v5508_v51 = vpop.permute.xlu0 %5507 }
0x222b   :  { %9349 = vmatmul.mubr.msk.f32.vlgmr.msra.gmra.mrb[64].mxu1 %vm472_vm2, %v5043_v33 }
0x222c   :  { %10668 = vmatpush3.bf16.msra.mxu1 %v11279_v4  ;;  %9412 = vmatprep.mubr.msk.f32.mxu1 %vm11173_vm0, %v11174_v6 }
0x222d   :  { %10669 = vmatprep.subr.bf16.mxu1 %v11172_v3 }
0x222f   :  { %9413 = vmatmul.mubr.msk.f32.vlgmr.msra.gmra.mrb[66].mxu1 %vm124_vm1, %v7332_v30 }
0x2230   :  { %10671 = vmatpush3.bf16.msra.mxu1 %v11294_v9  ;;  %9423 = vmatprep.mubr.msk.f32.mxu1 %vm11173_vm0, %v11174_v6 }
0x2231   :  { %10672 = vmatprep.subr.bf16.mxu1 %v11172_v3 }
0x2234   :  { %10674 = vmatpush3.bf16.msra.mxu1 %v11317_v15 }
0x2235   :  { %10702 = vmatprep.subr.bf16.mxu1 %v11172_v3 }
0x2237   :  { %9424 = vmatmul.mubr.msk.f32.vlgmr.msra.gmra.mrb[68].mxu1 %vm198_vm4, %v12595_v43 }
0x2238   :  { %9500 = vmatprep.mubr.msk.f32.mxu1 %vm11173_vm0, %v11174_v6 }
0x223d   :  { %10705 = vmatpush3.bf16.xpose.msk.msra.mxu1 %vm11438_vm3, %v11336_v19 }
0x223e   :  { %10706 = vmatprep.subr.bf16.mxu1 %v11172_v3 }
0x2245   :  { %10709 = vmatpush3.bf16.xpose.msk.msra.mxu1 %vm11438_vm3, %v11346_v23 }
0x2246   :  { %10710 = vmatprep.subr.bf16.mxu1 %v11172_v3 }
0x224d   :  { %10713 = vmatpush3.bf16.xpose.msk.msra.mxu1 %vm11438_vm3, %v11358_v26 }
0x224e   :  { %10714 = vmatprep.subr.bf16.mxu1 %v11172_v3 }
0x2255   :  { %10717 = vmatpush3.bf16.xpose.msk.msra.mxu1 %vm11438_vm3, %v11368_v29 }
0x2256   :  { %10718 = vmatprep.subr.bf16.mxu1 %v11172_v3 }
0x225d   :  { %10721 = vmatpush3.bf16.xpose.msk.msra.mxu1 %vm11438_vm3, %v11379_v32 }
0x225e   :  { %10722 = vmatprep.subr.bf16.mxu1 %v11172_v3 }
0x2265   :  { %10725 = vmatpush3.bf16.xpose.msk.msra.mxu1 %vm11438_vm3, %v11389_v35 }
0x2266   :  { %10726 = vmatprep.subr.bf16.mxu1 %v11172_v3 }
0x226d   :  { %10729 = vmatpush3.bf16.xpose.msk.msra.mxu1 %vm11438_vm3, %v11398_v38 }
0x226e   :  { %10730 = vmatprep.subr.bf16.mxu1 %v11172_v3 }
0x2275   :  { %10733 = vmatpush3.bf16.xpose.msk.msra.mxu1 %vm11438_vm3, %v11409_v41 }
0x2276   :  { %10772 = vmatprep.subr.bf16.mxu1 %v11172_v3 }
0x22fe   :  { %v5113_v44 = vpop.f32.mrb[64].mxu1 }
0x22ff   :  { %v5117_v48 = vmul.f32 %v5113_v44, %v12715_v49  ;;  %v9350_v20 = vpop.f32.mrb[65].mxu1 }
0x2301   :  { %9384 = vmatmul.mubr.f32.vlgmr.msra.gmra.mrb[60].mxu0 %v5117_v48 }
0x2302   :  { %10656 = vmatpush3.bf16.msra.mxu0 %v11707_v52  ;;  %v5406_v31 = vpop.f32.mrb[66].mxu1  ;;  %9394 = vmatprep.mubr.msk.f32.mxu0 %vm11173_vm0, %v11174_v6 }
0x2303   :  { %v9414_v50 = vpop.f32.mrb[67].mxu1  ;;  %10657 = vmatprep.subr.bf16.mxu0 %v11172_v3 }
0x2306   :  { %10659 = vmatpush3.bf16.msra.mxu0 %v11717_v57 }
0x2307   :  { %10660 = vmatprep.subr.bf16.mxu0 %v11172_v3 }
0x2309   :  { %9395 = vmatmul.mubr.msk.f32.vlgmr.msra.gmra.mrb[62].mxu0 %vm198_vm4, %v12595_v43  ;;  %v12737_v43 = vld [vmem:[%s13100_s2] ss:$0 sm:$0xff] }
0x230a   :  { %v5476_v36 = vpop.f32.mrb[68].mxu1  ;;  %10662 = vmatpush3.bf16.msra.mxu0 %v11740_v21  ;;  %9405 = vmatprep.mubr.msk.f32.mxu0 %vm11173_vm0, %v11174_v6  ;;  %v5407_v53 = vadd.f32 %v12737_v43, %v5406_v31 }
0x230b   :  { %v5487_v28 = vadd.f32 %v5476_v36, %v11328_v16  ;;  %v9425_v34 = vpop.f32.mrb[69].mxu1  ;;  %10663 = vmatprep.subr.bf16.mxu0 %v11172_v3 }
0x230c   :  { %v5480_v45 = vadd.f32 %v5476_v36, %v5407_v53  ;;  %v12776_v34 = vld [vmem:[%s13104_s6] ss:$0 sm:$0xff] }
0x230d   :  { %5489 = vrot.lane.b32.xlu1 %v5487_v28, %s11171_s30 }
0x230e   :  { %10665 = vmatpush3.bf16.msra.mxu0 %v11746_v25  ;;  %v7335_v55 = vmul.f32 -1.442695, %v5480_v45 }
0x230f   :  { %10675 = vmatprep.subr.bf16.mxu0 %v11172_v3 }
0x2310   :  { %11085 = vpow2.f32 %v7335_v55 }
0x231a   :  { %v11086_v61 = vpop.eup %11085 }
0x231b   :  { %v5484_v39 = vadd.f32 1.0, %v11086_v61 }
0x231d   :  { %11087 = vrcp.f32 %v5484_v39  ;;  %v12785_v39 = vld [vmem:[%s13113_s15] ss:$0 sm:$0xff] }
0x2327   :  { %v11088_v54 = vpop.eup %11087 }
0x2328   :  { %v5499_v24 = vsub.f32 1.0, %v11088_v54  ;;  %v5505_v44 = vmul.f32 %v11088_v54, %v12570_v58 }
0x237f   :  { %v5490_v56 = vpop.permute.xlu1 %5489 }
0x2380   :  { %v5492_v40 = vmul.f32 %v11088_v54, %v5490_v56 }
0x2382   :  { %5494 = vrot.lane.b32.xlu1 %v5492_v40, %s11171_s30  ;;  %v12805_v40 = vld [vmem:[%s13112_s14] sm:$0xff] }
0x23d4   :  { %v5184_v8 = vpop.f32.mrb[60].mxu0 }
0x23d5   :  { %v9385_v1 = vpop.f32.mrb[61].mxu0 }
0x23dc   :  { %v5254_v46 = vpop.f32.mrb[62].mxu0 }
0x23dd   :  { %v5255_v47 = vadd.f32 %v5254_v46, %v5184_v8  ;;  %v9396_v7 = vpop.f32.mrb[63].mxu0 }
0x23df   :  { %v5258_v30 = vadd.f32 %v12353_v62, %v5255_v47 }
0x23e1   :  { %11089 = vtanh.f32 %v5258_v30 }
0x23eb   :  { %v11090_v59 = vpop.eup %11089 }
0x23ec   :  { %9406 = vmatmul.mubr.msk.f32.vlgmr.msra.gmra.mrb[64].mxu0 %vm198_vm4, %v11090_v59  ;;  %v12815_v59 = vld [vmem:[%s13106_s8] ss:$0 sm:$0xff] }
0x23ed   :  { %10677 = vmatpush3.bf16.msra.mxu0 %v11311_v14  ;;  %9430 = vmatprep.mubr.msk.f32.mxu0 %vm11173_vm0, %v11174_v6 }
0x23ee   :  { %10678 = vmatprep.subr.bf16.mxu0 %v11172_v3 }
0x23f0   :  { %9431 = vmatmul.mubr.msk.f32.vlgmr.msra.gmra.mrb[66].mxu0 %vm124_vm1, %v5508_v51 }
0x23f1   :  { %10680 = vmatpush3.bf16.msra.mxu0 %v11336_v19  ;;  %9465 = vmatprep.mubr.msk.f32.mxu0 %vm11173_vm0, %v11174_v6 }
0x23f2   :  { %10681 = vmatprep.subr.bf16.mxu0 %v11172_v3 }
0x23f4   :  { %v5495_v62 = vpop.permute.xlu1 %5494 }
0x23f5   :  { %v5497_v33 = vadd.f32 %v5495_v62, %v5407_v53  ;;  %10683 = vmatpush3.bf16.msra.mxu0 %v11346_v23 }
0x23f6   :  { %10684 = vmatprep.subr.bf16.mxu0 %v11172_v3 }
0x23f7   :  { %11091 = vtanh.f32 %v5497_v33 }
0x23f9   :  { %10686 = vmatpush3.bf16.msra.mxu0 %v11358_v26 }
0x23fa   :  { %10687 = vmatprep.subr.bf16.mxu0 %v11172_v3 }
0x23fd   :  { %10689 = vmatpush3.bf16.msra.mxu0 %v11368_v29 }
0x23fe   :  { %10690 = vmatprep.subr.bf16.mxu0 %v11172_v3 }
0x2401   :  { %v11092_v13 = vpop.eup %11091  ;;  %10692 = vmatpush3.bf16.msra.mxu0 %v11379_v32 }
0x2402   :  { %5501 = vrot.lane.b32.xlu0 %v11092_v13, %s11176_s3  ;;  %10693 = vmatprep.subr.bf16.mxu0 %v11172_v3 }
0x2405   :  { %10695 = vmatpush3.bf16.msra.mxu0 %v11389_v35 }
0x2406   :  { %10696 = vmatprep.subr.bf16.mxu0 %v11172_v3 }
0x2409   :  { %10698 = vmatpush3.bf16.msra.mxu0 %v11398_v38 }
0x240a   :  { %10699 = vmatprep.subr.bf16.mxu0 %v11172_v3 }
0x240d   :  { %10701 = vmatpush3.bf16.msra.mxu0 %v11409_v41 }
0x240e   :  { %10734 = vmatprep.subr.bf16.mxu0 %v11172_v3 }
0x2474   :  { %v5502_v42 = vpop.permute.xlu0 %5501 }
0x2475   :  { %v5504_v48 = vmul.f32 %v5502_v42, %v5499_v24 }
0x2477   :  { %v12768_v20 = vadd.f32 %v5505_v44, %v5504_v48 }
0x2479   :  { %5738 = vrot.lane.b32.xlu1 %v12768_v20, %s11176_s3 }
0x24bf   :  { %v5329_v31 = vpop.f32.mrb[64].mxu0 }
0x24c0   :  { %v5330_v50 = vadd.f32 %v12577_v2, %v5329_v31  ;;  %v9407_v36 = vpop.f32.mrb[65].mxu0 }
0x24c2   :  { %11093 = vtanh.f32 %v5330_v50 }
0x24c3   :  { %v5577_v28 = vpop.f32.mrb[66].mxu0 }
0x24c4   :  { %v5578_v53 = vadd.f32 %v12776_v34, %v5577_v28  ;;  %v9432_v58 = vpop.f32.mrb[67].mxu0 }
0x24c6   :  { %11095 = vtanh.f32 %v5578_v53 }
0x24cc   :  { %v11094_v45 = vpop.eup %11093 }
0x24cd   :  { %v12780_v55 = vadd.f32 %v11094_v45, %v12582_v17  ;;  %v7377_v45 = vld [vmem:[%s13121_s20 + $0x38] sm:$0xff] }
0x24d0   :  { %v11096_v61 = vpop.eup %11095 }
0x24d1   :  { %v12788_v54 = vadd.f32 %v12785_v39, %v11096_v61 }
0x24d3   :  { %v5583_v56 = vmul.f32 %v12788_v54, %v12715_v49 }
0x24d5   :  { %9466 = vmatmul.mubr.f32.vlgmr.msra.gmra.mrb[68].mxu0 %v5583_v56 }
0x24d6   :  { %10736 = vmatpush3.bf16.msra.mxu0 %v11486_v10  ;;  %9511 = vmatprep.mubr.msk.f32.mxu0 %vm11173_vm0, %v11174_v6 }
0x24d7   :  { %10737 = vmatprep.subr.bf16.mxu0 %v11172_v3 }
0x24da   :  { %10739 = vmatpush3.bf16.msra.mxu0 %v11492_v12 }
0x24db   :  { %9514 = vmatprep.subr.mxu0 %v11174_v6 }
0x24eb   :  { %v12798_v17 = vpop.permute.xlu1 %5738 }
0x24ec   :  { %9512 = vmatmul.mubr.msk.f32.vlgmr.msra.gmra.mrb[70].mxu0 %vm198_vm4, %v12798_v17 }
0x24ed   :  { %9515 = vmatpush3.xpose.msk.msra.mxu0 %vm124_vm1, %v12805_v40  ;;  %9516 = vmatprep.mubr.msk.f32.mxu0 %vm11173_vm0, %v11174_v6 }
0x24ee   :  { %10740 = vmatprep.subr.bf16.mxu0 %v11172_v3 }
0x25a8   :  { %v5650_v8 = vpop.f32.mrb[68].mxu0 }
0x25a9   :  { %v7337_v1 = vmul.f32 -1.442695, %v5650_v8  ;;  %v9467_v46 = vpop.f32.mrb[69].mxu0 }
0x25ab   :  { %11097 = vpow2.f32 %v7337_v1 }
0x25b5   :  { %v11098_v47 = vpop.eup %11097 }
0x25b6   :  { %v5657_v7 = vadd.f32 1.0, %v11098_v47 }
0x25b8   :  { %11099 = vrcp.f32 %v5657_v7 }
0x25bf   :  { %v5808_v30 = vpop.f32.mrb[70].mxu0 }
0x25c0   :  { %v5809_v51 = vadd.f32 %v12815_v59, %v5808_v30  ;;  %v9513_v62 = vpop.f32.mrb[71].mxu0 }
0x25c2   :  { %v11100_v33 = vpop.eup %11099  ;;  %11101 = vtanh.f32 %v5809_v51 }
0x25c3   :  { %9501 = vmatmul.mubr.msk.f32.vlgmr.msra.gmra.mrb[70].mxu1 %vm472_vm2, %v11100_v33 }
0x25c4   :  { %10774 = vmatpush3.bf16.msra.mxu1 %v11577_v60  ;;  %9586 = vmatprep.mubr.msk.f32.mxu1 %vm11173_vm0, %v11174_v6 }
0x25c5   :  { %10775 = vmatprep.subr.bf16.mxu1 %v11172_v3 }
0x25c8   :  { %10777 = vmatpush3.bf16.msra.mxu1 %v11583_v0 }
0x25c9   :  { %10778 = vmatprep.subr.bf16.mxu1 %v11172_v3 }
0x25cc   :  { %v11102_v13 = vpop.eup %11101  ;;  %10780 = vmatpush3.bf16.msra.mxu1 %v11593_v5 }
0x25cd   :  { %9517 = vmatmul.mubr.msk.f32.vlgmr.msra.gmra.mrb[72].mxu0 %vm124_vm1, %v11102_v13  ;;  %10781 = vmatprep.subr.bf16.mxu1 %v11172_v3 }
0x25ce   :  { %10743 = vmatpush3.bf16.xpose.msk.msra.mxu0 %vm11438_vm3, %v11336_v19  ;;  %9551 = vmatprep.mubr.msk.f32.mxu0 %vm11173_vm0, %v11174_v6 }
0x25cf   :  { %10744 = vmatprep.subr.bf16.mxu0 %v11172_v3 }
0x25d0   :  { %10783 = vmatpush3.bf16.msra.mxu1 %v11603_v11 }
0x25d1   :  { %10784 = vmatprep.subr.bf16.mxu1 %v11172_v3 }
0x25d4   :  { %10786 = vmatpush3.bf16.msra.mxu1 %v11613_v18 }
0x25d5   :  { %10787 = vmatprep.subr.bf16.mxu1 %v11172_v3 }
0x25d6   :  { %10747 = vmatpush3.bf16.xpose.msk.msra.mxu0 %vm11438_vm3, %v11346_v23 }
0x25d7   :  { %10748 = vmatprep.subr.bf16.mxu0 %v11172_v3 }
0x25d8   :  { %10789 = vmatpush3.bf16.msra.mxu1 %v11623_v22 }
0x25d9   :  { %10790 = vmatprep.subr.bf16.mxu1 %v11172_v3 }
0x25dc   :  { %10792 = vmatpush3.bf16.msra.mxu1 %v11633_v27 }
0x25dd   :  { %10793 = vmatprep.subr.bf16.mxu1 %v11172_v3 }
0x25de   :  { %10751 = vmatpush3.bf16.xpose.msk.msra.mxu0 %vm11438_vm3, %v11358_v26 }
0x25df   :  { %10752 = vmatprep.subr.bf16.mxu0 %v11172_v3 }
0x25e0   :  { %10795 = vmatpush3.bf16.msra.mxu1 %v11643_v37 }
0x25e1   :  { %10796 = vmatprep.subr.bf16.mxu1 %v11172_v3 }
0x25e6   :  { %10755 = vmatpush3.bf16.xpose.msk.msra.mxu0 %vm11438_vm3, %v11368_v29 }
0x25e7   :  { %10756 = vmatprep.subr.bf16.mxu0 %v11172_v3 }
0x25ee   :  { %10759 = vmatpush3.bf16.xpose.msk.msra.mxu0 %vm11438_vm3, %v11379_v32 }
0x25ef   :  { %10760 = vmatprep.subr.bf16.mxu0 %v11172_v3 }
0x25f6   :  { %10763 = vmatpush3.bf16.xpose.msk.msra.mxu0 %vm11438_vm3, %v11389_v35 }
0x25f7   :  { %10764 = vmatprep.subr.bf16.mxu0 %v11172_v3 }
0x25fe   :  { %10767 = vmatpush3.bf16.xpose.msk.msra.mxu0 %vm11438_vm3, %v11398_v38 }
0x25ff   :  { %10768 = vmatprep.subr.bf16.mxu0 %v11172_v3 }
0x2606   :  { %10771 = vmatpush3.bf16.xpose.msk.msra.mxu0 %vm11438_vm3, %v11409_v41 }
0x2607   :  { %10808 = vmatprep.subr.bf16.mxu0 %v11172_v3 }
0x2696   :  { %v5729_v24 = vpop.f32.mrb[70].mxu1 }
0x2697   :  { %v9502_v42 = vpop.f32.mrb[71].mxu1 }
0x26a0   :  { %v5882_v44 = vpop.f32.mrb[72].mxu0 }
0x26a1   :  { %v9518_v48 = vpop.f32.mrb[73].mxu0  ;;  %v5886_v31 = vsel %vm472_vm2, %v5882_v44, -inf }
0x26a2   :  { %5887 = vmax.xlane.f32.xlu0 %v5886_v31 }
0x26b8   :  { %6360 = vrot.lane.b32.xlu0 %v7377_v45, %s11175_s18 }
0x272f   :  { %v5888_v50 = vpop.xlane.xlu0 %5887 }
0x2730   :  { %v5889_v36 = vsub.f32 %v5882_v44, %v5888_v50 }
0x2732   :  { %v5890_v28 = vmul.f32 1.442695, %v5889_v36 }
0x2734   :  { %11103 = vpow2.f32 %v5890_v28 }
0x273e   :  { %v11104_v53 = vpop.eup %11103 }
0x273f   :  { %v5892_v58 = vsel %vm472_vm2, %v11104_v53, 0.0 }
0x2740   :  { %5893 = vadd.xlane.f32.xlu1 %v5892_v58 }
0x27cd   :  { %v5894_v61 = vpop.xlane.xlu1 %5893 }
0x27ce   :  { %11105 = vrcp.f32 %v5894_v61  ;;  %v6361_v61 = vpop.permute.xlu0 %6360 }
0x27d8   :  { %v11106_v56 = vpop.eup %11105 }
0x27d9   :  { %v5896_v8 = vmul.f32 %v11106_v56, %v11104_v53 }
0x27db   :  { %9552 = vmatmul.mubr.msk.f32.vlgmr.msra.gmra.mrb[74].mxu0 %vm472_vm2, %v5896_v8 }
0x27dc   :  { %10810 = vmatpush3.bf16.msra.mxu0 %v11279_v4  ;;  %9615 = vmatprep.mubr.msk.f32.mxu0 %vm11173_vm0, %v11174_v6  ;;  %v5733_v4 = vsub.f32 1.0, %v5729_v24 }
0x27dd   :  { %10811 = vmatprep.subr.bf16.mxu0 %v11172_v3 }
0x27df   :  { %9616 = vmatmul.mubr.msk.f32.vlgmr.msra.gmra.mrb[76].mxu0 %vm124_vm1, %v7377_v45 }
0x27e0   :  { %10813 = vmatpush3.bf16.msra.mxu0 %v11294_v9  ;;  %9626 = vmatprep.mubr.msk.f32.mxu0 %vm11173_vm0, %v11174_v6  ;;  %v5734_v9 = vmul.f32 %v5733_v4, %v12715_v49 }
0x27e1   :  { %10814 = vmatprep.subr.bf16.mxu0 %v11172_v3 }
0x27e4   :  { %10816 = vmatpush3.bf16.msra.mxu0 %v11317_v15  ;;  %v5735_v15 = vmul.f32 %v5729_v24, %v12788_v54 }
0x27e5   :  { %10844 = vmatprep.subr.bf16.mxu0 %v11172_v3 }
0x27e6   :  { %v12928_v1 = vadd.f32 %v5735_v15, %v5734_v9 }
0x27e7   :  { %9627 = vmatmul.mubr.msk.f32.vlgmr.msra.gmra.mrb[78].mxu0 %vm198_vm4, %v12798_v17 }
0x27e8   :  { %9703 = vmatprep.mubr.msk.f32.mxu0 %vm11173_vm0, %v11174_v6 }
0x27ed   :  { %10847 = vmatpush3.bf16.xpose.msk.msra.mxu0 %vm11438_vm3, %v11336_v19 }
0x27ee   :  { %10848 = vmatprep.subr.bf16.mxu0 %v11172_v3 }
0x27f5   :  { %10851 = vmatpush3.bf16.xpose.msk.msra.mxu0 %vm11438_vm3, %v11346_v23 }
0x27f6   :  { %10852 = vmatprep.subr.bf16.mxu0 %v11172_v3 }
0x27fd   :  { %10855 = vmatpush3.bf16.xpose.msk.msra.mxu0 %vm11438_vm3, %v11358_v26 }
0x27fe   :  { %10856 = vmatprep.subr.bf16.mxu0 %v11172_v3 }
0x2805   :  { %10859 = vmatpush3.bf16.xpose.msk.msra.mxu0 %vm11438_vm3, %v11368_v29 }
0x2806   :  { %10860 = vmatprep.subr.bf16.mxu0 %v11172_v3 }
0x280d   :  { %10863 = vmatpush3.bf16.xpose.msk.msra.mxu0 %vm11438_vm3, %v11379_v32 }
0x280e   :  { %10864 = vmatprep.subr.bf16.mxu0 %v11172_v3 }
0x2815   :  { %10867 = vmatpush3.bf16.xpose.msk.msra.mxu0 %vm11438_vm3, %v11389_v35 }
0x2816   :  { %10868 = vmatprep.subr.bf16.mxu0 %v11172_v3 }
0x281d   :  { %10871 = vmatpush3.bf16.xpose.msk.msra.mxu0 %vm11438_vm3, %v11398_v38 }
0x281e   :  { %10872 = vmatprep.subr.bf16.mxu0 %v11172_v3 }
0x2825   :  { %10875 = vmatpush3.bf16.xpose.msk.msra.mxu0 %vm11438_vm3, %v11409_v41 }
0x2826   :  { %10914 = vmatprep.subr.bf16.mxu0 %v11172_v3 }
0x28ae   :  { %v5966_v46 = vpop.f32.mrb[74].mxu0 }
0x28af   :  { %v5970_v47 = vmul.f32 %v5966_v46, %v12928_v1  ;;  %v9553_v7 = vpop.f32.mrb[75].mxu0 }
0x28b1   :  { %9587 = vmatmul.mubr.f32.vlgmr.msra.gmra.mrb[72].mxu1 %v5970_v47 }
0x28b2   :  { %10798 = vmatpush3.bf16.msra.mxu1 %v11707_v52  ;;  %v6259_v30 = vpop.f32.mrb[76].mxu0  ;;  %9597 = vmatprep.mubr.msk.f32.mxu1 %vm11173_vm0, %v11174_v6 }
0x28b3   :  { %v9617_v51 = vpop.f32.mrb[77].mxu0  ;;  %10799 = vmatprep.subr.bf16.mxu1 %v11172_v3  ;;  %v6260_v33 = vadd.f32 %v12737_v43, %v6259_v30  ;;  %v12952_v43 = vld [vmem:[%s13109_s11] ss:$0 sm:$0xff] }
0x28b6   :  { %10801 = vmatpush3.bf16.msra.mxu1 %v11717_v57 }
0x28b7   :  { %10802 = vmatprep.subr.bf16.mxu1 %v11172_v3 }
0x28b9   :  { %9598 = vmatmul.mubr.msk.f32.vlgmr.msra.gmra.mrb[74].mxu1 %vm198_vm4, %v12798_v17 }
0x28ba   :  { %v6329_v49 = vpop.f32.mrb[78].mxu0  ;;  %10804 = vmatpush3.bf16.msra.mxu1 %v11740_v21  ;;  %9608 = vmatprep.mubr.msk.f32.mxu1 %vm11173_vm0, %v11174_v6 }
0x28bb   :  { %v6340_v54 = vadd.f32 %v6329_v49, %v11328_v16  ;;  %v9628_v62 = vpop.f32.mrb[79].mxu0  ;;  %10805 = vmatprep.subr.bf16.mxu1 %v11172_v3  ;;  %v6333_v17 = vadd.f32 %v6329_v49, %v6260_v33 }
0x28bd   :  { %6342 = vrot.lane.b32.xlu1 %v6340_v54, %s11171_s30  ;;  %v7380_v13 = vmul.f32 -1.442695, %v6333_v17 }
0x28be   :  { %10807 = vmatpush3.bf16.msra.mxu1 %v11746_v25 }
0x28bf   :  { %10817 = vmatprep.subr.bf16.mxu1 %v11172_v3  ;;  %11107 = vpow2.f32 %v7380_v13 }
0x28c9   :  { %v11108_v24 = vpop.eup %11107 }
0x28ca   :  { %v6337_v42 = vadd.f32 1.0, %v11108_v24 }
0x28cc   :  { %11109 = vrcp.f32 %v6337_v42 }
0x28d6   :  { %v11110_v44 = vpop.eup %11109 }
0x28d7   :  { %v6352_v4 = vsub.f32 1.0, %v11110_v44  ;;  %v6358_v15 = vmul.f32 %v11110_v44, %v12768_v20 }
0x292f   :  { %v6343_v48 = vpop.permute.xlu1 %6342 }
0x2930   :  { %v6345_v16 = vmul.f32 %v11110_v44, %v6343_v48 }
0x2932   :  { %6347 = vrot.lane.b32.xlu0 %v6345_v16, %s11171_s30 }
0x2984   :  { %v6037_v31 = vpop.f32.mrb[72].mxu1 }
0x2985   :  { %v9588_v50 = vpop.f32.mrb[73].mxu1 }
0x298c   :  { %v6107_v36 = vpop.f32.mrb[74].mxu1 }
0x298d   :  { %v6108_v28 = vadd.f32 %v6107_v36, %v6037_v31  ;;  %v9599_v53 = vpop.f32.mrb[75].mxu1 }
0x298f   :  { %v6111_v58 = vadd.f32 %v12952_v43, %v6108_v28 }
0x2991   :  { %11111 = vtanh.f32 %v6111_v58 }
0x299b   :  { %v11112_v45 = vpop.eup %11111 }
0x299c   :  { %9609 = vmatmul.mubr.msk.f32.vlgmr.msra.gmra.mrb[76].mxu1 %vm198_vm4, %v11112_v45 }
0x299d   :  { %10819 = vmatpush3.bf16.msra.mxu1 %v11311_v14  ;;  %9633 = vmatprep.mubr.msk.f32.mxu1 %vm11173_vm0, %v11174_v6 }
0x299e   :  { %10820 = vmatprep.subr.bf16.mxu1 %v11172_v3 }
0x29a0   :  { %9634 = vmatmul.mubr.msk.f32.vlgmr.msra.gmra.mrb[78].mxu1 %vm124_vm1, %v6361_v61 }
0x29a1   :  { %10822 = vmatpush3.bf16.msra.mxu1 %v11336_v19  ;;  %9668 = vmatprep.mubr.msk.f32.mxu1 %vm11173_vm0, %v11174_v6 }
0x29a2   :  { %10823 = vmatprep.subr.bf16.mxu1 %v11172_v3 }
0x29a4   :  { %v6348_v56 = vpop.permute.xlu0 %6347 }
0x29a5   :  { %v6350_v8 = vadd.f32 %v6348_v56, %v6260_v33  ;;  %10825 = vmatpush3.bf16.msra.mxu1 %v11346_v23 }
0x29a6   :  { %10826 = vmatprep.subr.bf16.mxu1 %v11172_v3 }
0x29a7   :  { %11113 = vtanh.f32 %v6350_v8 }
0x29a9   :  { %10828 = vmatpush3.bf16.msra.mxu1 %v11358_v26 }
0x29aa   :  { %10829 = vmatprep.subr.bf16.mxu1 %v11172_v3 }
0x29ad   :  { %10831 = vmatpush3.bf16.msra.mxu1 %v11368_v29 }
0x29ae   :  { %10832 = vmatprep.subr.bf16.mxu1 %v11172_v3 }
0x29b1   :  { %v11114_v14 = vpop.eup %11113  ;;  %10834 = vmatpush3.bf16.msra.mxu1 %v11379_v32 }
0x29b2   :  { %6354 = vrot.lane.b32.xlu1 %v11114_v14, %s11176_s3  ;;  %10835 = vmatprep.subr.bf16.mxu1 %v11172_v3 }
0x29b5   :  { %10837 = vmatpush3.bf16.msra.mxu1 %v11389_v35 }
0x29b6   :  { %10838 = vmatprep.subr.bf16.mxu1 %v11172_v3 }
0x29b9   :  { %10840 = vmatpush3.bf16.msra.mxu1 %v11398_v38 }
0x29ba   :  { %10841 = vmatprep.subr.bf16.mxu1 %v11172_v3 }
0x29bd   :  { %10843 = vmatpush3.bf16.msra.mxu1 %v11409_v41 }
0x29be   :  { %10876 = vmatprep.subr.bf16.mxu1 %v11172_v3 }
0x2a24   :  { %v6355_v9 = vpop.permute.xlu1 %6354 }
0x2a25   :  { %v6357_v46 = vmul.f32 %v6355_v9, %v6352_v4 }
0x2a27   :  { %v6359_v47 = vadd.f32 %v6358_v15, %v6357_v46 }
0x2a29   :  { %6591 = vrot.lane.b32.xlu0 %v6359_v47, %s11176_s3  ;;  %s11177_s3 = smov [#allocation2]  }
0x2a2a   :  { %s7049_s5 = sshll.u32 %s11177_s3, 4  ;;  %s7050_s5 = int_to_ptr.vmem [resolvable:$true] %s7049_s5 }
0x2a2b   :  { %s11147_s19 = scalar_lea.vmem %s7050_s5, 128  ;;  %p11152_p1 = scmp.lt.s32.totalorder %s7050_s5, %s7050_s5 }
0x2a2c   :  { %p11148_p0 = scmp.ne.s32.totalorder %s7050_s5, %s11147_s19  ;;  %p11153_p2 = scmp.lt.s32.totalorder %s11147_s19, %s11147_s19 }
0x2a2e   :  { %p11154_p3 = por %p11153_p2, %p11152_p1 }
0x2a30   :  { %p11155_p4 = pnand %p11154_p3, %p11148_p0 }
0x2a6f   :  { %v6182_v7 = vpop.f32.mrb[76].mxu1 }
0x2a70   :  { %v6183_v30 = vadd.f32 %v12577_v2, %v6182_v7  ;;  %v9610_v51 = vpop.f32.mrb[77].mxu1 }
0x2a72   :  { %11115 = vtanh.f32 %v6183_v30 }
0x2a73   :  { %v6430_v49 = vpop.f32.mrb[78].mxu1 }
0x2a74   :  { %v6431_v54 = vadd.f32 %v12776_v34, %v6430_v49  ;;  %v9635_v62 = vpop.f32.mrb[79].mxu1 }
0x2a76   :  { %11117 = vtanh.f32 %v6431_v54 }
0x2a7c   :  { %v11116_v33 = vpop.eup %11115 }
0x2a7d   :  { %v12985_v17 = vadd.f32 %v11116_v33, %v12780_v55 }
0x2a80   :  { %v11118_v13 = vpop.eup %11117 }
0x2a81   :  { %v12988_v20 = vadd.f32 %v12785_v39, %v11118_v13 }
0x2a83   :  { %v6436_v24 = vmul.f32 %v12988_v20, %v12928_v1 }
0x2a85   :  { %9669 = vmatmul.mubr.f32.vlgmr.msra.gmra.mrb[80].mxu1 %v6436_v24 }
0x2a86   :  { %10878 = vmatpush3.bf16.msra.mxu1 %v11486_v10  ;;  %9714 = vmatprep.mubr.msk.f32.mxu1 %vm11173_vm0, %v11174_v6 }
0x2a87   :  { %10879 = vmatprep.subr.bf16.mxu1 %v11172_v3 }
0x2a8a   :  { %10881 = vmatpush3.bf16.msra.mxu1 %v11492_v12 }
0x2a8b   :  { %9717 = vmatprep.subr.mxu1 %v11174_v6 }
0x2a9b   :  { %v12998_v2 = vpop.permute.xlu0 %6591 }
0x2a9c   :  { %9715 = vmatmul.mubr.msk.f32.vlgmr.msra.gmra.mrb[82].mxu1 %vm198_vm4, %v12998_v2 }
0x2a9d   :  { %9718 = vmatpush3.xpose.msk.msra.mxu1 %vm124_vm1, %v12805_v40  ;;  %9719 = vmatprep.mubr.msk.f32.mxu1 %vm11173_vm0, %v11174_v6 }
0x2a9e   :  { %10882 = vmatprep.subr.bf16.mxu1 %v11172_v3 }
0x2b58   :  { %v6503_v10 = vpop.f32.mrb[80].mxu1 }
0x2b59   :  { %v7382_v34 = vmul.f32 -1.442695, %v6503_v10  ;;  %v9670_v55 = vpop.f32.mrb[81].mxu1 }
0x2b5b   :  { %11119 = vpow2.f32 %v7382_v34 }
0x2b65   :  { %v11120_v12 = vpop.eup %11119 }
0x2b66   :  { %v6510_v39 = vadd.f32 1.0, %v11120_v12 }
0x2b68   :  { %11121 = vrcp.f32 %v6510_v39 }
0x2b6f   :  { %v6661_v42 = vpop.f32.mrb[82].mxu1 }
0x2b70   :  { %v6662_v44 = vadd.f32 %v12815_v59, %v6661_v42  ;;  %v9716_v48 = vpop.f32.mrb[83].mxu1 }
0x2b72   :  { %v11122_v16 = vpop.eup %11121  ;;  %11123 = vtanh.f32 %v6662_v44 }
0x2b73   :  { %9704 = vmatmul.mubr.msk.f32.vlgmr.msra.gmra.mrb[80].mxu0 %vm472_vm2, %v11122_v16 }
0x2b74   :  { %10916 = vmatpush3.bf16.msra.mxu0 %v11577_v60  ;;  %9789 = vmatprep.mubr.msk.f32.mxu0 %vm11173_vm0, %v11174_v6 }
0x2b75   :  { %10917 = vmatprep.subr.bf16.mxu0 %v11172_v3 }
0x2b78   :  { %10919 = vmatpush3.bf16.msra.mxu0 %v11583_v0 }
0x2b79   :  { %10920 = vmatprep.subr.bf16.mxu0 %v11172_v3 }
0x2b7c   :  { %v11124_v40 = vpop.eup %11123  ;;  %10922 = vmatpush3.bf16.msra.mxu0 %v11593_v5 }
0x2b7d   :  { %9720 = vmatmul.mubr.msk.f32.vlgmr.msra.gmra.mrb[84].mxu1 %vm124_vm1, %v11124_v40  ;;  %10923 = vmatprep.subr.bf16.mxu0 %v11172_v3 }
0x2b7e   :  { %10885 = vmatpush3.bf16.xpose.msk.msra.mxu1 %vm11438_vm3, %v11336_v19  ;;  %9754 = vmatprep.mubr.msk.f32.mxu1 %vm11173_vm0, %v11174_v6 }
0x2b7f   :  { %10886 = vmatprep.subr.bf16.mxu1 %v11172_v3 }
0x2b80   :  { %10925 = vmatpush3.bf16.msra.mxu0 %v11603_v11 }
0x2b81   :  { %10926 = vmatprep.subr.bf16.mxu0 %v11172_v3 }
0x2b84   :  { %10928 = vmatpush3.bf16.msra.mxu0 %v11613_v18 }
0x2b85   :  { %10929 = vmatprep.subr.bf16.mxu0 %v11172_v3 }
0x2b86   :  { %10889 = vmatpush3.bf16.xpose.msk.msra.mxu1 %vm11438_vm3, %v11346_v23 }
0x2b87   :  { %10890 = vmatprep.subr.bf16.mxu1 %v11172_v3 }
0x2b88   :  { %10931 = vmatpush3.bf16.msra.mxu0 %v11623_v22 }
0x2b89   :  { %10932 = vmatprep.subr.bf16.mxu0 %v11172_v3 }
0x2b8c   :  { %10934 = vmatpush3.bf16.msra.mxu0 %v11633_v27 }
0x2b8d   :  { %10935 = vmatprep.subr.bf16.mxu0 %v11172_v3 }
0x2b8e   :  { %10893 = vmatpush3.bf16.xpose.msk.msra.mxu1 %vm11438_vm3, %v11358_v26 }
0x2b8f   :  { %10894 = vmatprep.subr.bf16.mxu1 %v11172_v3 }
0x2b90   :  { %10937 = vmatpush3.bf16.msra.mxu0 %v11643_v37 }
0x2b91   :  { %10938 = vmatprep.subr.bf16.mxu0 %v11172_v3 }
0x2b96   :  { %10897 = vmatpush3.bf16.xpose.msk.msra.mxu1 %vm11438_vm3, %v11368_v29 }
0x2b97   :  { %10898 = vmatprep.subr.bf16.mxu1 %v11172_v3 }
0x2b9e   :  { %10901 = vmatpush3.bf16.xpose.msk.msra.mxu1 %vm11438_vm3, %v11379_v32 }
0x2b9f   :  { %10902 = vmatprep.subr.bf16.mxu1 %v11172_v3 }
0x2ba6   :  { %10905 = vmatpush3.bf16.xpose.msk.msra.mxu1 %vm11438_vm3, %v11389_v35 }
0x2ba7   :  { %10906 = vmatprep.subr.bf16.mxu1 %v11172_v3 }
0x2bae   :  { %10909 = vmatpush3.bf16.xpose.msk.msra.mxu1 %vm11438_vm3, %v11398_v38 }
0x2baf   :  { %10910 = vmatprep.subr.bf16.mxu1 %v11172_v3 }
0x2bb6   :  { %10913 = vmatpush3.bf16.xpose.msk.msra.mxu1 %vm11438_vm3, %v11409_v41 }
0x2c46   :  { %v6582_v19 = vpop.f32.mrb[80].mxu0 }
0x2c47   :  { %v9705_v23 = vpop.f32.mrb[81].mxu0  ;;  %v6586_v41 = vsub.f32 1.0, %v6582_v19  ;;  %v6588_v27 = vmul.f32 %v6582_v19, %v12988_v20 }
0x2c49   :  { %v6587_v22 = vmul.f32 %v6586_v41, %v12928_v1 }
0x2c4b   :  { %v6589_v37 = vadd.f32 %v6588_v27, %v6587_v22 }
0x2c50   :  { %v6735_v26 = vpop.f32.mrb[84].mxu1 }
0x2c51   :  { %v9721_v29 = vpop.f32.mrb[85].mxu1  ;;  %v6739_v32 = vsel %vm472_vm2, %v6735_v26, -inf }
0x2c52   :  { %6740 = vmax.xlane.f32.xlu1 %v6739_v32 }
0x2cdf   :  { %v6741_v35 = vpop.xlane.xlu1 %6740 }
0x2ce0   :  { %v6742_v60 = vsub.f32 %v6735_v26, %v6741_v35 }
0x2ce2   :  { %v6743_v0 = vmul.f32 1.442695, %v6742_v60 }
0x2ce4   :  { %11125 = vpow2.f32 %v6743_v0 }
0x2cee   :  { %v11126_v5 = vpop.eup %11125 }
0x2cef   :  { %v6745_v38 = vsel %vm472_vm2, %v11126_v5, 0.0 }
0x2cf0   :  { %6746 = vadd.xlane.f32.xlu0 %v6745_v38 }
0x2d7d   :  { %v6747_v11 = vpop.xlane.xlu0 %6746 }
0x2d7e   :  { %11127 = vrcp.f32 %v6747_v11 }
0x2d88   :  { %v11128_v18 = vpop.eup %11127 }
0x2d89   :  { %v6749_v63 = vmul.f32 %v11128_v18, %v11126_v5 }
0x2d8b   :  { %9755 = vmatmul.mubr.msk.f32.vlgmr.msra.gmra.mrb[86].mxu1 %vm472_vm2, %v6749_v63 }
0x2e5e   :  { %v6819_v59 = vpop.f32.mrb[86].mxu1 }
0x2e5f   :  { %v6823_v31 = vmul.f32 %v6819_v59, %v6589_v37  ;;  %v9756_v50 = vpop.f32.mrb[87].mxu1 }
0x2e61   :  { %9790 = vmatmul.mubr.f32.vlgmr.msra.gmra.mrb[82].mxu0 %v6823_v31 }
0x2e62   :  { %10940 = vmatpush3.bf16.msra.mxu0 %v11707_v52  ;;  %9800 = vmatprep.mubr.msk.f32.mxu0 %vm11173_vm0, %v11174_v6 }
0x2e63   :  { %10941 = vmatprep.subr.bf16.mxu0 %v11172_v3 }
0x2e66   :  { %10943 = vmatpush3.bf16.msra.mxu0 %v11717_v57 }
0x2e67   :  { %10944 = vmatprep.subr.bf16.mxu0 %v11172_v3 }
0x2e69   :  { %9801 = vmatmul.mubr.msk.f32.vlgmr.msra.gmra.mrb[84].mxu0 %vm198_vm4, %v12998_v2 }
0x2e6a   :  { %10946 = vmatpush3.bf16.msra.mxu0 %v11740_v21  ;;  %9811 = vmatprep.mubr.msk.f32.mxu0 %vm11173_vm0, %v11174_v6  ;;  %v11146_v6 = vld [vmem:[%s13111_s13] ss:$0 sm:$0xff] }
0x2e6b   :  { %10947 = vmatprep.subr.bf16.mxu0 %v11172_v3 }
0x2e6e   :  { %10949 = vmatpush3.bf16.msra.mxu0 %v11746_v25 }
0x2f34   :  { %v6890_v52 = vpop.f32.mrb[82].mxu0 }
0x2f35   :  { %v9791_v1 = vpop.f32.mrb[83].mxu0 }
0x2f3c   :  { %v6960_v36 = vpop.f32.mrb[84].mxu0 }
0x2f3d   :  { %v6961_v28 = vadd.f32 %v6960_v36, %v6890_v52  ;;  %v9802_v53 = vpop.f32.mrb[85].mxu0 }
0x2f3f   :  { %v6964_v57 = vadd.f32 %v12952_v43, %v6961_v28 }
0x2f41   :  { %11129 = vtanh.f32 %v6964_v57 }
0x2f4b   :  { %v11130_v58 = vpop.eup %11129 }
0x2f4c   :  { %9812 = vmatmul.mubr.msk.f32.vlgmr.msra.gmra.mrb[86].mxu0 %vm198_vm4, %v11130_v58 }
0x301f   :  { %v7035_v45 = vpop.f32.mrb[86].mxu0 }
0x3020   :  { %v7036_v21 = vadd.f32 %v11146_v6, %v7035_v45  ;;  %v9813_v3 = vpop.f32.mrb[87].mxu0 }
0x3022   :  { %11131 = vtanh.f32 %v7036_v21 }
0x302c   :  { %v11132_v25 = vpop.eup %11131 }
0x302d   :  { %v7040_v61 = vadd.f32 %v11132_v25, %v12985_v17 }
0x302f   :  { %v7041_v56 = vmul.f32 0.125, %v7040_v61 }
0x3031   :  { %7042 = vst.msk [vmem:[#allocation2] sm:$0xff] %vm198_vm4, %v7041_v56 }
0x3032   :  { %11158 = shalt.err (!%p11155_p4)
}
0x3033   :  { %s11159_s12 = scalar_lea.hbm %s13115_s17, 128 }
0x3034   :  { %p11160_p5 = scmp.ne.s32.totalorder %s13115_s17, %s11159_s12  ;;  %p11163_p6 = scmp.lt.u32.totalorder %s11159_s12, %s13115_s17 }
0x3036   :  { %p11165_p7 = pnand %p11163_p6, %p11160_p5 }
0x3038   :  { %11168 = shalt.err (!%p11165_p7)
}
0x3039   :  { %7052 = dma.vmem_to_hbm [thread:$0]  %s7050_s5, 128, %s13115_s17, [#allocation3]  }
0x303a   :  { %11169 = dma.done.wait [#allocation3], 128  }
0x303b   :  { %11170 = vsyncadd [#allocation3], 4294967168 }
0x303c   :  { %7056 = vsyncpa [#allocation3], 1 }

</bundles_post_ra>
